<compile_context>
chip_gen: v6e
topology: v6e:2x2x1
jax: 0.10.0
libtpu: 0.0.40
codegen_flags: <defaults>
</compile_context>

<pallas_src>
import math
from functools import partial

import jax
import jax.numpy as jnp
from jax import lax
from jax.experimental import pallas as pl
from jax.experimental.pallas import tpu as pltpu


LANE = 128


def _rup(n, m):
    return ((n + m - 1) // m) * m


# ----------------------------------------------------------------------------
# Pallas kernels
# ----------------------------------------------------------------------------
def _linear_kernel(x_ref, wt_ref, b_ref, o_ref, *, relu):
    # x: (tm, K) f32, wt: (K, N) bf16 pre-transposed, b: (1, N) f32
    y = jnp.dot(x_ref[...].astype(jnp.bfloat16), wt_ref[...],
                preferred_element_type=jnp.float32) + b_ref[...]
    if relu:
        y = jnp.maximum(y, 0.0)
    o_ref[...] = y.astype(o_ref.dtype)


def _s2t_bi_kernel(uf_ref, ub_ref, w1t_ref, b1_ref, wt_ref, b_ref, o_ref, *, n_valid):
    # Fused concat([u_fw, u_bw], -1) + source2token self-attention over the seq axis,
    # masking block-padding rows (row >= n_valid) out of the softmax.
    uf = uf_ref[...]
    ub = ub_ref[...]
    Gb, L, dp = uf.shape
    H2 = 2 * dp
    x = jnp.concatenate([uf, ub], axis=-1)                       # (Gb, L, 2dp) f32
    row = lax.broadcasted_iota(jnp.int32, (Gb, L, H2), 1)
    valid = row < n_valid
    x = jnp.where(valid, x, 0.0)
    x2 = x.reshape(Gb * L, H2)
    f = jnp.dot(x2.astype(jnp.bfloat16), w1t_ref[...],
                preferred_element_type=jnp.float32) + b1_ref[...]
    f = jnp.maximum(f, 0.0)
    logits = (jnp.dot(f.astype(jnp.bfloat16), wt_ref[...],
                      preferred_element_type=jnp.float32)
              + b_ref[...]).reshape(Gb, L, H2)
    logits = jnp.where(valid, logits, -jnp.inf)
    m = jnp.max(logits, axis=1, keepdims=True)
    e = jnp.exp(logits - m)
    p = e * pl.reciprocal(jnp.sum(e, axis=1, keepdims=True), approx=True)
    o_ref[...] = jnp.sum(p * x, axis=1).astype(o_ref.dtype)      # (Gb, 2dp)


def _mblosa_kernel(x_ref,
                   s2t_w1t, s2t_b1, s2t_wt, s2t_b,
                   g_w1t, g_w2t, g_b,
                   f1xh, f1h, f1e, f1b,
                   f2xh, f2h, f2e, f2b,
                   u_ref, *, mask, nb, r):
    # x block: (Bt, NR, dp) -- Bt independent (block-padded) sequences per grid step.
    Bt, NR, dp = x_ref.shape
    x = x_ref[...]                                               # f32
    x4 = x.reshape(Bt, nb, r, dp)
    xflat = x.reshape(Bt * NR, dp)

    # --- token-level mSA: reference softmax over j sums to 1 for every non-masked
    #     row, so mSA == x with one row per block zeroed (fw: last, bw: first). ---
    drop_row = (r - 1) if mask == 'fw' else 0
    row = lax.broadcasted_iota(jnp.int32, (Bt, nb, r, dp), 2)
    is_drop = row == drop_row
    h4 = jnp.where(is_drop, 0.0, x4)
    hflat = h4.reshape(Bt * NR, dp)

    xb = xflat.astype(jnp.bfloat16)
    hb = hflat.astype(jnp.bfloat16)

    # --- source2token self-attention within each block ---
    f1 = jnp.maximum(
        jnp.dot(hb, s2t_w1t[...], preferred_element_type=jnp.float32) + s2t_b1[...],
        0.0)
    logits = (jnp.dot(f1.astype(jnp.bfloat16), s2t_wt[...],
                      preferred_element_type=jnp.float32)
              + s2t_b[...]).reshape(Bt, nb, r, dp)
    m = jnp.max(logits, axis=2, keepdims=True)
    e = jnp.exp(logits - m)
    p = e * pl.reciprocal(jnp.sum(e, axis=2, keepdims=True), approx=True)
    v = jnp.sum(p * h4, axis=2)                                  # (Bt, nb, dp)

    # --- block-level mSA: same identity-with-dropped-row simplification ---
    drop_blk = (nb - 1) if mask == 'fw' else 0
    blk = lax.broadcasted_iota(jnp.int32, (Bt, nb, dp), 1)
    o = jnp.where(blk == drop_blk, 0.0, v)                       # (Bt, nb, dp)

    o2 = o.reshape(Bt * nb, dp)
    v2 = v.reshape(Bt * nb, dp)

    # --- gate: e_gate = G*o + (1-G)*v  (sigmoid via tanh -> EUP) ---
    g_pre = (jnp.dot(o2.astype(jnp.bfloat16), g_w1t[...],
                     preferred_element_type=jnp.float32)
             + jnp.dot(v2.astype(jnp.bfloat16), g_w2t[...],
                       preferred_element_type=jnp.float32)
             + g_b[...])
    G = 0.5 * (1.0 + jnp.tanh(0.5 * g_pre))
    e_gate = G * o2 + (1.0 - G) * v2                             # (Bt*nb, dp)
    eb = e_gate.astype(jnp.bfloat16)

    # --- fusion over the flattened sequence, cat([x, h, E]) @ W ---
    # h == x with the dropped row zeroed  =>  x@Wx + h@Wh = x@(Wx+Wh) - corr,
    # where corr only touches the dropped row of each block; E is block-constant,
    # so its matmul is done at (nb, dp) and broadcast over r.
    xd = x4[:, :, drop_row, :].reshape(Bt * nb, dp)              # dropped rows of x
    xdb = xd.astype(jnp.bfloat16)

    base1 = jnp.dot(xb, f1xh[...], preferred_element_type=jnp.float32)
    base2 = jnp.dot(xb, f2xh[...], preferred_element_type=jnp.float32)
    corr1 = jnp.dot(xdb, f1h[...], preferred_element_type=jnp.float32)
    corr2 = jnp.dot(xdb, f2h[...], preferred_element_type=jnp.float32)
    et1 = jnp.dot(eb, f1e[...], preferred_element_type=jnp.float32)
    et2 = jnp.dot(eb, f2e[...], preferred_element_type=jnp.float32)

    base1 = base1.reshape(Bt, nb, r, dp)
    base2 = base2.reshape(Bt, nb, r, dp)
    pre_f = (base1 - jnp.where(is_drop, corr1.reshape(Bt, nb, 1, dp), 0.0)
             + et1.reshape(Bt, nb, 1, dp) + f1b[...])
    pre_g = (base2 - jnp.where(is_drop, corr2.reshape(Bt, nb, 1, dp), 0.0)
             + et2.reshape(Bt, nb, 1, dp) + f2b[...])
    fusion = jnp.maximum(pre_f, 0.0)
    Gf = 0.5 * (1.0 + jnp.tanh(0.5 * pre_g))
    u = Gf * fusion + (1.0 - Gf) * x4
    u_ref[...] = u.reshape(Bt, NR, dp).astype(u_ref.dtype)


# ----------------------------------------------------------------------------
# Wrappers around pallas_call
# ----------------------------------------------------------------------------
def linear(x, wt, b, relu=False):
    """y = x @ wt + b, wt in (in, out) bf16 layout, b shaped (1, out) f32."""
    lead = x.shape[:-1]
    K = x.shape[-1]
    N = wt.shape[1]
    x2 = x.reshape(-1, K)
    M = x2.shape[0]
    tm = min(256, _rup(M, 8))
    Mp = _rup(M, tm)
    if Mp != M:
        x2 = jnp.concatenate([x2, jnp.zeros((Mp - M, K), x2.dtype)], axis=0)
    out = pl.pallas_call(
        partial(_linear_kernel, relu=relu),
        grid=(Mp // tm,),
        in_specs=[pl.BlockSpec((tm, K), lambda i: (i, 0)),
                  pl.BlockSpec((K, N), lambda i: (0, 0)),
                  pl.BlockSpec((1, N), lambda i: (0, 0))],
        out_specs=pl.BlockSpec((tm, N), lambda i: (i, 0)),
        out_shape=jax.ShapeDtypeStruct((Mp, N), jnp.float32),
        compiler_params=pltpu.CompilerParams(dimension_semantics=("parallel",)),
    )(x2, wt, b)
    if Mp != M:
        out = out[:M]
    return out.reshape(lead + (N,))


def mblosa(x, p, mask, r):
    """Fully fused mBloSA forward; x: (B, n, dp) -> (B, NR, dp) (block-padded len)."""
    B, n, dp = x.shape
    pad_len = (r - n % r) % r
    if pad_len:
        x = jnp.concatenate([x, jnp.zeros((B, pad_len, dp), x.dtype)], axis=1)
    NR = x.shape[1]
    nb = NR // r

    # batch several sequences per grid step (target >= 256 matmul rows),
    # keeping >= 2 grid steps when the batch allows (v7x megacore).
    bt = max(1, min(B, -(-256 // NR)))
    if B > 1 and bt >= B:
        bt = -(-B // 2)
    Bp = _rup(B, bt)
    if Bp != B:
        x = jnp.concatenate([x, jnp.zeros((Bp - B, NR, dp), x.dtype)], axis=0)

    weights = (p['s2t_W1_t'], p['s2t_W1_b'], p['s2t_W_t'], p['s2t_W_b'],
               p['g_W1_t'], p['g_W2_t'], p['g_b'],
               p['f_W1xh_t'], p['f_W1h_t'], p['f_W1e_t'], p['f_W1_b'],
               p['f_W2xh_t'], p['f_W2h_t'], p['f_W2e_t'], p['f_W2_b'])
    # TODO(synk): on v7x, single-buffer these constant-index weight blocks
    # (pipeline_mode=pl.Buffered(1)) and set vmem_limit_bytes once measured.
    w_specs = [pl.BlockSpec(w.shape, lambda g: (0, 0)) for w in weights]

    u = pl.pallas_call(
        partial(_mblosa_kernel, mask=mask, nb=nb, r=r),
        grid=(Bp // bt,),
        in_specs=[pl.BlockSpec((bt, NR, dp), lambda g: (g, 0, 0))] + w_specs,
        out_specs=pl.BlockSpec((bt, NR, dp), lambda g: (g, 0, 0)),
        out_shape=jax.ShapeDtypeStruct((Bp, NR, dp), jnp.float32),
        compiler_params=pltpu.CompilerParams(dimension_semantics=("parallel",)),
    )(x, *weights)
    return u[:B]          # keep padded length NR; masked downstream


def s2tsa_bi(u_fw, u_bw, w1t, b1, wt, b, n_valid):
    """Fused concat + s2tSA over the (block-padded) sequence; -> (B, 2*dp)."""
    B, L, dp = u_fw.shape
    H2 = wt.shape[1]
    gb = _rup(max(1, -(-256 // L)), 8)       # 8-aligned group block (lane-dense out)
    Bp = _rup(B, 8)
    gb = min(gb, Bp)
    Bp = _rup(Bp, gb)
    if Bp != B:
        z = jnp.zeros((Bp - B, L, dp), u_fw.dtype)
        u_fw = jnp.concatenate([u_fw, z], axis=0)
        u_bw = jnp.concatenate([u_bw, z], axis=0)
    out = pl.pallas_call(
        partial(_s2t_bi_kernel, n_valid=n_valid),
        grid=(Bp // gb,),
        in_specs=[pl.BlockSpec((gb, L, dp), lambda g: (g, 0, 0)),
                  pl.BlockSpec((gb, L, dp), lambda g: (g, 0, 0)),
                  pl.BlockSpec(w1t.shape, lambda g: (0, 0)),
                  pl.BlockSpec(b1.shape, lambda g: (0, 0)),
                  pl.BlockSpec(wt.shape, lambda g: (0, 0)),
                  pl.BlockSpec(b.shape, lambda g: (0, 0))],
        out_specs=pl.BlockSpec((gb, H2), lambda g: (g, 0)),
        out_shape=jax.ShapeDtypeStruct((Bp, H2), jnp.float32),
        compiler_params=pltpu.CompilerParams(dimension_semantics=("parallel",)),
    )(u_fw, u_bw, w1t, b1, wt, b)
    return out[:B]


# ----------------------------------------------------------------------------
# Model forward (glue around the kernels)
# ----------------------------------------------------------------------------
def biblosan(x, P, r):
    B, n, dp = x.shape
    y = linear(x, P['fc_fwbw_t'], P['fc_fwbw_b'], relu=True)    # fused fc_fw | fc_bw
    input_fw = y[..., :dp]
    input_bw = y[..., dp:]
    u_fw = mblosa(input_fw, P['fw'], 'fw', r)                   # (B, NR, dp)
    u_bw = mblosa(input_bw, P['bw'], 'bw', r)
    u_bi = s2tsa_bi(u_fw, u_bw, P['s2t_W1_t'], P['s2t_W1_b'],
                    P['s2t_W_t'], P['s2t_W_b'], n_valid=n)
    return u_bi                                                 # (B, 2*dp)


def nn4snli_forward(premise, hypothesis, params, r, class_size):
    # Embedding gather is plain-JAX glue; dropout layers are identity in eval mode.
    b = premise.shape[0]
    if premise.shape == hypothesis.shape:
        tokens = jnp.concatenate([premise, hypothesis], axis=0)  # (2b, n)
        emb = params['emb'][tokens]                              # (2b, n, dp)
        u = biblosan(emb, params['bib'], r)                      # (2b, 2dp)
        p, h = u[:b], u[b:]
    else:
        p = biblosan(params['emb'][premise], params['bib'], r)
        h = biblosan(params['emb'][hypothesis], params['bib'], r)
    feat = jnp.concatenate([p, h, p * h, jnp.abs(p - h)], axis=1)  # (b, 8*dp)
    y = linear(feat, params['fc_t'], params['fc_b'], relu=True)    # (b, 384)
    y = linear(y, params['fc_softmax_t'], params['fc_softmax_b'])  # (b, 128)
    return y[:, :class_size]                                       # (b, class)


# ----------------------------------------------------------------------------
# Deterministic parameter construction (padded, pre-transposed, bf16 weights)
# ----------------------------------------------------------------------------
def make_params(key, vocab, d, class_size):
    dp = _rup(d, LANE)
    fh = 300
    fhp = _rup(fh, LANE)
    cp = _rup(class_size, LANE)
    keys = iter(jax.random.split(key, 32))

    def xav_t(in_dim, out_dim):
        # xavier_uniform for Linear(in_dim, out_dim), already in (in, out) layout
        limit = math.sqrt(6.0 / (in_dim + out_dim))
        return jax.random.uniform(next(keys), (in_dim, out_dim), jnp.float32,
                                  -limit, limit)

    def pad_tl(w, rows, cols):
        z = jnp.zeros((rows, cols), jnp.float32)
        return z.at[:w.shape[0], :w.shape[1]].set(w).astype(jnp.bfloat16)

    def scatter(w, rows, cols, row_idx, col_idx):
        z = jnp.zeros((rows, cols), jnp.float32)
        z = z.at[row_idx[:, None], col_idx[None, :]].set(w)
        return z.astype(jnp.bfloat16)

    def zeros_b(cols):
        return jnp.zeros((1, cols), jnp.float32)

    idx_d = jnp.arange(d)
    idx_2 = jnp.concatenate([idx_d, dp + idx_d])                     # real cols in 2dp
    idx_8 = jnp.concatenate([idx_2 + k * 2 * dp for k in range(4)])  # real cols in 8dp

    def mblosa_params():
        # NOTE: m_W1 / m_W2 / m_b / c of the reference mSA never affect the forward
        # output (masked softmax rows sum to 1), so they are not materialized.
        f1 = xav_t(3 * d, d)     # rows: [x | h | E]
        f2 = xav_t(3 * d, d)
        return {
            's2t_W1_t': pad_tl(xav_t(d, d), dp, dp), 's2t_W1_b': zeros_b(dp),
            's2t_W_t': pad_tl(xav_t(d, d), dp, dp),  's2t_W_b': zeros_b(dp),
            'g_W1_t': pad_tl(xav_t(d, d), dp, dp),
            'g_W2_t': pad_tl(xav_t(d, d), dp, dp),
            'g_b': zeros_b(dp),
            'f_W1xh_t': pad_tl(f1[:d] + f1[d:2 * d], dp, dp),   # folded x+h weight
            'f_W1h_t':  pad_tl(f1[d:2 * d], dp, dp),            # dropped-row correction
            'f_W1e_t':  pad_tl(f1[2 * d:], dp, dp),             # hoisted E weight
            'f_W1_b': zeros_b(dp),
            'f_W2xh_t': pad_tl(f2[:d] + f2[d:2 * d], dp, dp),
            'f_W2h_t':  pad_tl(f2[d:2 * d], dp, dp),
            'f_W2e_t':  pad_tl(f2[2 * d:], dp, dp),
            'f_W2_b': zeros_b(dp),
        }

    fc_fw = xav_t(d, d)
    fc_bw = xav_t(d, d)
    fcz = jnp.zeros((dp, 2 * dp), jnp.float32)
    fcz = fcz.at[:d, :d].set(fc_fw).at[:d, dp:dp + d].set(fc_bw)

    bib = {
        'fc_fwbw_t': fcz.astype(jnp.bfloat16),
        'fc_fwbw_b': zeros_b(2 * dp),
        'fw': mblosa_params(),
        'bw': mblosa_params(),
        's2t_W1_t': scatter(xav_t(2 * d, 2 * d), 2 * dp, 2 * dp, idx_2, idx_2),
        's2t_W1_b': zeros_b(2 * dp),
        's2t_W_t': scatter(xav_t(2 * d, 2 * d), 2 * dp, 2 * dp, idx_2, idx_2),
        's2t_W_b': zeros_b(2 * dp),
    }

    emb = jnp.zeros((vocab, dp), jnp.float32).at[:, :d].set(
        0.1 * jax.random.normal(next(keys), (vocab, d), jnp.float32))

    params = {
        'emb': emb,
        'bib': bib,
        'fc_t': scatter(xav_t(8 * d, fh), 8 * dp, fhp, idx_8, jnp.arange(fh)),
        'fc_b': zeros_b(fhp),
        'fc_softmax_t': pad_tl(xav_t(fh, class_size), fhp, cp),
        'fc_softmax_b': zeros_b(cp),
    }
    return params


# ----------------------------------------------------------------------------
if __name__ == "__main__":
    # small, module-consistent shapes
    batch = 2
    seq_len = 16         # premise / hypothesis length
    word_dim = 32        # args.word_dim (padded to 128 internally)
    block_size = 8       # args.block_size -> r; multiple of 8 keeps reshapes aligned
    class_size = 3       # args.class_size
    vocab = 50           # args.word_vocab_size

    key = jax.random.PRNGKey(0)
    k_p, k_h, k_params = jax.random.split(key, 3)
    premise = jax.random.randint(k_p, (batch, seq_len), 0, vocab)
    hypothesis = jax.random.randint(k_h, (batch, seq_len), 0, vocab)
    params = make_params(k_params, vocab, word_dim, class_size)

    fwd = jax.jit(partial(nn4snli_forward, r=block_size, class_size=class_size))
    logits = fwd(premise, hypothesis, params)
    jax.block_until_ready(logits)
    assert logits.shape == (batch, class_size)
    assert bool(jnp.all(jnp.isfinite(logits)))
    print("KERNEL_OK")
</pallas_src>

<mosaic_0001>
module attributes {stable_mosaic.version = 11 : i64} {
  func.func @_mblosa_kernel(%arg0: i32, %arg1: memref<2x16x128xf32, #tpu.memory_space<vmem>>, %arg2: memref<128x128xbf16, #tpu.memory_space<vmem>>, %arg3: memref<1x128xf32, #tpu.memory_space<vmem>>, %arg4: memref<128x128xbf16, #tpu.memory_space<vmem>>, %arg5: memref<1x128xf32, #tpu.memory_space<vmem>>, %arg6: memref<128x128xbf16, #tpu.memory_space<vmem>>, %arg7: memref<128x128xbf16, #tpu.memory_space<vmem>>, %arg8: memref<1x128xf32, #tpu.memory_space<vmem>>, %arg9: memref<128x128xbf16, #tpu.memory_space<vmem>>, %arg10: memref<128x128xbf16, #tpu.memory_space<vmem>>, %arg11: memref<128x128xbf16, #tpu.memory_space<vmem>>, %arg12: memref<1x128xf32, #tpu.memory_space<vmem>>, %arg13: memref<128x128xbf16, #tpu.memory_space<vmem>>, %arg14: memref<128x128xbf16, #tpu.memory_space<vmem>>, %arg15: memref<128x128xbf16, #tpu.memory_space<vmem>>, %arg16: memref<1x128xf32, #tpu.memory_space<vmem>>, %arg17: memref<2x16x128xf32, #tpu.memory_space<vmem>>) attributes {dimension_semantics = [#tpu.dimension_semantics<parallel>], iteration_bounds = array<i64: 2>, scalar_prefetch = 0 : i64, scratch_operands = 0 : i64, tpu.core_type = #tpu.core_type<tc>, window_params = [{transform_indices = @transform_0, window_bounds = array<i64: 2, 16, 128>}, {pipeline_mode = #tpu.pipeline_mode<synchronous>, transform_indices = @transform_1, window_bounds = array<i64: 128, 128>}, {pipeline_mode = #tpu.pipeline_mode<synchronous>, transform_indices = @transform_2, window_bounds = array<i64: 1, 128>}, {pipeline_mode = #tpu.pipeline_mode<synchronous>, transform_indices = @transform_3, window_bounds = array<i64: 128, 128>}, {pipeline_mode = #tpu.pipeline_mode<synchronous>, transform_indices = @transform_4, window_bounds = array<i64: 1, 128>}, {pipeline_mode = #tpu.pipeline_mode<synchronous>, transform_indices = @transform_5, window_bounds = array<i64: 128, 128>}, {pipeline_mode = #tpu.pipeline_mode<synchronous>, transform_indices = @transform_6, window_bounds = array<i64: 128, 128>}, {pipeline_mode = #tpu.pipeline_mode<synchronous>, transform_indices = @transform_7, window_bounds = array<i64: 1, 128>}, {pipeline_mode = #tpu.pipeline_mode<synchronous>, transform_indices = @transform_8, window_bounds = array<i64: 128, 128>}, {pipeline_mode = #tpu.pipeline_mode<synchronous>, transform_indices = @transform_9, window_bounds = array<i64: 128, 128>}, {pipeline_mode = #tpu.pipeline_mode<synchronous>, transform_indices = @transform_10, window_bounds = array<i64: 128, 128>}, {pipeline_mode = #tpu.pipeline_mode<synchronous>, transform_indices = @transform_11, window_bounds = array<i64: 1, 128>}, {pipeline_mode = #tpu.pipeline_mode<synchronous>, transform_indices = @transform_12, window_bounds = array<i64: 128, 128>}, {pipeline_mode = #tpu.pipeline_mode<synchronous>, transform_indices = @transform_13, window_bounds = array<i64: 128, 128>}, {pipeline_mode = #tpu.pipeline_mode<synchronous>, transform_indices = @transform_14, window_bounds = array<i64: 128, 128>}, {pipeline_mode = #tpu.pipeline_mode<synchronous>, transform_indices = @transform_15, window_bounds = array<i64: 1, 128>}, {transform_indices = @transform_16, window_bounds = array<i64: 2, 16, 128>}]} {
    %c0 = arith.constant 0 : index
    %c0_0 = arith.constant 0 : index
    %c0_1 = arith.constant 0 : index
    %0 = vector.load %arg1[%c0, %c0_0, %c0_1] : memref<2x16x128xf32, #tpu.memory_space<vmem>>, vector<2x16x128xf32>
    %1 = vector.shape_cast %0 : vector<2x16x128xf32> to vector<2x2x8x128xf32>
    %2 = vector.shape_cast %0 : vector<2x16x128xf32> to vector<32x128xf32>
    %3 = tpu.iota {dimensions = array<i32: 2>} : vector<2x2x8x128xi32>
    %c0_i32 = arith.constant 0 : i32
    %4 = vector.broadcast %c0_i32 : i32 to vector<2x2x8x128xi32>
    %5 = arith.cmpi eq, %3, %4 : vector<2x2x8x128xi32>
    %cst = arith.constant 0.000000e+00 : f32
    %6 = vector.broadcast %cst : f32 to vector<2x2x8x128xf32>
    %7 = arith.select %5, %6, %1 : vector<2x2x8x128xi1>, vector<2x2x8x128xf32>
    %8 = vector.shape_cast %7 : vector<2x2x8x128xf32> to vector<32x128xf32>
    %9 = arith.truncf %2 : vector<32x128xf32> to vector<32x128xbf16>
    %10 = arith.truncf %8 : vector<32x128xf32> to vector<32x128xbf16>
    %c0_2 = arith.constant 0 : index
    %c0_3 = arith.constant 0 : index
    %11 = vector.load %arg2[%c0_2, %c0_3] : memref<128x128xbf16, #tpu.memory_space<vmem>>, vector<128x128xbf16>
    %cst_4 = arith.constant dense<0.000000e+00> : vector<32x128xf32>
    %12 = tpu.matmul %10, %11, %cst_4 {dimension_numbers = #tpu.dot_dimension_numbers<[1], [0], [0], [1], [0, 0, 1, 1], [], []>} : vector<32x128xbf16>, vector<128x128xbf16>, vector<32x128xf32> -> vector<32x128xf32>
    %c0_5 = arith.constant 0 : index
    %c0_6 = arith.constant 0 : index
    %13 = vector.load %arg3[%c0_5, %c0_6] : memref<1x128xf32, #tpu.memory_space<vmem>>, vector<1x128xf32>
    %14 = vector.broadcast %13 : vector<1x128xf32> to vector<32x128xf32>
    %15 = arith.addf %12, %14 : vector<32x128xf32>
    %cst_7 = arith.constant 0.000000e+00 : f32
    %16 = vector.broadcast %cst_7 : f32 to vector<32x128xf32>
    %17 = arith.maximumf %15, %16 : vector<32x128xf32>
    %18 = arith.truncf %17 : vector<32x128xf32> to vector<32x128xbf16>
    %c0_8 = arith.constant 0 : index
    %c0_9 = arith.constant 0 : index
    %19 = vector.load %arg4[%c0_8, %c0_9] : memref<128x128xbf16, #tpu.memory_space<vmem>>, vector<128x128xbf16>
    %cst_10 = arith.constant dense<0.000000e+00> : vector<32x128xf32>
    %20 = tpu.matmul %18, %19, %cst_10 {dimension_numbers = #tpu.dot_dimension_numbers<[1], [0], [0], [1], [0, 0, 1, 1], [], []>} : vector<32x128xbf16>, vector<128x128xbf16>, vector<32x128xf32> -> vector<32x128xf32>
    %c0_11 = arith.constant 0 : index
    %c0_12 = arith.constant 0 : index
    %21 = vector.load %arg5[%c0_11, %c0_12] : memref<1x128xf32, #tpu.memory_space<vmem>>, vector<1x128xf32>
    %22 = vector.broadcast %21 : vector<1x128xf32> to vector<32x128xf32>
    %23 = arith.addf %20, %22 : vector<32x128xf32>
    %24 = vector.shape_cast %23 : vector<32x128xf32> to vector<2x2x8x128xf32>
    %cst_13 = arith.constant dense<0xFF800000> : vector<2x2x128xf32>
    %25 = vector.multi_reduction <maximumf>, %24, %cst_13 [2] : vector<2x2x8x128xf32> to vector<2x2x128xf32>
    %26 = vector.shape_cast %25 : vector<2x2x128xf32> to vector<2x2x1x128xf32>
    %27 = vector.broadcast %26 : vector<2x2x1x128xf32> to vector<2x2x8x128xf32>
    %28 = arith.subf %24, %27 : vector<2x2x8x128xf32>
    %29 = math.exp %28 : vector<2x2x8x128xf32>
    %cst_14 = arith.constant dense<0.000000e+00> : vector<2x2x128xf32>
    %30 = vector.multi_reduction <add>, %29, %cst_14 [2] : vector<2x2x8x128xf32> to vector<2x2x128xf32>
    %31 = vector.shape_cast %30 : vector<2x2x128xf32> to vector<2x2x1x128xf32>
    %32 = tpu.reciprocal %31 {approx = true} : vector<2x2x1x128xf32> -> vector<2x2x1x128xf32>
    %33 = vector.broadcast %32 : vector<2x2x1x128xf32> to vector<2x2x8x128xf32>
    %34 = arith.mulf %29, %33 : vector<2x2x8x128xf32>
    %35 = arith.mulf %34, %7 : vector<2x2x8x128xf32>
    %cst_15 = arith.constant dense<0.000000e+00> : vector<2x2x128xf32>
    %36 = vector.multi_reduction <add>, %35, %cst_15 [2] : vector<2x2x8x128xf32> to vector<2x2x128xf32>
    %37 = tpu.iota {dimensions = array<i32: 1>} : vector<2x2x128xi32>
    %c0_i32_16 = arith.constant 0 : i32
    %38 = vector.broadcast %c0_i32_16 : i32 to vector<2x2x128xi32>
    %39 = arith.cmpi eq, %37, %38 : vector<2x2x128xi32>
    %cst_17 = arith.constant 0.000000e+00 : f32
    %40 = vector.broadcast %cst_17 : f32 to vector<2x2x128xf32>
    %41 = arith.select %39, %40, %36 : vector<2x2x128xi1>, vector<2x2x128xf32>
    %42 = vector.shape_cast %41 : vector<2x2x128xf32> to vector<4x128xf32>
    %43 = vector.shape_cast %36 : vector<2x2x128xf32> to vector<4x128xf32>
    %44 = arith.truncf %42 : vector<4x128xf32> to vector<4x128xbf16>
    %c0_18 = arith.constant 0 : index
    %c0_19 = arith.constant 0 : index
    %45 = vector.load %arg6[%c0_18, %c0_19] : memref<128x128xbf16, #tpu.memory_space<vmem>>, vector<128x128xbf16>
    %cst_20 = arith.constant dense<0.000000e+00> : vector<4x128xf32>
    %46 = tpu.matmul %44, %45, %cst_20 {dimension_numbers = #tpu.dot_dimension_numbers<[1], [0], [0], [1], [0, 0, 1, 1], [], []>} : vector<4x128xbf16>, vector<128x128xbf16>, vector<4x128xf32> -> vector<4x128xf32>
    %47 = arith.truncf %43 : vector<4x128xf32> to vector<4x128xbf16>
    %c0_21 = arith.constant 0 : index
    %c0_22 = arith.constant 0 : index
    %48 = vector.load %arg7[%c0_21, %c0_22] : memref<128x128xbf16, #tpu.memory_space<vmem>>, vector<128x128xbf16>
    %cst_23 = arith.constant dense<0.000000e+00> : vector<4x128xf32>
    %49 = tpu.matmul %47, %48, %cst_23 {dimension_numbers = #tpu.dot_dimension_numbers<[1], [0], [0], [1], [0, 0, 1, 1], [], []>} : vector<4x128xbf16>, vector<128x128xbf16>, vector<4x128xf32> -> vector<4x128xf32>
    %50 = arith.addf %46, %49 : vector<4x128xf32>
    %c0_24 = arith.constant 0 : index
    %c0_25 = arith.constant 0 : index
    %51 = vector.load %arg8[%c0_24, %c0_25] : memref<1x128xf32, #tpu.memory_space<vmem>>, vector<1x128xf32>
    %52 = vector.broadcast %51 : vector<1x128xf32> to vector<4x128xf32>
    %53 = arith.addf %50, %52 : vector<4x128xf32>
    %cst_26 = arith.constant 5.000000e-01 : f32
    %54 = vector.broadcast %cst_26 : f32 to vector<4x128xf32>
    %55 = arith.mulf %54, %53 : vector<4x128xf32>
    %56 = math.tanh %55 : vector<4x128xf32>
    %cst_27 = arith.constant 1.000000e+00 : f32
    %57 = vector.broadcast %cst_27 : f32 to vector<4x128xf32>
    %58 = arith.addf %57, %56 : vector<4x128xf32>
    %cst_28 = arith.constant 5.000000e-01 : f32
    %59 = vector.broadcast %cst_28 : f32 to vector<4x128xf32>
    %60 = arith.mulf %59, %58 : vector<4x128xf32>
    %61 = arith.mulf %60, %42 : vector<4x128xf32>
    %cst_29 = arith.constant 1.000000e+00 : f32
    %62 = vector.broadcast %cst_29 : f32 to vector<4x128xf32>
    %63 = arith.subf %62, %60 : vector<4x128xf32>
    %64 = arith.mulf %63, %43 : vector<4x128xf32>
    %65 = arith.addf %61, %64 : vector<4x128xf32>
    %66 = arith.truncf %65 : vector<4x128xf32> to vector<4x128xbf16>
    %67 = vector.extract_strided_slice %1 {offsets = [0, 0, 0, 0], sizes = [2, 2, 1, 128], strides = [1, 1, 1, 1]} : vector<2x2x8x128xf32> to vector<2x2x1x128xf32>
    %68 = vector.shape_cast %67 : vector<2x2x1x128xf32> to vector<2x2x128xf32>
    %69 = vector.shape_cast %68 : vector<2x2x128xf32> to vector<4x128xf32>
    %70 = arith.truncf %69 : vector<4x128xf32> to vector<4x128xbf16>
    %c0_30 = arith.constant 0 : index
    %c0_31 = arith.constant 0 : index
    %71 = vector.load %arg9[%c0_30, %c0_31] : memref<128x128xbf16, #tpu.memory_space<vmem>>, vector<128x128xbf16>
    %cst_32 = arith.constant dense<0.000000e+00> : vector<32x128xf32>
    %72 = tpu.matmul %9, %71, %cst_32 {dimension_numbers = #tpu.dot_dimension_numbers<[1], [0], [0], [1], [0, 0, 1, 1], [], []>} : vector<32x128xbf16>, vector<128x128xbf16>, vector<32x128xf32> -> vector<32x128xf32>
    %c0_33 = arith.constant 0 : index
    %c0_34 = arith.constant 0 : index
    %73 = vector.load %arg13[%c0_33, %c0_34] : memref<128x128xbf16, #tpu.memory_space<vmem>>, vector<128x128xbf16>
    %cst_35 = arith.constant dense<0.000000e+00> : vector<32x128xf32>
    %74 = tpu.matmul %9, %73, %cst_35 {dimension_numbers = #tpu.dot_dimension_numbers<[1], [0], [0], [1], [0, 0, 1, 1], [], []>} : vector<32x128xbf16>, vector<128x128xbf16>, vector<32x128xf32> -> vector<32x128xf32>
    %c0_36 = arith.constant 0 : index
    %c0_37 = arith.constant 0 : index
    %75 = vector.load %arg10[%c0_36, %c0_37] : memref<128x128xbf16, #tpu.memory_space<vmem>>, vector<128x128xbf16>
    %cst_38 = arith.constant dense<0.000000e+00> : vector<4x128xf32>
    %76 = tpu.matmul %70, %75, %cst_38 {dimension_numbers = #tpu.dot_dimension_numbers<[1], [0], [0], [1], [0, 0, 1, 1], [], []>} : vector<4x128xbf16>, vector<128x128xbf16>, vector<4x128xf32> -> vector<4x128xf32>
    %c0_39 = arith.constant 0 : index
    %c0_40 = arith.constant 0 : index
    %77 = vector.load %arg14[%c0_39, %c0_40] : memref<128x128xbf16, #tpu.memory_space<vmem>>, vector<128x128xbf16>
    %cst_41 = arith.constant dense<0.000000e+00> : vector<4x128xf32>
    %78 = tpu.matmul %70, %77, %cst_41 {dimension_numbers = #tpu.dot_dimension_numbers<[1], [0], [0], [1], [0, 0, 1, 1], [], []>} : vector<4x128xbf16>, vector<128x128xbf16>, vector<4x128xf32> -> vector<4x128xf32>
    %c0_42 = arith.constant 0 : index
    %c0_43 = arith.constant 0 : index
    %79 = vector.load %arg11[%c0_42, %c0_43] : memref<128x128xbf16, #tpu.memory_space<vmem>>, vector<128x128xbf16>
    %cst_44 = arith.constant dense<0.000000e+00> : vector<4x128xf32>
    %80 = tpu.matmul %66, %79, %cst_44 {dimension_numbers = #tpu.dot_dimension_numbers<[1], [0], [0], [1], [0, 0, 1, 1], [], []>} : vector<4x128xbf16>, vector<128x128xbf16>, vector<4x128xf32> -> vector<4x128xf32>
    %c0_45 = arith.constant 0 : index
    %c0_46 = arith.constant 0 : index
    %81 = vector.load %arg15[%c0_45, %c0_46] : memref<128x128xbf16, #tpu.memory_space<vmem>>, vector<128x128xbf16>
    %cst_47 = arith.constant dense<0.000000e+00> : vector<4x128xf32>
    %82 = tpu.matmul %66, %81, %cst_47 {dimension_numbers = #tpu.dot_dimension_numbers<[1], [0], [0], [1], [0, 0, 1, 1], [], []>} : vector<4x128xbf16>, vector<128x128xbf16>, vector<4x128xf32> -> vector<4x128xf32>
    %83 = vector.shape_cast %72 : vector<32x128xf32> to vector<2x2x8x128xf32>
    %84 = vector.shape_cast %74 : vector<32x128xf32> to vector<2x2x8x128xf32>
    %85 = vector.shape_cast %76 : vector<4x128xf32> to vector<2x2x1x128xf32>
    %cst_48 = arith.constant 0.000000e+00 : f32
    %86 = vector.shape_cast %85 : vector<2x2x1x128xf32> to vector<2x2x1x128xf32>
    %87 = vector.broadcast %86 : vector<2x2x1x128xf32> to vector<2x2x8x128xf32>
    %88 = vector.broadcast %cst_48 : f32 to vector<2x2x8x128xf32>
    %89 = arith.select %5, %87, %88 : vector<2x2x8x128xi1>, vector<2x2x8x128xf32>
    %90 = arith.subf %83, %89 : vector<2x2x8x128xf32>
    %91 = vector.shape_cast %80 : vector<4x128xf32> to vector<2x2x1x128xf32>
    %92 = vector.broadcast %91 : vector<2x2x1x128xf32> to vector<2x2x8x128xf32>
    %93 = arith.addf %90, %92 : vector<2x2x8x128xf32>
    %c0_49 = arith.constant 0 : index
    %c0_50 = arith.constant 0 : index
    %94 = vector.load %arg12[%c0_49, %c0_50] : memref<1x128xf32, #tpu.memory_space<vmem>>, vector<1x128xf32>
    %95 = vector.shape_cast %94 : vector<1x128xf32> to vector<1x1x1x128xf32>
    %96 = vector.broadcast %95 : vector<1x1x1x128xf32> to vector<2x2x8x128xf32>
    %97 = arith.addf %93, %96 : vector<2x2x8x128xf32>
    %98 = vector.shape_cast %78 : vector<4x128xf32> to vector<2x2x1x128xf32>
    %cst_51 = arith.constant 0.000000e+00 : f32
    %99 = vector.shape_cast %98 : vector<2x2x1x128xf32> to vector<2x2x1x128xf32>
    %100 = vector.broadcast %99 : vector<2x2x1x128xf32> to vector<2x2x8x128xf32>
    %101 = vector.broadcast %cst_51 : f32 to vector<2x2x8x128xf32>
    %102 = arith.select %5, %100, %101 : vector<2x2x8x128xi1>, vector<2x2x8x128xf32>
    %103 = arith.subf %84, %102 : vector<2x2x8x128xf32>
    %104 = vector.shape_cast %82 : vector<4x128xf32> to vector<2x2x1x128xf32>
    %105 = vector.broadcast %104 : vector<2x2x1x128xf32> to vector<2x2x8x128xf32>
    %106 = arith.addf %103, %105 : vector<2x2x8x128xf32>
    %c0_52 = arith.constant 0 : index
    %c0_53 = arith.constant 0 : index
    %107 = vector.load %arg16[%c0_52, %c0_53] : memref<1x128xf32, #tpu.memory_space<vmem>>, vector<1x128xf32>
    %108 = vector.shape_cast %107 : vector<1x128xf32> to vector<1x1x1x128xf32>
    %109 = vector.broadcast %108 : vector<1x1x1x128xf32> to vector<2x2x8x128xf32>
    %110 = arith.addf %106, %109 : vector<2x2x8x128xf32>
    %cst_54 = arith.constant 0.000000e+00 : f32
    %111 = vector.broadcast %cst_54 : f32 to vector<2x2x8x128xf32>
    %112 = arith.maximumf %97, %111 : vector<2x2x8x128xf32>
    %cst_55 = arith.constant 5.000000e-01 : f32
    %113 = vector.broadcast %cst_55 : f32 to vector<2x2x8x128xf32>
    %114 = arith.mulf %113, %110 : vector<2x2x8x128xf32>
    %115 = math.tanh %114 : vector<2x2x8x128xf32>
    %cst_56 = arith.constant 1.000000e+00 : f32
    %116 = vector.broadcast %cst_56 : f32 to vector<2x2x8x128xf32>
    %117 = arith.addf %116, %115 : vector<2x2x8x128xf32>
    %cst_57 = arith.constant 5.000000e-01 : f32
    %118 = vector.broadcast %cst_57 : f32 to vector<2x2x8x128xf32>
    %119 = arith.mulf %118, %117 : vector<2x2x8x128xf32>
    %120 = arith.mulf %119, %112 : vector<2x2x8x128xf32>
    %cst_58 = arith.constant 1.000000e+00 : f32
    %121 = vector.broadcast %cst_58 : f32 to vector<2x2x8x128xf32>
    %122 = arith.subf %121, %119 : vector<2x2x8x128xf32>
    %123 = arith.mulf %122, %1 : vector<2x2x8x128xf32>
    %124 = arith.addf %120, %123 : vector<2x2x8x128xf32>
    %125 = vector.shape_cast %124 : vector<2x2x8x128xf32> to vector<2x16x128xf32>
    %c0_59 = arith.constant 0 : index
    %c0_60 = arith.constant 0 : index
    %c0_61 = arith.constant 0 : index
    %126 = vector.load %arg17[%c0_59, %c0_60, %c0_61] : memref<2x16x128xf32, #tpu.memory_space<vmem>>, vector<2x16x128xf32>
    tpu.vector_store %arg17[%c0_59, %c0_60, %c0_61], %125 {strides = array<i32>} : memref<2x16x128xf32, #tpu.memory_space<vmem>>, vector<2x16x128xf32>,
    return
  }
  func.func @transform_0(%arg0: i32) -> (i32, i32, i32) {
    %c0_i32 = arith.constant 0 : i32
    %c0_i32_0 = arith.constant 0 : i32
    %c0_i32_1 = arith.constant 0 : i32
    return %arg0, %c0_i32, %c0_i32_0 : i32, i32, i32
  }
  func.func @transform_1(%arg0: i32) -> (i32, i32) {
    %c0_i32 = arith.constant 0 : i32
    %c0_i32_0 = arith.constant 0 : i32
    %c0_i32_1 = arith.constant 0 : i32
    return %c0_i32, %c0_i32_0 : i32, i32
  }
  func.func @transform_2(%arg0: i32) -> (i32, i32) {
    %c0_i32 = arith.constant 0 : i32
    %c0_i32_0 = arith.constant 0 : i32
    %c0_i32_1 = arith.constant 0 : i32
    return %c0_i32, %c0_i32_0 : i32, i32
  }
  func.func @transform_3(%arg0: i32) -> (i32, i32) {
    %c0_i32 = arith.constant 0 : i32
    %c0_i32_0 = arith.constant 0 : i32
    %c0_i32_1 = arith.constant 0 : i32
    return %c0_i32, %c0_i32_0 : i32, i32
  }
  func.func @transform_4(%arg0: i32) -> (i32, i32) {
    %c0_i32 = arith.constant 0 : i32
    %c0_i32_0 = arith.constant 0 : i32
    %c0_i32_1 = arith.constant 0 : i32
    return %c0_i32, %c0_i32_0 : i32, i32
  }
  func.func @transform_5(%arg0: i32) -> (i32, i32) {
    %c0_i32 = arith.constant 0 : i32
    %c0_i32_0 = arith.constant 0 : i32
    %c0_i32_1 = arith.constant 0 : i32
    return %c0_i32, %c0_i32_0 : i32, i32
  }
  func.func @transform_6(%arg0: i32) -> (i32, i32) {
    %c0_i32 = arith.constant 0 : i32
    %c0_i32_0 = arith.constant 0 : i32
    %c0_i32_1 = arith.constant 0 : i32
    return %c0_i32, %c0_i32_0 : i32, i32
  }
  func.func @transform_7(%arg0: i32) -> (i32, i32) {
    %c0_i32 = arith.constant 0 : i32
    %c0_i32_0 = arith.constant 0 : i32
    %c0_i32_1 = arith.constant 0 : i32
    return %c0_i32, %c0_i32_0 : i32, i32
  }
  func.func @transform_8(%arg0: i32) -> (i32, i32) {
    %c0_i32 = arith.constant 0 : i32
    %c0_i32_0 = arith.constant 0 : i32
    %c0_i32_1 = arith.constant 0 : i32
    return %c0_i32, %c0_i32_0 : i32, i32
  }
  func.func @transform_9(%arg0: i32) -> (i32, i32) {
    %c0_i32 = arith.constant 0 : i32
    %c0_i32_0 = arith.constant 0 : i32
    %c0_i32_1 = arith.constant 0 : i32
    return %c0_i32, %c0_i32_0 : i32, i32
  }
  func.func @transform_10(%arg0: i32) -> (i32, i32) {
    %c0_i32 = arith.constant 0 : i32
    %c0_i32_0 = arith.constant 0 : i32
    %c0_i32_1 = arith.constant 0 : i32
    return %c0_i32, %c0_i32_0 : i32, i32
  }
  func.func @transform_11(%arg0: i32) -> (i32, i32) {
    %c0_i32 = arith.constant 0 : i32
    %c0_i32_0 = arith.constant 0 : i32
    %c0_i32_1 = arith.constant 0 : i32
    return %c0_i32, %c0_i32_0 : i32, i32
  }
  func.func @transform_12(%arg0: i32) -> (i32, i32) {
    %c0_i32 = arith.constant 0 : i32
    %c0_i32_0 = arith.constant 0 : i32
    %c0_i32_1 = arith.constant 0 : i32
    return %c0_i32, %c0_i32_0 : i32, i32
  }
  func.func @transform_13(%arg0: i32) -> (i32, i32) {
    %c0_i32 = arith.constant 0 : i32
    %c0_i32_0 = arith.constant 0 : i32
    %c0_i32_1 = arith.constant 0 : i32
    return %c0_i32, %c0_i32_0 : i32, i32
  }
  func.func @transform_14(%arg0: i32) -> (i32, i32) {
    %c0_i32 = arith.constant 0 : i32
    %c0_i32_0 = arith.constant 0 : i32
    %c0_i32_1 = arith.constant 0 : i32
    return %c0_i32, %c0_i32_0 : i32, i32
  }
  func.func @transform_15(%arg0: i32) -> (i32, i32) {
    %c0_i32 = arith.constant 0 : i32
    %c0_i32_0 = arith.constant 0 : i32
    %c0_i32_1 = arith.constant 0 : i32
    return %c0_i32, %c0_i32_0 : i32, i32
  }
  func.func @transform_16(%arg0: i32) -> (i32, i32, i32) {
    %c0_i32 = arith.constant 0 : i32
    %c0_i32_0 = arith.constant 0 : i32
    %c0_i32_1 = arith.constant 0 : i32
    return %arg0, %c0_i32, %c0_i32_0 : i32, i32, i32
  }
}

module attributes {stable_mosaic.version = 11 : i64} {
  func.func @_linear_kernel(%arg0: i32, %arg1: memref<64x128xf32, #tpu.memory_space<vmem>>, %arg2: memref<128x256xbf16, #tpu.memory_space<vmem>>, %arg3: memref<1x256xf32, #tpu.memory_space<vmem>>, %arg4: memref<64x256xf32, #tpu.memory_space<vmem>>) attributes {dimension_semantics = [#tpu.dimension_semantics<parallel>], iteration_bounds = array<i64: 1>, scalar_prefetch = 0 : i64, scratch_operands = 0 : i64, tpu.core_type = #tpu.core_type<tc>, window_params = [{transform_indices = @transform_0, window_bounds = array<i64: 64, 128>}, {pipeline_mode = #tpu.pipeline_mode<synchronous>, transform_indices = @transform_1, window_bounds = array<i64: 128, 256>}, {pipeline_mode = #tpu.pipeline_mode<synchronous>, transform_indices = @transform_2, window_bounds = array<i64: 1, 256>}, {transform_indices = @transform_3, window_bounds = array<i64: 64, 256>}]} {
    %c0 = arith.constant 0 : index
    %c0_0 = arith.constant 0 : index
    %0 = vector.load %arg1[%c0, %c0_0] : memref<64x128xf32, #tpu.memory_space<vmem>>, vector<64x128xf32>
    %1 = arith.truncf %0 : vector<64x128xf32> to vector<64x128xbf16>
    %c0_1 = arith.constant 0 : index
    %c0_2 = arith.constant 0 : index
    %2 = vector.load %arg2[%c0_1, %c0_2] : memref<128x256xbf16, #tpu.memory_space<vmem>>, vector<128x256xbf16>
    %cst = arith.constant dense<0.000000e+00> : vector<64x256xf32>
    %3 = tpu.matmul %1, %2, %cst {dimension_numbers = #tpu.dot_dimension_numbers<[1], [0], [0], [1], [0, 0, 1, 1], [], []>} : vector<64x128xbf16>, vector<128x256xbf16>, vector<64x256xf32> -> vector<64x256xf32>
    %c0_3 = arith.constant 0 : index
    %c0_4 = arith.constant 0 : index
    %4 = vector.load %arg3[%c0_3, %c0_4] : memref<1x256xf32, #tpu.memory_space<vmem>>, vector<1x256xf32>
    %5 = vector.broadcast %4 : vector<1x256xf32> to vector<64x256xf32>
    %6 = arith.addf %3, %5 : vector<64x256xf32>
    %cst_5 = arith.constant 0.000000e+00 : f32
    %7 = vector.broadcast %cst_5 : f32 to vector<64x256xf32>
    %8 = arith.maximumf %6, %7 : vector<64x256xf32>
    %c0_6 = arith.constant 0 : index
    %c0_7 = arith.constant 0 : index
    %9 = vector.load %arg4[%c0_6, %c0_7] : memref<64x256xf32, #tpu.memory_space<vmem>>, vector<64x256xf32>
    tpu.vector_store %arg4[%c0_6, %c0_7], %8 {strides = array<i32>} : memref<64x256xf32, #tpu.memory_space<vmem>>, vector<64x256xf32>,
    return
  }
  func.func @transform_0(%arg0: i32) -> (i32, i32) {
    %c0_i32 = arith.constant 0 : i32
    %c0_i32_0 = arith.constant 0 : i32
    return %arg0, %c0_i32 : i32, i32
  }
  func.func @transform_1(%arg0: i32) -> (i32, i32) {
    %c0_i32 = arith.constant 0 : i32
    %c0_i32_0 = arith.constant 0 : i32
    %c0_i32_1 = arith.constant 0 : i32
    return %c0_i32, %c0_i32_0 : i32, i32
  }
  func.func @transform_2(%arg0: i32) -> (i32, i32) {
    %c0_i32 = arith.constant 0 : i32
    %c0_i32_0 = arith.constant 0 : i32
    %c0_i32_1 = arith.constant 0 : i32
    return %c0_i32, %c0_i32_0 : i32, i32
  }
  func.func @transform_3(%arg0: i32) -> (i32, i32) {
    %c0_i32 = arith.constant 0 : i32
    %c0_i32_0 = arith.constant 0 : i32
    return %arg0, %c0_i32 : i32, i32
  }
}

module attributes {stable_mosaic.version = 11 : i64} {
  func.func @_s2t_bi_kernel(%arg0: i32, %arg1: memref<8x16x128xf32, #tpu.memory_space<vmem>>, %arg2: memref<8x16x128xf32, #tpu.memory_space<vmem>>, %arg3: memref<256x256xbf16, #tpu.memory_space<vmem>>, %arg4: memref<1x256xf32, #tpu.memory_space<vmem>>, %arg5: memref<256x256xbf16, #tpu.memory_space<vmem>>, %arg6: memref<1x256xf32, #tpu.memory_space<vmem>>, %arg7: memref<8x256xf32, #tpu.memory_space<vmem>>) attributes {dimension_semantics = [#tpu.dimension_semantics<parallel>], iteration_bounds = array<i64: 1>, scalar_prefetch = 0 : i64, scratch_operands = 0 : i64, tpu.core_type = #tpu.core_type<tc>, window_params = [{transform_indices = @transform_0, window_bounds = array<i64: 8, 16, 128>}, {transform_indices = @transform_1, window_bounds = array<i64: 8, 16, 128>}, {pipeline_mode = #tpu.pipeline_mode<synchronous>, transform_indices = @transform_2, window_bounds = array<i64: 256, 256>}, {pipeline_mode = #tpu.pipeline_mode<synchronous>, transform_indices = @transform_3, window_bounds = array<i64: 1, 256>}, {pipeline_mode = #tpu.pipeline_mode<synchronous>, transform_indices = @transform_4, window_bounds = array<i64: 256, 256>}, {pipeline_mode = #tpu.pipeline_mode<synchronous>, transform_indices = @transform_5, window_bounds = array<i64: 1, 256>}, {transform_indices = @transform_6, window_bounds = array<i64: 8, 256>}]} {
    %c0 = arith.constant 0 : index
    %c0_0 = arith.constant 0 : index
    %c0_1 = arith.constant 0 : index
    %0 = vector.load %arg1[%c0, %c0_0, %c0_1] : memref<8x16x128xf32, #tpu.memory_space<vmem>>, vector<8x16x128xf32>
    %c0_2 = arith.constant 0 : index
    %c0_3 = arith.constant 0 : index
    %c0_4 = arith.constant 0 : index
    %1 = vector.load %arg2[%c0_2, %c0_3, %c0_4] : memref<8x16x128xf32, #tpu.memory_space<vmem>>, vector<8x16x128xf32>
    %2 = tpu.concatenate %0, %1 in 2 : vector<8x16x128xf32>, vector<8x16x128xf32> -> vector<8x16x256xf32>
    %3 = tpu.iota {dimensions = array<i32: 1>} : vector<8x16x256xi32>
    %c16_i32 = arith.constant 16 : i32
    %4 = vector.broadcast %c16_i32 : i32 to vector<8x16x256xi32>
    %5 = arith.cmpi slt, %3, %4 : vector<8x16x256xi32>
    %cst = arith.constant 0.000000e+00 : f32
    %6 = vector.broadcast %cst : f32 to vector<8x16x256xf32>
    %7 = arith.select %5, %2, %6 : vector<8x16x256xi1>, vector<8x16x256xf32>
    %8 = vector.shape_cast %7 : vector<8x16x256xf32> to vector<128x256xf32>
    %9 = arith.truncf %8 : vector<128x256xf32> to vector<128x256xbf16>
    %c0_5 = arith.constant 0 : index
    %c0_6 = arith.constant 0 : index
    %10 = vector.load %arg3[%c0_5, %c0_6] : memref<256x256xbf16, #tpu.memory_space<vmem>>, vector<256x256xbf16>
    %cst_7 = arith.constant dense<0.000000e+00> : vector<128x256xf32>
    %11 = tpu.matmul %9, %10, %cst_7 {dimension_numbers = #tpu.dot_dimension_numbers<[1], [0], [0], [1], [0, 0, 1, 1], [], []>} : vector<128x256xbf16>, vector<256x256xbf16>, vector<128x256xf32> -> vector<128x256xf32>
    %c0_8 = arith.constant 0 : index
    %c0_9 = arith.constant 0 : index
    %12 = vector.load %arg4[%c0_8, %c0_9] : memref<1x256xf32, #tpu.memory_space<vmem>>, vector<1x256xf32>
    %13 = vector.broadcast %12 : vector<1x256xf32> to vector<128x256xf32>
    %14 = arith.addf %11, %13 : vector<128x256xf32>
    %cst_10 = arith.constant 0.000000e+00 : f32
    %15 = vector.broadcast %cst_10 : f32 to vector<128x256xf32>
    %16 = arith.maximumf %14, %15 : vector<128x256xf32>
    %17 = arith.truncf %16 : vector<128x256xf32> to vector<128x256xbf16>
    %c0_11 = arith.constant 0 : index
    %c0_12 = arith.constant 0 : index
    %18 = vector.load %arg5[%c0_11, %c0_12] : memref<256x256xbf16, #tpu.memory_space<vmem>>, vector<256x256xbf16>
    %cst_13 = arith.constant dense<0.000000e+00> : vector<128x256xf32>
    %19 = tpu.matmul %17, %18, %cst_13 {dimension_numbers = #tpu.dot_dimension_numbers<[1], [0], [0], [1], [0, 0, 1, 1], [], []>} : vector<128x256xbf16>, vector<256x256xbf16>, vector<128x256xf32> -> vector<128x256xf32>
    %c0_14 = arith.constant 0 : index
    %c0_15 = arith.constant 0 : index
    %20 = vector.load %arg6[%c0_14, %c0_15] : memref<1x256xf32, #tpu.memory_space<vmem>>, vector<1x256xf32>
    %21 = vector.broadcast %20 : vector<1x256xf32> to vector<128x256xf32>
    %22 = arith.addf %19, %21 : vector<128x256xf32>
    %23 = vector.shape_cast %22 : vector<128x256xf32> to vector<8x16x256xf32>
    %cst_16 = arith.constant 0xFF800000 : f32
    %24 = vector.broadcast %cst_16 : f32 to vector<8x16x256xf32>
    %25 = arith.select %5, %23, %24 : vector<8x16x256xi1>, vector<8x16x256xf32>
    %cst_17 = arith.constant dense<0xFF800000> : vector<8x256xf32>
    %26 = vector.multi_reduction <maximumf>, %25, %cst_17 [1] : vector<8x16x256xf32> to vector<8x256xf32>
    %27 = vector.shape_cast %26 : vector<8x256xf32> to vector<8x1x256xf32>
    %28 = vector.broadcast %27 : vector<8x1x256xf32> to vector<8x16x256xf32>
    %29 = arith.subf %25, %28 : vector<8x16x256xf32>
    %30 = math.exp %29 : vector<8x16x256xf32>
    %cst_18 = arith.constant dense<0.000000e+00> : vector<8x256xf32>
    %31 = vector.multi_reduction <add>, %30, %cst_18 [1] : vector<8x16x256xf32> to vector<8x256xf32>
    %32 = vector.shape_cast %31 : vector<8x256xf32> to vector<8x1x256xf32>
    %33 = tpu.reciprocal %32 {approx = true} : vector<8x1x256xf32> -> vector<8x1x256xf32>
    %34 = vector.broadcast %33 : vector<8x1x256xf32> to vector<8x16x256xf32>
    %35 = arith.mulf %30, %34 : vector<8x16x256xf32>
    %36 = arith.mulf %35, %7 : vector<8x16x256xf32>
    %cst_19 = arith.constant dense<0.000000e+00> : vector<8x256xf32>
    %37 = vector.multi_reduction <add>, %36, %cst_19 [1] : vector<8x16x256xf32> to vector<8x256xf32>
    %c0_20 = arith.constant 0 : index
    %c0_21 = arith.constant 0 : index
    %38 = vector.load %arg7[%c0_20, %c0_21] : memref<8x256xf32, #tpu.memory_space<vmem>>, vector<8x256xf32>
    tpu.vector_store %arg7[%c0_20, %c0_21], %37 {strides = array<i32>} : memref<8x256xf32, #tpu.memory_space<vmem>>, vector<8x256xf32>,
    return
  }
  func.func @transform_0(%arg0: i32) -> (i32, i32, i32) {
    %c0_i32 = arith.constant 0 : i32
    %c0_i32_0 = arith.constant 0 : i32
    %c0_i32_1 = arith.constant 0 : i32
    return %arg0, %c0_i32, %c0_i32_0 : i32, i32, i32
  }
  func.func @transform_1(%arg0: i32) -> (i32, i32, i32) {
    %c0_i32 = arith.constant 0 : i32
    %c0_i32_0 = arith.constant 0 : i32
    %c0_i32_1 = arith.constant 0 : i32
    return %arg0, %c0_i32, %c0_i32_0 : i32, i32, i32
  }
  func.func @transform_2(%arg0: i32) -> (i32, i32) {
    %c0_i32 = arith.constant 0 : i32
    %c0_i32_0 = arith.constant 0 : i32
    %c0_i32_1 = arith.constant 0 : i32
    return %c0_i32, %c0_i32_0 : i32, i32
  }
  func.func @transform_3(%arg0: i32) -> (i32, i32) {
    %c0_i32 = arith.constant 0 : i32
    %c0_i32_0 = arith.constant 0 : i32
    %c0_i32_1 = arith.constant 0 : i32
    return %c0_i32, %c0_i32_0 : i32, i32
  }
  func.func @transform_4(%arg0: i32) -> (i32, i32) {
    %c0_i32 = arith.constant 0 : i32
    %c0_i32_0 = arith.constant 0 : i32
    %c0_i32_1 = arith.constant 0 : i32
    return %c0_i32, %c0_i32_0 : i32, i32
  }
  func.func @transform_5(%arg0: i32) -> (i32, i32) {
    %c0_i32 = arith.constant 0 : i32
    %c0_i32_0 = arith.constant 0 : i32
    %c0_i32_1 = arith.constant 0 : i32
    return %c0_i32, %c0_i32_0 : i32, i32
  }
  func.func @transform_6(%arg0: i32) -> (i32, i32) {
    %c0_i32 = arith.constant 0 : i32
    %c0_i32_0 = arith.constant 0 : i32
    return %arg0, %c0_i32 : i32, i32
  }
}

module attributes {stable_mosaic.version = 11 : i64} {
  func.func @_mblosa_kernel(%arg0: i32, %arg1: memref<2x16x128xf32, #tpu.memory_space<vmem>>, %arg2: memref<128x128xbf16, #tpu.memory_space<vmem>>, %arg3: memref<1x128xf32, #tpu.memory_space<vmem>>, %arg4: memref<128x128xbf16, #tpu.memory_space<vmem>>, %arg5: memref<1x128xf32, #tpu.memory_space<vmem>>, %arg6: memref<128x128xbf16, #tpu.memory_space<vmem>>, %arg7: memref<128x128xbf16, #tpu.memory_space<vmem>>, %arg8: memref<1x128xf32, #tpu.memory_space<vmem>>, %arg9: memref<128x128xbf16, #tpu.memory_space<vmem>>, %arg10: memref<128x128xbf16, #tpu.memory_space<vmem>>, %arg11: memref<128x128xbf16, #tpu.memory_space<vmem>>, %arg12: memref<1x128xf32, #tpu.memory_space<vmem>>, %arg13: memref<128x128xbf16, #tpu.memory_space<vmem>>, %arg14: memref<128x128xbf16, #tpu.memory_space<vmem>>, %arg15: memref<128x128xbf16, #tpu.memory_space<vmem>>, %arg16: memref<1x128xf32, #tpu.memory_space<vmem>>, %arg17: memref<2x16x128xf32, #tpu.memory_space<vmem>>) attributes {dimension_semantics = [#tpu.dimension_semantics<parallel>], iteration_bounds = array<i64: 2>, scalar_prefetch = 0 : i64, scratch_operands = 0 : i64, tpu.core_type = #tpu.core_type<tc>, window_params = [{transform_indices = @transform_0, window_bounds = array<i64: 2, 16, 128>}, {pipeline_mode = #tpu.pipeline_mode<synchronous>, transform_indices = @transform_1, window_bounds = array<i64: 128, 128>}, {pipeline_mode = #tpu.pipeline_mode<synchronous>, transform_indices = @transform_2, window_bounds = array<i64: 1, 128>}, {pipeline_mode = #tpu.pipeline_mode<synchronous>, transform_indices = @transform_3, window_bounds = array<i64: 128, 128>}, {pipeline_mode = #tpu.pipeline_mode<synchronous>, transform_indices = @transform_4, window_bounds = array<i64: 1, 128>}, {pipeline_mode = #tpu.pipeline_mode<synchronous>, transform_indices = @transform_5, window_bounds = array<i64: 128, 128>}, {pipeline_mode = #tpu.pipeline_mode<synchronous>, transform_indices = @transform_6, window_bounds = array<i64: 128, 128>}, {pipeline_mode = #tpu.pipeline_mode<synchronous>, transform_indices = @transform_7, window_bounds = array<i64: 1, 128>}, {pipeline_mode = #tpu.pipeline_mode<synchronous>, transform_indices = @transform_8, window_bounds = array<i64: 128, 128>}, {pipeline_mode = #tpu.pipeline_mode<synchronous>, transform_indices = @transform_9, window_bounds = array<i64: 128, 128>}, {pipeline_mode = #tpu.pipeline_mode<synchronous>, transform_indices = @transform_10, window_bounds = array<i64: 128, 128>}, {pipeline_mode = #tpu.pipeline_mode<synchronous>, transform_indices = @transform_11, window_bounds = array<i64: 1, 128>}, {pipeline_mode = #tpu.pipeline_mode<synchronous>, transform_indices = @transform_12, window_bounds = array<i64: 128, 128>}, {pipeline_mode = #tpu.pipeline_mode<synchronous>, transform_indices = @transform_13, window_bounds = array<i64: 128, 128>}, {pipeline_mode = #tpu.pipeline_mode<synchronous>, transform_indices = @transform_14, window_bounds = array<i64: 128, 128>}, {pipeline_mode = #tpu.pipeline_mode<synchronous>, transform_indices = @transform_15, window_bounds = array<i64: 1, 128>}, {transform_indices = @transform_16, window_bounds = array<i64: 2, 16, 128>}]} {
    %c0 = arith.constant 0 : index
    %c0_0 = arith.constant 0 : index
    %c0_1 = arith.constant 0 : index
    %0 = vector.load %arg1[%c0, %c0_0, %c0_1] : memref<2x16x128xf32, #tpu.memory_space<vmem>>, vector<2x16x128xf32>
    %1 = vector.shape_cast %0 : vector<2x16x128xf32> to vector<2x2x8x128xf32>
    %2 = vector.shape_cast %0 : vector<2x16x128xf32> to vector<32x128xf32>
    %3 = tpu.iota {dimensions = array<i32: 2>} : vector<2x2x8x128xi32>
    %c7_i32 = arith.constant 7 : i32
    %4 = vector.broadcast %c7_i32 : i32 to vector<2x2x8x128xi32>
    %5 = arith.cmpi eq, %3, %4 : vector<2x2x8x128xi32>
    %cst = arith.constant 0.000000e+00 : f32
    %6 = vector.broadcast %cst : f32 to vector<2x2x8x128xf32>
    %7 = arith.select %5, %6, %1 : vector<2x2x8x128xi1>, vector<2x2x8x128xf32>
    %8 = vector.shape_cast %7 : vector<2x2x8x128xf32> to vector<32x128xf32>
    %9 = arith.truncf %2 : vector<32x128xf32> to vector<32x128xbf16>
    %10 = arith.truncf %8 : vector<32x128xf32> to vector<32x128xbf16>
    %c0_2 = arith.constant 0 : index
    %c0_3 = arith.constant 0 : index
    %11 = vector.load %arg2[%c0_2, %c0_3] : memref<128x128xbf16, #tpu.memory_space<vmem>>, vector<128x128xbf16>
    %cst_4 = arith.constant dense<0.000000e+00> : vector<32x128xf32>
    %12 = tpu.matmul %10, %11, %cst_4 {dimension_numbers = #tpu.dot_dimension_numbers<[1], [0], [0], [1], [0, 0, 1, 1], [], []>} : vector<32x128xbf16>, vector<128x128xbf16>, vector<32x128xf32> -> vector<32x128xf32>
    %c0_5 = arith.constant 0 : index
    %c0_6 = arith.constant 0 : index
    %13 = vector.load %arg3[%c0_5, %c0_6] : memref<1x128xf32, #tpu.memory_space<vmem>>, vector<1x128xf32>
    %14 = vector.broadcast %13 : vector<1x128xf32> to vector<32x128xf32>
    %15 = arith.addf %12, %14 : vector<32x128xf32>
    %cst_7 = arith.constant 0.000000e+00 : f32
    %16 = vector.broadcast %cst_7 : f32 to vector<32x128xf32>
    %17 = arith.maximumf %15, %16 : vector<32x128xf32>
    %18 = arith.truncf %17 : vector<32x128xf32> to vector<32x128xbf16>
    %c0_8 = arith.constant 0 : index
    %c0_9 = arith.constant 0 : index
    %19 = vector.load %arg4[%c0_8, %c0_9] : memref<128x128xbf16, #tpu.memory_space<vmem>>, vector<128x128xbf16>
    %cst_10 = arith.constant dense<0.000000e+00> : vector<32x128xf32>
    %20 = tpu.matmul %18, %19, %cst_10 {dimension_numbers = #tpu.dot_dimension_numbers<[1], [0], [0], [1], [0, 0, 1, 1], [], []>} : vector<32x128xbf16>, vector<128x128xbf16>, vector<32x128xf32> -> vector<32x128xf32>
    %c0_11 = arith.constant 0 : index
    %c0_12 = arith.constant 0 : index
    %21 = vector.load %arg5[%c0_11, %c0_12] : memref<1x128xf32, #tpu.memory_space<vmem>>, vector<1x128xf32>
    %22 = vector.broadcast %21 : vector<1x128xf32> to vector<32x128xf32>
    %23 = arith.addf %20, %22 : vector<32x128xf32>
    %24 = vector.shape_cast %23 : vector<32x128xf32> to vector<2x2x8x128xf32>
    %cst_13 = arith.constant dense<0xFF800000> : vector<2x2x128xf32>
    %25 = vector.multi_reduction <maximumf>, %24, %cst_13 [2] : vector<2x2x8x128xf32> to vector<2x2x128xf32>
    %26 = vector.shape_cast %25 : vector<2x2x128xf32> to vector<2x2x1x128xf32>
    %27 = vector.broadcast %26 : vector<2x2x1x128xf32> to vector<2x2x8x128xf32>
    %28 = arith.subf %24, %27 : vector<2x2x8x128xf32>
    %29 = math.exp %28 : vector<2x2x8x128xf32>
    %cst_14 = arith.constant dense<0.000000e+00> : vector<2x2x128xf32>
    %30 = vector.multi_reduction <add>, %29, %cst_14 [2] : vector<2x2x8x128xf32> to vector<2x2x128xf32>
    %31 = vector.shape_cast %30 : vector<2x2x128xf32> to vector<2x2x1x128xf32>
    %32 = tpu.reciprocal %31 {approx = true} : vector<2x2x1x128xf32> -> vector<2x2x1x128xf32>
    %33 = vector.broadcast %32 : vector<2x2x1x128xf32> to vector<2x2x8x128xf32>
    %34 = arith.mulf %29, %33 : vector<2x2x8x128xf32>
    %35 = arith.mulf %34, %7 : vector<2x2x8x128xf32>
    %cst_15 = arith.constant dense<0.000000e+00> : vector<2x2x128xf32>
    %36 = vector.multi_reduction <add>, %35, %cst_15 [2] : vector<2x2x8x128xf32> to vector<2x2x128xf32>
    %37 = tpu.iota {dimensions = array<i32: 1>} : vector<2x2x128xi32>
    %c1_i32 = arith.constant 1 : i32
    %38 = vector.broadcast %c1_i32 : i32 to vector<2x2x128xi32>
    %39 = arith.cmpi eq, %37, %38 : vector<2x2x128xi32>
    %cst_16 = arith.constant 0.000000e+00 : f32
    %40 = vector.broadcast %cst_16 : f32 to vector<2x2x128xf32>
    %41 = arith.select %39, %40, %36 : vector<2x2x128xi1>, vector<2x2x128xf32>
    %42 = vector.shape_cast %41 : vector<2x2x128xf32> to vector<4x128xf32>
    %43 = vector.shape_cast %36 : vector<2x2x128xf32> to vector<4x128xf32>
    %44 = arith.truncf %42 : vector<4x128xf32> to vector<4x128xbf16>
    %c0_17 = arith.constant 0 : index
    %c0_18 = arith.constant 0 : index
    %45 = vector.load %arg6[%c0_17, %c0_18] : memref<128x128xbf16, #tpu.memory_space<vmem>>, vector<128x128xbf16>
    %cst_19 = arith.constant dense<0.000000e+00> : vector<4x128xf32>
    %46 = tpu.matmul %44, %45, %cst_19 {dimension_numbers = #tpu.dot_dimension_numbers<[1], [0], [0], [1], [0, 0, 1, 1], [], []>} : vector<4x128xbf16>, vector<128x128xbf16>, vector<4x128xf32> -> vector<4x128xf32>
    %47 = arith.truncf %43 : vector<4x128xf32> to vector<4x128xbf16>
    %c0_20 = arith.constant 0 : index
    %c0_21 = arith.constant 0 : index
    %48 = vector.load %arg7[%c0_20, %c0_21] : memref<128x128xbf16, #tpu.memory_space<vmem>>, vector<128x128xbf16>
    %cst_22 = arith.constant dense<0.000000e+00> : vector<4x128xf32>
    %49 = tpu.matmul %47, %48, %cst_22 {dimension_numbers = #tpu.dot_dimension_numbers<[1], [0], [0], [1], [0, 0, 1, 1], [], []>} : vector<4x128xbf16>, vector<128x128xbf16>, vector<4x128xf32> -> vector<4x128xf32>
    %50 = arith.addf %46, %49 : vector<4x128xf32>
    %c0_23 = arith.constant 0 : index
    %c0_24 = arith.constant 0 : index
    %51 = vector.load %arg8[%c0_23, %c0_24] : memref<1x128xf32, #tpu.memory_space<vmem>>, vector<1x128xf32>
    %52 = vector.broadcast %51 : vector<1x128xf32> to vector<4x128xf32>
    %53 = arith.addf %50, %52 : vector<4x128xf32>
    %cst_25 = arith.constant 5.000000e-01 : f32
    %54 = vector.broadcast %cst_25 : f32 to vector<4x128xf32>
    %55 = arith.mulf %54, %53 : vector<4x128xf32>
    %56 = math.tanh %55 : vector<4x128xf32>
    %cst_26 = arith.constant 1.000000e+00 : f32
    %57 = vector.broadcast %cst_26 : f32 to vector<4x128xf32>
    %58 = arith.addf %57, %56 : vector<4x128xf32>
    %cst_27 = arith.constant 5.000000e-01 : f32
    %59 = vector.broadcast %cst_27 : f32 to vector<4x128xf32>
    %60 = arith.mulf %59, %58 : vector<4x128xf32>
    %61 = arith.mulf %60, %42 : vector<4x128xf32>
    %cst_28 = arith.constant 1.000000e+00 : f32
    %62 = vector.broadcast %cst_28 : f32 to vector<4x128xf32>
    %63 = arith.subf %62, %60 : vector<4x128xf32>
    %64 = arith.mulf %63, %43 : vector<4x128xf32>
    %65 = arith.addf %61, %64 : vector<4x128xf32>
    %66 = arith.truncf %65 : vector<4x128xf32> to vector<4x128xbf16>
    %67 = vector.extract_strided_slice %1 {offsets = [0, 0, 7, 0], sizes = [2, 2, 1, 128], strides = [1, 1, 1, 1]} : vector<2x2x8x128xf32> to vector<2x2x1x128xf32>
    %68 = vector.shape_cast %67 : vector<2x2x1x128xf32> to vector<2x2x128xf32>
    %69 = vector.shape_cast %68 : vector<2x2x128xf32> to vector<4x128xf32>
    %70 = arith.truncf %69 : vector<4x128xf32> to vector<4x128xbf16>
    %c0_29 = arith.constant 0 : index
    %c0_30 = arith.constant 0 : index
    %71 = vector.load %arg9[%c0_29, %c0_30] : memref<128x128xbf16, #tpu.memory_space<vmem>>, vector<128x128xbf16>
    %cst_31 = arith.constant dense<0.000000e+00> : vector<32x128xf32>
    %72 = tpu.matmul %9, %71, %cst_31 {dimension_numbers = #tpu.dot_dimension_numbers<[1], [0], [0], [1], [0, 0, 1, 1], [], []>} : vector<32x128xbf16>, vector<128x128xbf16>, vector<32x128xf32> -> vector<32x128xf32>
    %c0_32 = arith.constant 0 : index
    %c0_33 = arith.constant 0 : index
    %73 = vector.load %arg13[%c0_32, %c0_33] : memref<128x128xbf16, #tpu.memory_space<vmem>>, vector<128x128xbf16>
    %cst_34 = arith.constant dense<0.000000e+00> : vector<32x128xf32>
    %74 = tpu.matmul %9, %73, %cst_34 {dimension_numbers = #tpu.dot_dimension_numbers<[1], [0], [0], [1], [0, 0, 1, 1], [], []>} : vector<32x128xbf16>, vector<128x128xbf16>, vector<32x128xf32> -> vector<32x128xf32>
    %c0_35 = arith.constant 0 : index
    %c0_36 = arith.constant 0 : index
    %75 = vector.load %arg10[%c0_35, %c0_36] : memref<128x128xbf16, #tpu.memory_space<vmem>>, vector<128x128xbf16>
    %cst_37 = arith.constant dense<0.000000e+00> : vector<4x128xf32>
    %76 = tpu.matmul %70, %75, %cst_37 {dimension_numbers = #tpu.dot_dimension_numbers<[1], [0], [0], [1], [0, 0, 1, 1], [], []>} : vector<4x128xbf16>, vector<128x128xbf16>, vector<4x128xf32> -> vector<4x128xf32>
    %c0_38 = arith.constant 0 : index
    %c0_39 = arith.constant 0 : index
    %77 = vector.load %arg14[%c0_38, %c0_39] : memref<128x128xbf16, #tpu.memory_space<vmem>>, vector<128x128xbf16>
    %cst_40 = arith.constant dense<0.000000e+00> : vector<4x128xf32>
    %78 = tpu.matmul %70, %77, %cst_40 {dimension_numbers = #tpu.dot_dimension_numbers<[1], [0], [0], [1], [0, 0, 1, 1], [], []>} : vector<4x128xbf16>, vector<128x128xbf16>, vector<4x128xf32> -> vector<4x128xf32>
    %c0_41 = arith.constant 0 : index
    %c0_42 = arith.constant 0 : index
    %79 = vector.load %arg11[%c0_41, %c0_42] : memref<128x128xbf16, #tpu.memory_space<vmem>>, vector<128x128xbf16>
    %cst_43 = arith.constant dense<0.000000e+00> : vector<4x128xf32>
    %80 = tpu.matmul %66, %79, %cst_43 {dimension_numbers = #tpu.dot_dimension_numbers<[1], [0], [0], [1], [0, 0, 1, 1], [], []>} : vector<4x128xbf16>, vector<128x128xbf16>, vector<4x128xf32> -> vector<4x128xf32>
    %c0_44 = arith.constant 0 : index
    %c0_45 = arith.constant 0 : index
    %81 = vector.load %arg15[%c0_44, %c0_45] : memref<128x128xbf16, #tpu.memory_space<vmem>>, vector<128x128xbf16>
    %cst_46 = arith.constant dense<0.000000e+00> : vector<4x128xf32>
    %82 = tpu.matmul %66, %81, %cst_46 {dimension_numbers = #tpu.dot_dimension_numbers<[1], [0], [0], [1], [0, 0, 1, 1], [], []>} : vector<4x128xbf16>, vector<128x128xbf16>, vector<4x128xf32> -> vector<4x128xf32>
    %83 = vector.shape_cast %72 : vector<32x128xf32> to vector<2x2x8x128xf32>
    %84 = vector.shape_cast %74 : vector<32x128xf32> to vector<2x2x8x128xf32>
    %85 = vector.shape_cast %76 : vector<4x128xf32> to vector<2x2x1x128xf32>
    %cst_47 = arith.constant 0.000000e+00 : f32
    %86 = vector.shape_cast %85 : vector<2x2x1x128xf32> to vector<2x2x1x128xf32>
    %87 = vector.broadcast %86 : vector<2x2x1x128xf32> to vector<2x2x8x128xf32>
    %88 = vector.broadcast %cst_47 : f32 to vector<2x2x8x128xf32>
    %89 = arith.select %5, %87, %88 : vector<2x2x8x128xi1>, vector<2x2x8x128xf32>
    %90 = arith.subf %83, %89 : vector<2x2x8x128xf32>
    %91 = vector.shape_cast %80 : vector<4x128xf32> to vector<2x2x1x128xf32>
    %92 = vector.broadcast %91 : vector<2x2x1x128xf32> to vector<2x2x8x128xf32>
    %93 = arith.addf %90, %92 : vector<2x2x8x128xf32>
    %c0_48 = arith.constant 0 : index
    %c0_49 = arith.constant 0 : index
    %94 = vector.load %arg12[%c0_48, %c0_49] : memref<1x128xf32, #tpu.memory_space<vmem>>, vector<1x128xf32>
    %95 = vector.shape_cast %94 : vector<1x128xf32> to vector<1x1x1x128xf32>
    %96 = vector.broadcast %95 : vector<1x1x1x128xf32> to vector<2x2x8x128xf32>
    %97 = arith.addf %93, %96 : vector<2x2x8x128xf32>
    %98 = vector.shape_cast %78 : vector<4x128xf32> to vector<2x2x1x128xf32>
    %cst_50 = arith.constant 0.000000e+00 : f32
    %99 = vector.shape_cast %98 : vector<2x2x1x128xf32> to vector<2x2x1x128xf32>
    %100 = vector.broadcast %99 : vector<2x2x1x128xf32> to vector<2x2x8x128xf32>
    %101 = vector.broadcast %cst_50 : f32 to vector<2x2x8x128xf32>
    %102 = arith.select %5, %100, %101 : vector<2x2x8x128xi1>, vector<2x2x8x128xf32>
    %103 = arith.subf %84, %102 : vector<2x2x8x128xf32>
    %104 = vector.shape_cast %82 : vector<4x128xf32> to vector<2x2x1x128xf32>
    %105 = vector.broadcast %104 : vector<2x2x1x128xf32> to vector<2x2x8x128xf32>
    %106 = arith.addf %103, %105 : vector<2x2x8x128xf32>
    %c0_51 = arith.constant 0 : index
    %c0_52 = arith.constant 0 : index
    %107 = vector.load %arg16[%c0_51, %c0_52] : memref<1x128xf32, #tpu.memory_space<vmem>>, vector<1x128xf32>
    %108 = vector.shape_cast %107 : vector<1x128xf32> to vector<1x1x1x128xf32>
    %109 = vector.broadcast %108 : vector<1x1x1x128xf32> to vector<2x2x8x128xf32>
    %110 = arith.addf %106, %109 : vector<2x2x8x128xf32>
    %cst_53 = arith.constant 0.000000e+00 : f32
    %111 = vector.broadcast %cst_53 : f32 to vector<2x2x8x128xf32>
    %112 = arith.maximumf %97, %111 : vector<2x2x8x128xf32>
    %cst_54 = arith.constant 5.000000e-01 : f32
    %113 = vector.broadcast %cst_54 : f32 to vector<2x2x8x128xf32>
    %114 = arith.mulf %113, %110 : vector<2x2x8x128xf32>
    %115 = math.tanh %114 : vector<2x2x8x128xf32>
    %cst_55 = arith.constant 1.000000e+00 : f32
    %116 = vector.broadcast %cst_55 : f32 to vector<2x2x8x128xf32>
    %117 = arith.addf %116, %115 : vector<2x2x8x128xf32>
    %cst_56 = arith.constant 5.000000e-01 : f32
    %118 = vector.broadcast %cst_56 : f32 to vector<2x2x8x128xf32>
    %119 = arith.mulf %118, %117 : vector<2x2x8x128xf32>
    %120 = arith.mulf %119, %112 : vector<2x2x8x128xf32>
    %cst_57 = arith.constant 1.000000e+00 : f32
    %121 = vector.broadcast %cst_57 : f32 to vector<2x2x8x128xf32>
    %122 = arith.subf %121, %119 : vector<2x2x8x128xf32>
    %123 = arith.mulf %122, %1 : vector<2x2x8x128xf32>
    %124 = arith.addf %120, %123 : vector<2x2x8x128xf32>
    %125 = vector.shape_cast %124 : vector<2x2x8x128xf32> to vector<2x16x128xf32>
    %c0_58 = arith.constant 0 : index
    %c0_59 = arith.constant 0 : index
    %c0_60 = arith.constant 0 : index
    %126 = vector.load %arg17[%c0_58, %c0_59, %c0_60] : memref<2x16x128xf32, #tpu.memory_space<vmem>>, vector<2x16x128xf32>
    tpu.vector_store %arg17[%c0_58, %c0_59, %c0_60], %125 {strides = array<i32>} : memref<2x16x128xf32, #tpu.memory_space<vmem>>, vector<2x16x128xf32>,
    return
  }
  func.func @transform_0(%arg0: i32) -> (i32, i32, i32) {
    %c0_i32 = arith.constant 0 : i32
    %c0_i32_0 = arith.constant 0 : i32
    %c0_i32_1 = arith.constant 0 : i32
    return %arg0, %c0_i32, %c0_i32_0 : i32, i32, i32
  }
  func.func @transform_1(%arg0: i32) -> (i32, i32) {
    %c0_i32 = arith.constant 0 : i32
    %c0_i32_0 = arith.constant 0 : i32
    %c0_i32_1 = arith.constant 0 : i32
    return %c0_i32, %c0_i32_0 : i32, i32
  }
  func.func @transform_2(%arg0: i32) -> (i32, i32) {
    %c0_i32 = arith.constant 0 : i32
    %c0_i32_0 = arith.constant 0 : i32
    %c0_i32_1 = arith.constant 0 : i32
    return %c0_i32, %c0_i32_0 : i32, i32
  }
  func.func @transform_3(%arg0: i32) -> (i32, i32) {
    %c0_i32 = arith.constant 0 : i32
    %c0_i32_0 = arith.constant 0 : i32
    %c0_i32_1 = arith.constant 0 : i32
    return %c0_i32, %c0_i32_0 : i32, i32
  }
  func.func @transform_4(%arg0: i32) -> (i32, i32) {
    %c0_i32 = arith.constant 0 : i32
    %c0_i32_0 = arith.constant 0 : i32
    %c0_i32_1 = arith.constant 0 : i32
    return %c0_i32, %c0_i32_0 : i32, i32
  }
  func.func @transform_5(%arg0: i32) -> (i32, i32) {
    %c0_i32 = arith.constant 0 : i32
    %c0_i32_0 = arith.constant 0 : i32
    %c0_i32_1 = arith.constant 0 : i32
    return %c0_i32, %c0_i32_0 : i32, i32
  }
  func.func @transform_6(%arg0: i32) -> (i32, i32) {
    %c0_i32 = arith.constant 0 : i32
    %c0_i32_0 = arith.constant 0 : i32
    %c0_i32_1 = arith.constant 0 : i32
    return %c0_i32, %c0_i32_0 : i32, i32
  }
  func.func @transform_7(%arg0: i32) -> (i32, i32) {
    %c0_i32 = arith.constant 0 : i32
    %c0_i32_0 = arith.constant 0 : i32
    %c0_i32_1 = arith.constant 0 : i32
    return %c0_i32, %c0_i32_0 : i32, i32
  }
  func.func @transform_8(%arg0: i32) -> (i32, i32) {
    %c0_i32 = arith.constant 0 : i32
    %c0_i32_0 = arith.constant 0 : i32
    %c0_i32_1 = arith.constant 0 : i32
    return %c0_i32, %c0_i32_0 : i32, i32
  }
  func.func @transform_9(%arg0: i32) -> (i32, i32) {
    %c0_i32 = arith.constant 0 : i32
    %c0_i32_0 = arith.constant 0 : i32
    %c0_i32_1 = arith.constant 0 : i32
    return %c0_i32, %c0_i32_0 : i32, i32
  }
  func.func @transform_10(%arg0: i32) -> (i32, i32) {
    %c0_i32 = arith.constant 0 : i32
    %c0_i32_0 = arith.constant 0 : i32
    %c0_i32_1 = arith.constant 0 : i32
    return %c0_i32, %c0_i32_0 : i32, i32
  }
  func.func @transform_11(%arg0: i32) -> (i32, i32) {
    %c0_i32 = arith.constant 0 : i32
    %c0_i32_0 = arith.constant 0 : i32
    %c0_i32_1 = arith.constant 0 : i32
    return %c0_i32, %c0_i32_0 : i32, i32
  }
  func.func @transform_12(%arg0: i32) -> (i32, i32) {
    %c0_i32 = arith.constant 0 : i32
    %c0_i32_0 = arith.constant 0 : i32
    %c0_i32_1 = arith.constant 0 : i32
    return %c0_i32, %c0_i32_0 : i32, i32
  }
  func.func @transform_13(%arg0: i32) -> (i32, i32) {
    %c0_i32 = arith.constant 0 : i32
    %c0_i32_0 = arith.constant 0 : i32
    %c0_i32_1 = arith.constant 0 : i32
    return %c0_i32, %c0_i32_0 : i32, i32
  }
  func.func @transform_14(%arg0: i32) -> (i32, i32) {
    %c0_i32 = arith.constant 0 : i32
    %c0_i32_0 = arith.constant 0 : i32
    %c0_i32_1 = arith.constant 0 : i32
    return %c0_i32, %c0_i32_0 : i32, i32
  }
  func.func @transform_15(%arg0: i32) -> (i32, i32) {
    %c0_i32 = arith.constant 0 : i32
    %c0_i32_0 = arith.constant 0 : i32
    %c0_i32_1 = arith.constant 0 : i32
    return %c0_i32, %c0_i32_0 : i32, i32
  }
  func.func @transform_16(%arg0: i32) -> (i32, i32, i32) {
    %c0_i32 = arith.constant 0 : i32
    %c0_i32_0 = arith.constant 0 : i32
    %c0_i32_1 = arith.constant 0 : i32
    return %arg0, %c0_i32, %c0_i32_0 : i32, i32, i32
  }
}

module attributes {stable_mosaic.version = 11 : i64} {
  func.func @_linear_kernel(%arg0: i32, %arg1: memref<8x1024xf32, #tpu.memory_space<vmem>>, %arg2: memref<1024x384xbf16, #tpu.memory_space<vmem>>, %arg3: memref<1x384xf32, #tpu.memory_space<vmem>>, %arg4: memref<8x384xf32, #tpu.memory_space<vmem>>) attributes {dimension_semantics = [#tpu.dimension_semantics<parallel>], iteration_bounds = array<i64: 1>, scalar_prefetch = 0 : i64, scratch_operands = 0 : i64, tpu.core_type = #tpu.core_type<tc>, window_params = [{transform_indices = @transform_0, window_bounds = array<i64: 8, 1024>}, {pipeline_mode = #tpu.pipeline_mode<synchronous>, transform_indices = @transform_1, window_bounds = array<i64: 1024, 384>}, {pipeline_mode = #tpu.pipeline_mode<synchronous>, transform_indices = @transform_2, window_bounds = array<i64: 1, 384>}, {transform_indices = @transform_3, window_bounds = array<i64: 8, 384>}]} {
    %c0 = arith.constant 0 : index
    %c0_0 = arith.constant 0 : index
    %0 = vector.load %arg1[%c0, %c0_0] : memref<8x1024xf32, #tpu.memory_space<vmem>>, vector<8x1024xf32>
    %1 = arith.truncf %0 : vector<8x1024xf32> to vector<8x1024xbf16>
    %c0_1 = arith.constant 0 : index
    %c0_2 = arith.constant 0 : index
    %2 = vector.load %arg2[%c0_1, %c0_2] : memref<1024x384xbf16, #tpu.memory_space<vmem>>, vector<1024x384xbf16>
    %cst = arith.constant dense<0.000000e+00> : vector<8x384xf32>
    %3 = tpu.matmul %1, %2, %cst {dimension_numbers = #tpu.dot_dimension_numbers<[1], [0], [0], [1], [0, 0, 1, 1], [], []>} : vector<8x1024xbf16>, vector<1024x384xbf16>, vector<8x384xf32> -> vector<8x384xf32>
    %c0_3 = arith.constant 0 : index
    %c0_4 = arith.constant 0 : index
    %4 = vector.load %arg3[%c0_3, %c0_4] : memref<1x384xf32, #tpu.memory_space<vmem>>, vector<1x384xf32>
    %5 = vector.broadcast %4 : vector<1x384xf32> to vector<8x384xf32>
    %6 = arith.addf %3, %5 : vector<8x384xf32>
    %cst_5 = arith.constant 0.000000e+00 : f32
    %7 = vector.broadcast %cst_5 : f32 to vector<8x384xf32>
    %8 = arith.maximumf %6, %7 : vector<8x384xf32>
    %c0_6 = arith.constant 0 : index
    %c0_7 = arith.constant 0 : index
    %9 = vector.load %arg4[%c0_6, %c0_7] : memref<8x384xf32, #tpu.memory_space<vmem>>, vector<8x384xf32>
    tpu.vector_store %arg4[%c0_6, %c0_7], %8 {strides = array<i32>} : memref<8x384xf32, #tpu.memory_space<vmem>>, vector<8x384xf32>,
    return
  }
  func.func @transform_0(%arg0: i32) -> (i32, i32) {
    %c0_i32 = arith.constant 0 : i32
    %c0_i32_0 = arith.constant 0 : i32
    return %arg0, %c0_i32 : i32, i32
  }
  func.func @transform_1(%arg0: i32) -> (i32, i32) {
    %c0_i32 = arith.constant 0 : i32
    %c0_i32_0 = arith.constant 0 : i32
    %c0_i32_1 = arith.constant 0 : i32
    return %c0_i32, %c0_i32_0 : i32, i32
  }
  func.func @transform_2(%arg0: i32) -> (i32, i32) {
    %c0_i32 = arith.constant 0 : i32
    %c0_i32_0 = arith.constant 0 : i32
    %c0_i32_1 = arith.constant 0 : i32
    return %c0_i32, %c0_i32_0 : i32, i32
  }
  func.func @transform_3(%arg0: i32) -> (i32, i32) {
    %c0_i32 = arith.constant 0 : i32
    %c0_i32_0 = arith.constant 0 : i32
    return %arg0, %c0_i32 : i32, i32
  }
}

module attributes {stable_mosaic.version = 11 : i64} {
  func.func @_linear_kernel(%arg0: i32, %arg1: memref<8x384xf32, #tpu.memory_space<vmem>>, %arg2: memref<384x128xbf16, #tpu.memory_space<vmem>>, %arg3: memref<1x128xf32, #tpu.memory_space<vmem>>, %arg4: memref<8x128xf32, #tpu.memory_space<vmem>>) attributes {dimension_semantics = [#tpu.dimension_semantics<parallel>], iteration_bounds = array<i64: 1>, scalar_prefetch = 0 : i64, scratch_operands = 0 : i64, tpu.core_type = #tpu.core_type<tc>, window_params = [{transform_indices = @transform_0, window_bounds = array<i64: 8, 384>}, {pipeline_mode = #tpu.pipeline_mode<synchronous>, transform_indices = @transform_1, window_bounds = array<i64: 384, 128>}, {pipeline_mode = #tpu.pipeline_mode<synchronous>, transform_indices = @transform_2, window_bounds = array<i64: 1, 128>}, {transform_indices = @transform_3, window_bounds = array<i64: 8, 128>}]} {
    %c0 = arith.constant 0 : index
    %c0_0 = arith.constant 0 : index
    %0 = vector.load %arg1[%c0, %c0_0] : memref<8x384xf32, #tpu.memory_space<vmem>>, vector<8x384xf32>
    %1 = arith.truncf %0 : vector<8x384xf32> to vector<8x384xbf16>
    %c0_1 = arith.constant 0 : index
    %c0_2 = arith.constant 0 : index
    %2 = vector.load %arg2[%c0_1, %c0_2] : memref<384x128xbf16, #tpu.memory_space<vmem>>, vector<384x128xbf16>
    %cst = arith.constant dense<0.000000e+00> : vector<8x128xf32>
    %3 = tpu.matmul %1, %2, %cst {dimension_numbers = #tpu.dot_dimension_numbers<[1], [0], [0], [1], [0, 0, 1, 1], [], []>} : vector<8x384xbf16>, vector<384x128xbf16>, vector<8x128xf32> -> vector<8x128xf32>
    %c0_3 = arith.constant 0 : index
    %c0_4 = arith.constant 0 : index
    %4 = vector.load %arg3[%c0_3, %c0_4] : memref<1x128xf32, #tpu.memory_space<vmem>>, vector<1x128xf32>
    %5 = vector.broadcast %4 : vector<1x128xf32> to vector<8x128xf32>
    %6 = arith.addf %3, %5 : vector<8x128xf32>
    %c0_5 = arith.constant 0 : index
    %c0_6 = arith.constant 0 : index
    %7 = vector.load %arg4[%c0_5, %c0_6] : memref<8x128xf32, #tpu.memory_space<vmem>>, vector<8x128xf32>
    tpu.vector_store %arg4[%c0_5, %c0_6], %6 {strides = array<i32>} : memref<8x128xf32, #tpu.memory_space<vmem>>, vector<8x128xf32>,
    return
  }
  func.func @transform_0(%arg0: i32) -> (i32, i32) {
    %c0_i32 = arith.constant 0 : i32
    %c0_i32_0 = arith.constant 0 : i32
    return %arg0, %c0_i32 : i32, i32
  }
  func.func @transform_1(%arg0: i32) -> (i32, i32) {
    %c0_i32 = arith.constant 0 : i32
    %c0_i32_0 = arith.constant 0 : i32
    %c0_i32_1 = arith.constant 0 : i32
    return %c0_i32, %c0_i32_0 : i32, i32
  }
  func.func @transform_2(%arg0: i32) -> (i32, i32) {
    %c0_i32 = arith.constant 0 : i32
    %c0_i32_0 = arith.constant 0 : i32
    %c0_i32_1 = arith.constant 0 : i32
    return %c0_i32, %c0_i32_0 : i32, i32
  }
  func.func @transform_3(%arg0: i32) -> (i32, i32) {
    %c0_i32 = arith.constant 0 : i32
    %c0_i32_0 = arith.constant 0 : i32
    return %arg0, %c0_i32 : i32, i32
  }
}

</mosaic_0001>

<bundles_post_ra>
// kernel: nn4snli_forward.6
= control target key start
LH: loop header
LB: loop body
LE: loop exit
PB: predicated region body
PF: predicated region fallthrough
CT: control target
= control target key end

     0   :  { %v301_v1 = vmov 0   ;;  %v45_v29 = vlaneseq  ;;  %s445_s1 = inlined_call_operand.vmem [shape: bf16[128,256], index: 1, kind: input, shape index: {}]   ;;  %s446_s0 = inlined_call_operand.vmem [shape: f32[64,128], index: 0, kind: input, shape index: {}]   ;;  %s447_s2 = inlined_call_operand.vmem [shape: f32[1,256], index: 2, kind: input, shape index: {}]   ;;  %s448_s3 = inlined_call_operand.vmem [shape: f32[64,256], index: 3, kind: output, shape index: {}]  }
   0x1   :  { %v277_v0 = vld [vmem:[%s445_s1 + $0x74] ss:$8 sps:$4 sm:$0xff]   ;;  %167 = vmatprep.mubr.bf16.mxu0 %v301_v1  ;;  %187 = vmatprep.mubr.bf16.mxu1 %v301_v1  ;;  %v279_v2 = vld [vmem:[%s445_s1 + $0x70] ss:$8 sps:$4 sm:$0xff]   ;;  %v280_v3 = vld [vmem:[%s445_s1 + $0x64] ss:$8 sps:$4 sm:$0xff]  }
   0x2   :  { %135 = vmatprep.subr.bf16.mxu0 %v277_v0  ;;  %260 = vmatprep.subr.bf16.mxu1 %v277_v0  ;;  %v282_v4 = vld [vmem:[%s445_s1 + $0x60] ss:$8 sps:$4 sm:$0xff]   ;;  %v283_v5 = vld [vmem:[%s445_s1 + $0x54] ss:$8 sps:$4 sm:$0xff]   ;;  %v285_v6 = vld [vmem:[%s445_s1 + $0x50] ss:$8 sps:$4 sm:$0xff]  }
   0x3   :  { %136 = vmatpush1.bf16.msra.mxu0 %v279_v2  ;;  %268 = vmatpush1.bf16.msra.mxu1 %v279_v2  ;;  %v286_v7 = vld [vmem:[%s445_s1 + $0x44] ss:$8 sps:$4 sm:$0xff]   ;;  %v288_v8 = vld [vmem:[%s445_s1 + $0x40] ss:$8 sps:$4 sm:$0xff]   ;;  %v289_v9 = vld [vmem:[%s445_s1 + $0x34] ss:$8 sps:$4 sm:$0xff]  }
   0x4   :  { %137 = vmatprep.subr.bf16.mxu0 %v280_v3  ;;  %261 = vmatprep.subr.bf16.mxu1 %v280_v3  ;;  %v291_v10 = vld [vmem:[%s445_s1 + $0x30] ss:$8 sps:$4 sm:$0xff]   ;;  %v292_v11 = vld [vmem:[%s445_s1 + $0x24] ss:$8 sps:$4 sm:$0xff]   ;;  %v294_v12 = vld [vmem:[%s445_s1 + $0x20] ss:$8 sps:$4 sm:$0xff]  }
   0x5   :  { %v295_v13 = vld [vmem:[%s445_s1 + $0x14] ss:$8 sps:$4 sm:$0xff]   ;;  %v297_v14 = vld [vmem:[%s445_s1 + $0x10] ss:$8 sps:$4 sm:$0xff]   ;;  %v298_v15 = vld [vmem:[%s445_s1 + $0x4] ss:$8 sps:$4 sm:$0xff]  }
   0x6   :  { %v300_v16 = vld [vmem:[%s445_s1] ss:$8 sps:$4 sm:$0xff]   ;;  %v17_v23 = vld [vmem:[%s446_s0 + $0x10] sm:$0xff]  ;;  %v18_v24 = vld [vmem:[%s446_s0 + $0x18] sm:$0xff]  ;;  %v46_v30 = vshrl.u32 %v45_v29, 7 }
   0x7   :  { %138 = vmatpush1.bf16.msra.mxu0 %v282_v4  ;;  %269 = vmatpush1.bf16.msra.mxu1 %v282_v4  ;;  %v15_v17 = vld [vmem:[%s446_s0] sm:$0xff]  ;;  %v16_v18 = vld [vmem:[%s446_s0 + $0x8] sm:$0xff]  ;;  %v21_v25 = vld [vmem:[%s446_s0 + $0x30] sm:$0xff]  ;;  %v24_v27 = vpack.c.bf16 %v18_v24, %v17_v23 }
   0x8   :  { %139 = vmatprep.subr.bf16.mxu0 %v283_v5  ;;  %262 = vmatprep.subr.bf16.mxu1 %v283_v5  ;;  %v19_v19 = vld [vmem:[%s446_s0 + $0x20] sm:$0xff]  ;;  %v20_v20 = vld [vmem:[%s446_s0 + $0x28] sm:$0xff]  ;;  %v23_v21 = vpack.c.bf16 %v16_v18, %v15_v17  ;;  %v22_v26 = vld [vmem:[%s446_s0 + $0x38] sm:$0xff]  ;;  %v47_v31 = vsub.s32 0, %v46_v30  ;;  %v51_v33 = vsub.s32 1, %v46_v30 }
   0x9   :  { %v25_v22 = vpack.c.bf16 %v20_v20, %v19_v19  ;;  %v26_v28 = vpack.c.bf16 %v22_v26, %v21_v25  ;;  %v43_v32 = vld [vmem:[%s447_s2] sm:$0x3] }
   0xa   :  { %v48_v34 = vrot.slane %v43_v32, %v47_v31  ;;  %v52_v35 = vrot.slane %v43_v32, %v51_v33 }
   0xb   :  { %140 = vmatpush1.bf16.msra.mxu0 %v285_v6  ;;  %270 = vmatpush1.bf16.msra.mxu1 %v285_v6 }
   0xc   :  { %141 = vmatprep.subr.bf16.mxu0 %v286_v7  ;;  %263 = vmatprep.subr.bf16.mxu1 %v286_v7 }
   0xf   :  { %142 = vmatpush1.bf16.msra.mxu0 %v288_v8  ;;  %271 = vmatpush1.bf16.msra.mxu1 %v288_v8 }
  0x10   :  { %143 = vmatprep.subr.bf16.mxu0 %v289_v9  ;;  %264 = vmatprep.subr.bf16.mxu1 %v289_v9 }
  0x13   :  { %144 = vmatpush1.bf16.msra.mxu0 %v291_v10  ;;  %272 = vmatpush1.bf16.msra.mxu1 %v291_v10 }
  0x14   :  { %145 = vmatprep.subr.bf16.mxu0 %v292_v11  ;;  %265 = vmatprep.subr.bf16.mxu1 %v292_v11 }
  0x17   :  { %146 = vmatpush1.bf16.msra.mxu0 %v294_v12  ;;  %273 = vmatpush1.bf16.msra.mxu1 %v294_v12 }
  0x18   :  { %147 = vmatprep.subr.bf16.mxu0 %v295_v13  ;;  %266 = vmatprep.subr.bf16.mxu1 %v295_v13 }
  0x1b   :  { %148 = vmatpush1.bf16.msra.mxu0 %v297_v14  ;;  %274 = vmatpush1.bf16.msra.mxu1 %v297_v14 }
  0x1c   :  { %149 = vmatprep.subr.bf16.mxu0 %v298_v15  ;;  %267 = vmatprep.subr.bf16.mxu1 %v298_v15 }
  0x1f   :  { %150 = vmatpush1.bf16.msra.mxu0 %v300_v16  ;;  %275 = vmatpush1.bf16.msra.mxu1 %v300_v16 }
  0x22   :  { %168 = vmatmul.mubr.bf16.vlgmr.msra.gmra.mxu0 %v23_v21  ;;  %188 = vmatmul.mubr.bf16.vlgmr.msra.gmra.mxu1 %v25_v22 }
  0x23   :  { %177 = vmatprep.mubr.bf16.mxu0 %v301_v1  ;;  %197 = vmatprep.mubr.bf16.mxu1 %v301_v1 }
  0x2a   :  { %178 = vmatmul.mubr.bf16.gmra.mxu0 %v24_v27  ;;  %198 = vmatmul.mubr.bf16.gmra.mxu1 %v26_v28 }
  0xe2   :  { %v169_v36 = vpop.f32.mrf.mxu0  ;;  %v189_v37 = vpop.f32.mrf.mxu1 }
  0xe3   :  { %v170_v38 = vadd.f32 %v169_v36, %v48_v34  ;;  %v190_v39 = vadd.f32 %v189_v37, %v48_v34 }
  0xe4   :  { %v171_v40 = vpop.f32.mrf.mxu0  ;;  %v191_v41 = vpop.f32.mrf.mxu1 }
  0xe5   :  { %v208_v42 = vmax.f32 %v170_v38, 0.0  ;;  %v216_v43 = vmax.f32 %v190_v39, 0.0  ;;  %v172_v44 = vadd.f32 %v171_v40, %v52_v35  ;;  %v192_v45 = vadd.f32 %v191_v41, %v52_v35 }
  0xe6   :  { %v173_v46 = vpop.f32.mrf.mxu0  ;;  %v193_v47 = vpop.f32.mrf.mxu1 }
  0xe7   :  { %224 = vst [vmem:[%s448_s3] sm:$0xff] %v208_v42  ;;  %232 = vst [vmem:[%s448_s3 + $0x40] sm:$0xff] %v216_v43  ;;  %v209_v48 = vmax.f32 %v172_v44, 0.0  ;;  %v217_v49 = vmax.f32 %v192_v45, 0.0  ;;  %v174_v50 = vadd.f32 %v173_v46, %v48_v34  ;;  %v194_v51 = vadd.f32 %v193_v47, %v48_v34 }
  0xe8   :  { %v175_v52 = vpop.f32.mrf.mxu0  ;;  %v195_v53 = vpop.f32.mrf.mxu1 }
  0xe9   :  { %225 = vst [vmem:[%s448_s3 + $0x8] sm:$0xff] %v209_v48  ;;  %233 = vst [vmem:[%s448_s3 + $0x48] sm:$0xff] %v217_v49  ;;  %v210_v54 = vmax.f32 %v174_v50, 0.0  ;;  %v218_v55 = vmax.f32 %v194_v51, 0.0  ;;  %v176_v56 = vadd.f32 %v175_v52, %v52_v35  ;;  %v196_v57 = vadd.f32 %v195_v53, %v52_v35 }
  0xea   :  { %v179_v58 = vpop.f32.mrf.mxu0  ;;  %v199_v59 = vpop.f32.mrf.mxu1 }
  0xeb   :  { %226 = vst [vmem:[%s448_s3 + $0x10] sm:$0xff] %v210_v54  ;;  %234 = vst [vmem:[%s448_s3 + $0x50] sm:$0xff] %v218_v55  ;;  %v211_v60 = vmax.f32 %v176_v56, 0.0  ;;  %v219_v61 = vmax.f32 %v196_v57, 0.0  ;;  %v180_v62 = vadd.f32 %v179_v58, %v48_v34  ;;  %v200_v63 = vadd.f32 %v199_v59, %v48_v34 }
  0xec   :  { %v181_v0 = vpop.f32.mrf.mxu0  ;;  %v201_v1 = vpop.f32.mrf.mxu1 }
  0xed   :  { %227 = vst [vmem:[%s448_s3 + $0x18] sm:$0xff] %v211_v60  ;;  %235 = vst [vmem:[%s448_s3 + $0x58] sm:$0xff] %v219_v61  ;;  %v212_v2 = vmax.f32 %v180_v62, 0.0  ;;  %v220_v3 = vmax.f32 %v200_v63, 0.0  ;;  %v182_v4 = vadd.f32 %v181_v0, %v52_v35  ;;  %v202_v5 = vadd.f32 %v201_v1, %v52_v35 }
  0xee   :  { %v183_v6 = vpop.f32.mrf.mxu0  ;;  %v203_v7 = vpop.f32.mrf.mxu1 }
  0xef   :  { %228 = vst [vmem:[%s448_s3 + $0x20] sm:$0xff] %v212_v2  ;;  %236 = vst [vmem:[%s448_s3 + $0x60] sm:$0xff] %v220_v3  ;;  %v213_v8 = vmax.f32 %v182_v4, 0.0  ;;  %v221_v9 = vmax.f32 %v202_v5, 0.0  ;;  %v184_v10 = vadd.f32 %v183_v6, %v48_v34  ;;  %v204_v11 = vadd.f32 %v203_v7, %v48_v34 }
  0xf0   :  { %v185_v12 = vpop.f32.mrf.mxu0  ;;  %v205_v13 = vpop.f32.mrf.mxu1 }
  0xf1   :  { %229 = vst [vmem:[%s448_s3 + $0x28] sm:$0xff] %v213_v8  ;;  %237 = vst [vmem:[%s448_s3 + $0x68] sm:$0xff] %v221_v9  ;;  %v214_v14 = vmax.f32 %v184_v10, 0.0  ;;  %v222_v15 = vmax.f32 %v204_v11, 0.0  ;;  %v186_v16 = vadd.f32 %v185_v12, %v52_v35  ;;  %v206_v17 = vadd.f32 %v205_v13, %v52_v35 }
  0xf3   :  { %230 = vst [vmem:[%s448_s3 + $0x30] sm:$0xff] %v214_v14  ;;  %238 = vst [vmem:[%s448_s3 + $0x70] sm:$0xff] %v222_v15  ;;  %v215_v18 = vmax.f32 %v186_v16, 0.0  ;;  %v223_v19 = vmax.f32 %v206_v17, 0.0 }
  0xf5   :  { %231 = vst [vmem:[%s448_s3 + $0x38] sm:$0xff] %v215_v18  ;;  %239 = vst [vmem:[%s448_s3 + $0x78] sm:$0xff] %v223_v19 }

// kernel: nn4snli_forward.9
= control target key start
LH: loop header
LB: loop body
LE: loop exit
PB: predicated region body
PF: predicated region fallthrough
CT: control target
= control target key end

     0   :  { %vm1350_vm0 = vcmask 1041409   ;;  %vm1352_vm1 = vcmask 1042434   ;;  %vm1354_vm2 = vcmask 1043459   ;;  %vm1356_vm3 = vcmask 1044484   ;;  %s2491_s2 = inlined_call_operand.vmem [shape: bf16[256,256], index: 2, kind: input, shape index: {}]   ;;  %s2492_s1 = inlined_call_operand.vmem [shape: f32[8,16,128], index: 1, kind: input, shape index: {}]   ;;  %s2493_s4 = inlined_call_operand.vmem [shape: bf16[256,256], index: 4, kind: input, shape index: {}]   ;;  %s2494_s0 = inlined_call_operand.vmem [shape: f32[8,16,128], index: 0, kind: input, shape index: {}]   ;;  %s2495_s3 = inlined_call_operand.vmem [shape: f32[1,256], index: 3, kind: input, shape index: {}]   ;;  %s2496_s5 = inlined_call_operand.vmem [shape: f32[1,256], index: 5, kind: input, shape index: {}]   ;;  %s2497_s6 = inlined_call_operand.vmem [shape: f32[8,256], index: 6, kind: output, shape index: {}]  }
   0x1   :  { %v1443_v0 = vld [vmem:[%s2491_s2 + $0x74] ss:$8 sps:$4 sm:$0xff]   ;;  %v1445_v1 = vld [vmem:[%s2491_s2 + $0x70] ss:$8 sps:$4 sm:$0xff]   ;;  %v1446_v2 = vld [vmem:[%s2491_s2 + $0x64] ss:$8 sps:$4 sm:$0xff]  }
   0x2   :  { %312 = vmatprep.subr.bf16.mxu0 %v1443_v0  ;;  %v1448_v3 = vld [vmem:[%s2491_s2 + $0x60] ss:$8 sps:$4 sm:$0xff]   ;;  %v1449_v4 = vld [vmem:[%s2491_s2 + $0x54] ss:$8 sps:$4 sm:$0xff]   ;;  %v1451_v5 = vld [vmem:[%s2491_s2 + $0x50] ss:$8 sps:$4 sm:$0xff]  }
   0x3   :  { %313 = vmatpush1.bf16.msra.mxu0 %v1445_v1  ;;  %v1452_v6 = vld [vmem:[%s2491_s2 + $0x44] ss:$8 sps:$4 sm:$0xff]   ;;  %v1454_v7 = vld [vmem:[%s2491_s2 + $0x40] ss:$8 sps:$4 sm:$0xff]   ;;  %v1455_v8 = vld [vmem:[%s2491_s2 + $0x34] ss:$8 sps:$4 sm:$0xff]  }
   0x4   :  { %314 = vmatprep.subr.bf16.mxu0 %v1446_v2  ;;  %v1457_v9 = vld [vmem:[%s2491_s2 + $0x30] ss:$8 sps:$4 sm:$0xff]   ;;  %v1458_v10 = vld [vmem:[%s2491_s2 + $0x24] ss:$8 sps:$4 sm:$0xff]   ;;  %v1460_v11 = vld [vmem:[%s2491_s2 + $0x20] ss:$8 sps:$4 sm:$0xff]  }
   0x5   :  { %v1461_v12 = vld [vmem:[%s2491_s2 + $0x14] ss:$8 sps:$4 sm:$0xff]   ;;  %v39_v13 = vld [vmem:[%s2492_s1] sm:$0xff]  ;;  %v40_v14 = vld [vmem:[%s2492_s1 + $0x8] sm:$0xff]  ;;  %vm1358_vm4 = vcmask 1045509   ;;  %vm1360_vm5 = vcmask 1046534  }
   0x6   :  { %v93_v15 = vpack.c.bf16 %v40_v14, %v39_v13  ;;  %v1463_v16 = vld [vmem:[%s2491_s2 + $0x10] ss:$8 sps:$4 sm:$0xff]   ;;  %v1464_v17 = vld [vmem:[%s2491_s2 + $0x4] ss:$8 sps:$4 sm:$0xff]   ;;  %v1466_v18 = vld [vmem:[%s2491_s2] ss:$8 sps:$4 sm:$0xff]  }
   0x7   :  { %315 = vmatpush1.bf16.msra.mxu0 %v1448_v3  ;;  %v1467_v19 = vld [vmem:[%s2491_s2 + $0xf4] ss:$8 sps:$4 sm:$0xff]   ;;  %v1469_v20 = vld [vmem:[%s2491_s2 + $0xf0] ss:$8 sps:$4 sm:$0xff]   ;;  %v1470_v21 = vld [vmem:[%s2491_s2 + $0xe4] ss:$8 sps:$4 sm:$0xff]  }
   0x8   :  { %316 = vmatprep.subr.bf16.mxu0 %v1449_v4  ;;  %344 = vmatprep.mubr.bf16.mxu0 %v93_v15  ;;  %v1491_v22 = vld [vmem:[%s2493_s4 + $0x74] ss:$8 sps:$4 sm:$0xff]   ;;  %v1493_v23 = vld [vmem:[%s2493_s4 + $0x70] ss:$8 sps:$4 sm:$0xff]   ;;  %v1472_v24 = vld [vmem:[%s2491_s2 + $0xe0] ss:$8 sps:$4 sm:$0xff]  }
   0x9   :  { %677 = vmatprep.subr.bf16.mxu1 %v1491_v22  ;;  %v1494_v25 = vld [vmem:[%s2493_s4 + $0x64] ss:$8 sps:$4 sm:$0xff]   ;;  %v1473_v26 = vld [vmem:[%s2491_s2 + $0xd4] ss:$8 sps:$4 sm:$0xff]   ;;  %v1496_v27 = vld [vmem:[%s2493_s4 + $0x60] ss:$8 sps:$4 sm:$0xff]  }
   0xa   :  { %678 = vmatpush1.bf16.msra.mxu1 %v1493_v23  ;;  %v1497_v28 = vld [vmem:[%s2493_s4 + $0x54] ss:$8 sps:$4 sm:$0xff]   ;;  %v1475_v29 = vld [vmem:[%s2491_s2 + $0xd0] ss:$8 sps:$4 sm:$0xff]   ;;  %v1476_v30 = vld [vmem:[%s2491_s2 + $0xc4] ss:$8 sps:$4 sm:$0xff]  }
   0xb   :  { %317 = vmatpush1.bf16.msra.mxu0 %v1451_v5  ;;  %679 = vmatprep.subr.bf16.mxu1 %v1494_v25  ;;  %v1499_v31 = vld [vmem:[%s2493_s4 + $0x50] ss:$8 sps:$4 sm:$0xff]   ;;  %v1500_v32 = vld [vmem:[%s2493_s4 + $0x44] ss:$8 sps:$4 sm:$0xff]   ;;  %v1478_v33 = vld [vmem:[%s2491_s2 + $0xc0] ss:$8 sps:$4 sm:$0xff]  }
   0xc   :  { %318 = vmatprep.subr.bf16.mxu0 %v1452_v6  ;;  %v1479_v34 = vld [vmem:[%s2491_s2 + $0xb4] ss:$8 sps:$4 sm:$0xff]   ;;  %v1502_v35 = vld [vmem:[%s2493_s4 + $0x40] ss:$8 sps:$4 sm:$0xff]   ;;  %v1481_v37 = vld [vmem:[%s2491_s2 + $0xb0] ss:$8 sps:$4 sm:$0xff]  }
   0xd   :  { %v1503_v36 = vld [vmem:[%s2493_s4 + $0x34] ss:$8 sps:$4 sm:$0xff]   ;;  %v1482_v38 = vld [vmem:[%s2491_s2 + $0xa4] ss:$8 sps:$4 sm:$0xff]   ;;  %v1505_v39 = vld [vmem:[%s2493_s4 + $0x30] ss:$8 sps:$4 sm:$0xff]  }
   0xe   :  { %680 = vmatpush1.bf16.msra.mxu1 %v1496_v27  ;;  %v1506_v40 = vld [vmem:[%s2493_s4 + $0x24] ss:$8 sps:$4 sm:$0xff]   ;;  %v1484_v41 = vld [vmem:[%s2491_s2 + $0xa0] ss:$8 sps:$4 sm:$0xff]   ;;  %v1485_v43 = vld [vmem:[%s2491_s2 + $0x94] ss:$8 sps:$4 sm:$0xff]  }
   0xf   :  { %319 = vmatpush1.bf16.msra.mxu0 %v1454_v7  ;;  %681 = vmatprep.subr.bf16.mxu1 %v1497_v28  ;;  %v1508_v42 = vld [vmem:[%s2493_s4 + $0x20] ss:$8 sps:$4 sm:$0xff]   ;;  %v1509_v44 = vld [vmem:[%s2493_s4 + $0x14] ss:$8 sps:$4 sm:$0xff]   ;;  %v1487_v45 = vld [vmem:[%s2491_s2 + $0x90] ss:$8 sps:$4 sm:$0xff]  }
  0x10   :  { %320 = vmatprep.subr.bf16.mxu0 %v1455_v8  ;;  %v1511_v46 = vld [vmem:[%s2493_s4 + $0x10] ss:$8 sps:$4 sm:$0xff]   ;;  %v1488_v47 = vld [vmem:[%s2491_s2 + $0x84] ss:$8 sps:$4 sm:$0xff]   ;;  %v1490_v49 = vld [vmem:[%s2491_s2 + $0x80] ss:$8 sps:$4 sm:$0xff]  }
  0x11   :  { %v1512_v48 = vld [vmem:[%s2493_s4 + $0x4] ss:$8 sps:$4 sm:$0xff]   ;;  %v1514_v52 = vld [vmem:[%s2493_s4] ss:$8 sps:$4 sm:$0xff]   ;;  %v41_v53 = vld [vmem:[%s2492_s1 + $0x10] sm:$0xff]  ;;  %vm1362_vm6 = vcmask 1047559  }
  0x12   :  { %682 = vmatpush1.bf16.msra.mxu1 %v1499_v31  ;;  %v23_v50 = vld [vmem:[%s2494_s0] sm:$0xff]  ;;  %v24_v51 = vld [vmem:[%s2494_s0 + $0x8] sm:$0xff]  ;;  %v42_v54 = vld [vmem:[%s2492_s1 + $0x18] sm:$0xff] }
  0x13   :  { %321 = vmatpush1.bf16.msra.mxu0 %v1457_v9  ;;  %683 = vmatprep.subr.bf16.mxu1 %v1500_v32  ;;  %v1515_v55 = vld [vmem:[%s2493_s4 + $0xf4] ss:$8 sps:$4 sm:$0xff]   ;;  %v92_v56 = vpack.c.bf16 %v24_v51, %v23_v50  ;;  %v95_v57 = vpack.c.bf16 %v42_v54, %v41_v53  ;;  %v1517_v58 = vld [vmem:[%s2493_s4 + $0xf0] ss:$8 sps:$4 sm:$0xff]   ;;  %v1518_v59 = vld [vmem:[%s2493_s4 + $0xe4] ss:$8 sps:$4 sm:$0xff]  }
  0x14   :  { %322 = vmatprep.subr.bf16.mxu0 %v1458_v10  ;;  %v25_v60 = vld [vmem:[%s2494_s0 + $0x10] sm:$0xff]  ;;  %v26_v61 = vld [vmem:[%s2494_s0 + $0x18] sm:$0xff]  ;;  %v1520_v62 = vld [vmem:[%s2493_s4 + $0xe0] ss:$8 sps:$4 sm:$0xff]  }
  0x15   :  { %v43_v63 = vld [vmem:[%s2492_s1 + $0x20] sm:$0xff]  ;;  %v44_v0 = vld [vmem:[%s2492_s1 + $0x28] sm:$0xff]  ;;  %v1521_v1 = vld [vmem:[%s2493_s4 + $0xd4] ss:$8 sps:$4 sm:$0xff]   ;;  %v94_v2 = vpack.c.bf16 %v26_v61, %v25_v60 }
  0x16   :  { %684 = vmatpush1.bf16.msra.mxu1 %v1502_v35  ;;  %v97_v3 = vpack.c.bf16 %v44_v0, %v43_v63  ;;  %v1523_v4 = vld [vmem:[%s2493_s4 + $0xd0] ss:$8 sps:$4 sm:$0xff]   ;;  %v1524_v5 = vld [vmem:[%s2493_s4 + $0xc4] ss:$8 sps:$4 sm:$0xff]   ;;  %v1526_v8 = vld [vmem:[%s2493_s4 + $0xc0] ss:$8 sps:$4 sm:$0xff]  }
  0x17   :  { %323 = vmatpush1.bf16.msra.mxu0 %v1460_v11  ;;  %685 = vmatprep.subr.bf16.mxu1 %v1503_v36  ;;  %v27_v6 = vld [vmem:[%s2494_s0 + $0x20] sm:$0xff]  ;;  %v28_v7 = vld [vmem:[%s2494_s0 + $0x28] sm:$0xff]  ;;  %v45_v9 = vld [vmem:[%s2492_s1 + $0x30] sm:$0xff] }
  0x18   :  { %324 = vmatprep.subr.bf16.mxu0 %v1461_v12  ;;  %v46_v10 = vld [vmem:[%s2492_s1 + $0x38] sm:$0xff]  ;;  %v96_v12 = vpack.c.bf16 %v28_v7, %v27_v6  ;;  %v29_v15 = vld [vmem:[%s2494_s0 + $0x30] sm:$0xff]  ;;  %v32_v22 = vld [vmem:[%s2494_s0 + $0x48] sm:$0xff] }
  0x19   :  { %v1527_v11 = vld [vmem:[%s2493_s4 + $0xb4] ss:$8 sps:$4 sm:$0xff]   ;;  %v99_v13 = vpack.c.bf16 %v46_v10, %v45_v9  ;;  %v1529_v14 = vld [vmem:[%s2493_s4 + $0xb0] ss:$8 sps:$4 sm:$0xff]  }
  0x1a   :  { %686 = vmatpush1.bf16.msra.mxu1 %v1505_v39  ;;  %v49_v23 = vld [vmem:[%s2492_s1 + $0x50] sm:$0xff]  ;;  %v34_v28 = vld [vmem:[%s2494_s0 + $0x58] sm:$0xff] }
  0x1b   :  { %325 = vmatpush1.bf16.msra.mxu0 %v1463_v16  ;;  %687 = vmatprep.subr.bf16.mxu1 %v1506_v40  ;;  %v30_v16 = vld [vmem:[%s2494_s0 + $0x38] sm:$0xff]  ;;  %v33_v27 = vld [vmem:[%s2494_s0 + $0x50] sm:$0xff] }
  0x1c   :  { %326 = vmatprep.subr.bf16.mxu0 %v1464_v17  ;;  %v47_v17 = vld [vmem:[%s2492_s1 + $0x40] sm:$0xff]  ;;  %v102_v31 = vpack.c.bf16 %v34_v28, %v33_v27  ;;  %v53_v35 = vld [vmem:[%s2492_s1 + $0x70] sm:$0xff]  ;;  %v54_v36 = vld [vmem:[%s2492_s1 + $0x78] sm:$0xff] }
  0x1d   :  { %v37_v39 = vld [vmem:[%s2494_s0 + $0x70] sm:$0xff]  ;;  %v38_v40 = vld [vmem:[%s2494_s0 + $0x78] sm:$0xff] }
  0x1e   :  { %688 = vmatpush1.bf16.msra.mxu1 %v1508_v42  ;;  %v1530_v42 = vld [vmem:[%s2493_s4 + $0xa4] ss:$8 sps:$4 sm:$0xff]  }
  0x1f   :  { %327 = vmatpush1.bf16.msra.mxu0 %v1466_v18  ;;  %689 = vmatprep.subr.bf16.mxu1 %v1509_v44  ;;  %v48_v18 = vld [vmem:[%s2492_s1 + $0x48] sm:$0xff]  ;;  %v1533_v44 = vld [vmem:[%s2493_s4 + $0x94] ss:$8 sps:$4 sm:$0xff]  }
  0x20   :  { %328 = vmatprep.subr.bf16.mxu0 %v1467_v19  ;;  %v98_v19 = vpack.c.bf16 %v30_v16, %v29_v15 }
  0x22   :  { %690 = vmatpush1.bf16.msra.mxu1 %v1511_v46  ;;  %v1536_v46 = vld [vmem:[%s2493_s4 + $0x84] ss:$8 sps:$4 sm:$0xff]  }
  0x23   :  { %329 = vmatpush2.bf16.msra.mxu0 %v1469_v20  ;;  %691 = vmatprep.subr.bf16.mxu1 %v1512_v48  ;;  %v101_v20 = vpack.c.bf16 %v48_v18, %v47_v17  ;;  %v142_v48 = vlaneseq }
  0x24   :  { %330 = vmatprep.subr.bf16.mxu0 %v1470_v21  ;;  %v31_v21 = vld [vmem:[%s2494_s0 + $0x40] sm:$0xff] }
  0x25   :  { %v100_v25 = vpack.c.bf16 %v32_v22, %v31_v21 }
  0x26   :  { %692 = vmatpush1.bf16.msra.mxu1 %v1514_v52  ;;  %v140_v52 = vld [vmem:[%s2495_s3] sm:$0x3] }
  0x27   :  { %331 = vmatpush2.bf16.msra.mxu0 %v1472_v24  ;;  %693 = vmatprep.subr.bf16.mxu1 %v1515_v55  ;;  %v50_v24 = vld [vmem:[%s2492_s1 + $0x58] sm:$0xff] }
  0x28   :  { %332 = vmatprep.subr.bf16.mxu0 %v1473_v26  ;;  %v103_v26 = vpack.c.bf16 %v50_v24, %v49_v23 }
  0x2a   :  { %694 = vmatpush2.bf16.msra.mxu1 %v1517_v58 }
  0x2b   :  { %333 = vmatpush2.bf16.msra.mxu0 %v1475_v29  ;;  %695 = vmatprep.subr.bf16.mxu1 %v1518_v59  ;;  %v51_v29 = vld [vmem:[%s2492_s1 + $0x60] sm:$0xff] }
  0x2c   :  { %334 = vmatprep.subr.bf16.mxu0 %v1476_v30  ;;  %v52_v30 = vld [vmem:[%s2492_s1 + $0x68] sm:$0xff] }
  0x2d   :  { %v105_v32 = vpack.c.bf16 %v52_v30, %v51_v29 }
  0x2e   :  { %696 = vmatpush2.bf16.msra.mxu1 %v1520_v62 }
  0x2f   :  { %335 = vmatpush2.bf16.msra.mxu0 %v1478_v33  ;;  %697 = vmatprep.subr.bf16.mxu1 %v1521_v1  ;;  %v35_v33 = vld [vmem:[%s2494_s0 + $0x60] sm:$0xff] }
  0x30   :  { %336 = vmatprep.subr.bf16.mxu0 %v1479_v34  ;;  %v36_v34 = vld [vmem:[%s2494_s0 + $0x68] sm:$0xff] }
  0x32   :  { %698 = vmatpush2.bf16.msra.mxu1 %v1523_v4 }
  0x33   :  { %337 = vmatpush2.bf16.msra.mxu0 %v1481_v37  ;;  %699 = vmatprep.subr.bf16.mxu1 %v1524_v5  ;;  %v104_v37 = vpack.c.bf16 %v36_v34, %v35_v33 }
  0x34   :  { %338 = vmatprep.subr.bf16.mxu0 %v1482_v38  ;;  %v107_v38 = vpack.c.bf16 %v54_v36, %v53_v35 }
  0x36   :  { %700 = vmatpush2.bf16.msra.mxu1 %v1526_v8 }
  0x37   :  { %339 = vmatpush2.bf16.msra.mxu0 %v1484_v41  ;;  %701 = vmatprep.subr.bf16.mxu1 %v1527_v11  ;;  %v106_v41 = vpack.c.bf16 %v38_v40, %v37_v39 }
  0x38   :  { %340 = vmatprep.subr.bf16.mxu0 %v1485_v43  ;;  %v1532_v43 = vld [vmem:[%s2493_s4 + $0xa0] ss:$8 sps:$4 sm:$0xff]  }
  0x3a   :  { %702 = vmatpush2.bf16.msra.mxu1 %v1529_v14 }
  0x3b   :  { %341 = vmatpush2.bf16.msra.mxu0 %v1487_v45  ;;  %703 = vmatprep.subr.bf16.mxu1 %v1530_v42  ;;  %v1535_v45 = vld [vmem:[%s2493_s4 + $0x90] ss:$8 sps:$4 sm:$0xff]  }
  0x3c   :  { %342 = vmatprep.subr.bf16.mxu0 %v1488_v47  ;;  %v1538_v47 = vld [vmem:[%s2493_s4 + $0x80] ss:$8 sps:$4 sm:$0xff]  }
  0x3e   :  { %704 = vmatpush2.bf16.msra.mxu1 %v1532_v43 }
  0x3f   :  { %343 = vmatpush2.bf16.msra.mxu0 %v1490_v49  ;;  %705 = vmatprep.subr.bf16.mxu1 %v1533_v44  ;;  %v1990_v49 = vshrl.u32 %v142_v48, 7 }
  0x41   :  { %v148_v50 = vsub.s32 1, %v1990_v49  ;;  %v144_v51 = vsub.s32 0, %v1990_v49 }
  0x42   :  { %345 = vmatmul.mubr.bf16.vlgmr.msra.gmra.mxu0 %v92_v56  ;;  %706 = vmatpush2.bf16.msra.mxu1 %v1535_v45 }
  0x43   :  { %354 = vmatprep.mubr.bf16.mxu0 %v95_v57  ;;  %707 = vmatprep.subr.bf16.mxu1 %v1536_v46  ;;  %v1999_v54 = vrot.slane %v140_v52, %v148_v50  ;;  %v2003_v55 = vrot.slane %v140_v52, %v144_v51 }
  0x46   :  { %708 = vmatpush2.bf16.msra.mxu1 %v1538_v47 }
  0x4a   :  { %355 = vmatmul.mubr.bf16.gmra.mxu0 %v94_v2 }
  0x4b   :  { %364 = vmatprep.mubr.bf16.mxu0 %v97_v3 }
  0x52   :  { %365 = vmatmul.mubr.bf16.gmra.mxu0 %v96_v12 }
  0x53   :  { %374 = vmatprep.mubr.bf16.mxu0 %v99_v13 }
  0x5a   :  { %375 = vmatmul.mubr.bf16.gmra.mxu0 %v98_v19 }
  0x5b   :  { %384 = vmatprep.mubr.bf16.mxu0 %v101_v20 }
  0x62   :  { %385 = vmatmul.mubr.bf16.gmra.mxu0 %v100_v25 }
  0x63   :  { %394 = vmatprep.mubr.bf16.mxu0 %v103_v26 }
  0x6a   :  { %395 = vmatmul.mubr.bf16.gmra.mxu0 %v102_v31 }
  0x6b   :  { %404 = vmatprep.mubr.bf16.mxu0 %v105_v32 }
  0x72   :  { %405 = vmatmul.mubr.bf16.gmra.mxu0 %v104_v37 }
  0x73   :  { %414 = vmatprep.mubr.bf16.mxu0 %v107_v38 }
  0x7a   :  { %415 = vmatmul.mubr.bf16.gmra.mxu0 %v106_v41 }
 0x102   :  { %v346_v53 = vpop.f32.mrf.mxu0 }
 0x103   :  { %v347_v60 = vadd.f32 %v346_v53, %v2003_v55 }
 0x104   :  { %v348_v56 = vpop.f32.mrf.mxu0 }
 0x105   :  { %v349_v58 = vadd.f32 %v348_v56, %v1999_v54  ;;  %v425_v3 = vmax.f32 %v347_v60, 0.0 }
 0x106   :  { %v350_v57 = vpop.f32.mrf.mxu0 }
 0x107   :  { %v351_v59 = vadd.f32 %v350_v57, %v2003_v55  ;;  %v426_v1 = vmax.f32 %v349_v58, 0.0 }
 0x108   :  { %v352_v61 = vpop.f32.mrf.mxu0 }
 0x109   :  { %v353_v62 = vadd.f32 %v352_v61, %v1999_v54  ;;  %v427_v63 = vmax.f32 %v351_v59, 0.0 }
 0x10a   :  { %v356_v0 = vpop.f32.mrf.mxu0 }
 0x10b   :  { %v428_v2 = vmax.f32 %v353_v62, 0.0  ;;  %v457_v6 = vpack.c.bf16 %v427_v63, %v425_v3  ;;  %v357_v10 = vadd.f32 %v356_v0, %v2003_v55 }
 0x10c   :  { %v358_v4 = vpop.f32.mrf.mxu0 }
 0x10d   :  { %v458_v5 = vpack.c.bf16 %v428_v2, %v426_v1  ;;  %v359_v8 = vadd.f32 %v358_v4, %v1999_v54  ;;  %v429_v17 = vmax.f32 %v357_v10, 0.0 }
 0x10e   :  { %v360_v7 = vpop.f32.mrf.mxu0 }
 0x10f   :  { %v361_v9 = vadd.f32 %v360_v7, %v2003_v55  ;;  %709 = vmatprep.mubr.bf16.mxu1 %v458_v5  ;;  %v430_v15 = vmax.f32 %v359_v8, 0.0 }
 0x110   :  { %v362_v11 = vpop.f32.mrf.mxu0  ;;  %710 = vmatmul.mubr.bf16.vlgmr.msra.gmra.mxu1 %v457_v6 }
 0x111   :  { %v363_v12 = vadd.f32 %v362_v11, %v1999_v54  ;;  %v431_v13 = vmax.f32 %v361_v9, 0.0 }
 0x112   :  { %v366_v14 = vpop.f32.mrf.mxu0 }
 0x113   :  { %v432_v16 = vmax.f32 %v363_v12, 0.0  ;;  %v459_v20 = vpack.c.bf16 %v431_v13, %v429_v17  ;;  %v367_v24 = vadd.f32 %v366_v14, %v2003_v55 }
 0x114   :  { %v368_v18 = vpop.f32.mrf.mxu0 }
 0x115   :  { %v460_v19 = vpack.c.bf16 %v432_v16, %v430_v15  ;;  %v369_v22 = vadd.f32 %v368_v18, %v1999_v54  ;;  %v433_v31 = vmax.f32 %v367_v24, 0.0 }
 0x116   :  { %v370_v21 = vpop.f32.mrf.mxu0 }
 0x117   :  { %v371_v23 = vadd.f32 %v370_v21, %v2003_v55  ;;  %719 = vmatprep.mubr.bf16.mxu1 %v460_v19  ;;  %v434_v29 = vmax.f32 %v369_v22, 0.0 }
 0x118   :  { %v372_v25 = vpop.f32.mrf.mxu0  ;;  %720 = vmatmul.mubr.bf16.gmra.mxu1 %v459_v20 }
 0x119   :  { %v373_v26 = vadd.f32 %v372_v25, %v1999_v54  ;;  %v435_v27 = vmax.f32 %v371_v23, 0.0 }
 0x11a   :  { %v376_v28 = vpop.f32.mrf.mxu0 }
 0x11b   :  { %v436_v30 = vmax.f32 %v373_v26, 0.0  ;;  %v461_v34 = vpack.c.bf16 %v435_v27, %v433_v31  ;;  %v377_v38 = vadd.f32 %v376_v28, %v2003_v55 }
 0x11c   :  { %v378_v32 = vpop.f32.mrf.mxu0 }
 0x11d   :  { %v462_v33 = vpack.c.bf16 %v436_v30, %v434_v29  ;;  %v379_v36 = vadd.f32 %v378_v32, %v1999_v54  ;;  %v437_v45 = vmax.f32 %v377_v38, 0.0 }
 0x11e   :  { %v380_v35 = vpop.f32.mrf.mxu0 }
 0x11f   :  { %v381_v37 = vadd.f32 %v380_v35, %v2003_v55  ;;  %729 = vmatprep.mubr.bf16.mxu1 %v462_v33  ;;  %v438_v43 = vmax.f32 %v379_v36, 0.0 }
 0x120   :  { %v382_v39 = vpop.f32.mrf.mxu0  ;;  %730 = vmatmul.mubr.bf16.gmra.mxu1 %v461_v34 }
 0x121   :  { %v383_v40 = vadd.f32 %v382_v39, %v1999_v54  ;;  %v439_v41 = vmax.f32 %v381_v37, 0.0 }
 0x122   :  { %v386_v42 = vpop.f32.mrf.mxu0 }
 0x123   :  { %v440_v44 = vmax.f32 %v383_v40, 0.0  ;;  %v463_v48 = vpack.c.bf16 %v439_v41, %v437_v45  ;;  %v387_v57 = vadd.f32 %v386_v42, %v2003_v55 }
 0x124   :  { %v388_v46 = vpop.f32.mrf.mxu0 }
 0x125   :  { %v464_v47 = vpack.c.bf16 %v440_v44, %v438_v43  ;;  %v389_v53 = vadd.f32 %v388_v46, %v1999_v54  ;;  %v441_v0 = vmax.f32 %v387_v57, 0.0  ;;  %v505_v44 = vld [vmem:[%s2496_s5] sm:$0x3] }
 0x126   :  { %v390_v52 = vpop.f32.mrf.mxu0 }
 0x127   :  { %v391_v56 = vadd.f32 %v390_v52, %v2003_v55  ;;  %739 = vmatprep.mubr.bf16.mxu1 %v464_v47  ;;  %v442_v62 = vmax.f32 %v389_v53, 0.0 }
 0x128   :  { %v392_v58 = vpop.f32.mrf.mxu0  ;;  %740 = vmatmul.mubr.bf16.gmra.mxu1 %v463_v48 }
 0x129   :  { %v393_v59 = vadd.f32 %v392_v58, %v1999_v54  ;;  %v443_v60 = vmax.f32 %v391_v56, 0.0 }
 0x12a   :  { %v396_v61 = vpop.f32.mrf.mxu0 }
 0x12b   :  { %v444_v63 = vmax.f32 %v393_v59, 0.0  ;;  %v465_v3 = vpack.c.bf16 %v443_v60, %v441_v0  ;;  %v397_v7 = vadd.f32 %v396_v61, %v2003_v55  ;;  %v2048_v60 = vrot.slane %v505_v44, %v148_v50 }
 0x12c   :  { %v398_v1 = vpop.f32.mrf.mxu0 }
 0x12d   :  { %v466_v2 = vpack.c.bf16 %v444_v63, %v442_v62  ;;  %v399_v5 = vadd.f32 %v398_v1, %v1999_v54  ;;  %v445_v14 = vmax.f32 %v397_v7, 0.0 }
 0x12e   :  { %v400_v4 = vpop.f32.mrf.mxu0 }
 0x12f   :  { %v401_v6 = vadd.f32 %v400_v4, %v2003_v55  ;;  %749 = vmatprep.mubr.bf16.mxu1 %v466_v2  ;;  %v446_v12 = vmax.f32 %v399_v5, 0.0 }
 0x130   :  { %v402_v8 = vpop.f32.mrf.mxu0  ;;  %750 = vmatmul.mubr.bf16.gmra.mxu1 %v465_v3 }
 0x131   :  { %v403_v9 = vadd.f32 %v402_v8, %v1999_v54  ;;  %v447_v10 = vmax.f32 %v401_v6, 0.0 }
 0x132   :  { %v406_v11 = vpop.f32.mrf.mxu0 }
 0x133   :  { %v448_v13 = vmax.f32 %v403_v9, 0.0  ;;  %v467_v17 = vpack.c.bf16 %v447_v10, %v445_v14  ;;  %v407_v21 = vadd.f32 %v406_v11, %v2003_v55 }
 0x134   :  { %v408_v15 = vpop.f32.mrf.mxu0 }
 0x135   :  { %v468_v16 = vpack.c.bf16 %v448_v13, %v446_v12  ;;  %v409_v19 = vadd.f32 %v408_v15, %v1999_v54  ;;  %v449_v28 = vmax.f32 %v407_v21, 0.0 }
 0x136   :  { %v410_v18 = vpop.f32.mrf.mxu0 }
 0x137   :  { %v411_v20 = vadd.f32 %v410_v18, %v2003_v55  ;;  %759 = vmatprep.mubr.bf16.mxu1 %v468_v16  ;;  %v450_v26 = vmax.f32 %v409_v19, 0.0 }
 0x138   :  { %v412_v22 = vpop.f32.mrf.mxu0  ;;  %760 = vmatmul.mubr.bf16.gmra.mxu1 %v467_v17 }
 0x139   :  { %v413_v23 = vadd.f32 %v412_v22, %v1999_v54  ;;  %v451_v24 = vmax.f32 %v411_v20, 0.0 }
 0x13a   :  { %v416_v25 = vpop.f32.mrf.mxu0 }
 0x13b   :  { %v452_v27 = vmax.f32 %v413_v23, 0.0  ;;  %v469_v31 = vpack.c.bf16 %v451_v24, %v449_v28  ;;  %v417_v35 = vadd.f32 %v416_v25, %v2003_v55 }
 0x13c   :  { %v418_v29 = vpop.f32.mrf.mxu0 }
 0x13d   :  { %v470_v30 = vpack.c.bf16 %v452_v27, %v450_v26  ;;  %v419_v33 = vadd.f32 %v418_v29, %v1999_v54  ;;  %v453_v41 = vmax.f32 %v417_v35, 0.0 }
 0x13e   :  { %v420_v32 = vpop.f32.mrf.mxu0 }
 0x13f   :  { %v421_v34 = vadd.f32 %v420_v32, %v2003_v55  ;;  %769 = vmatprep.mubr.bf16.mxu1 %v470_v30  ;;  %v454_v39 = vmax.f32 %v419_v33, 0.0  ;;  %v2042_v55 = vrot.slane %v505_v44, %v144_v51 }
 0x140   :  { %v422_v36 = vpop.f32.mrf.mxu0  ;;  %770 = vmatmul.mubr.bf16.gmra.mxu1 %v469_v31 }
 0x141   :  { %v423_v37 = vadd.f32 %v422_v36, %v1999_v54  ;;  %v455_v38 = vmax.f32 %v421_v34, 0.0 }
 0x143   :  { %v456_v40 = vmax.f32 %v423_v37, 0.0  ;;  %v471_v43 = vpack.c.bf16 %v455_v38, %v453_v41 }
 0x145   :  { %v472_v42 = vpack.c.bf16 %v456_v40, %v454_v39 }
 0x147   :  { %779 = vmatprep.mubr.bf16.mxu1 %v472_v42 }
 0x148   :  { %780 = vmatmul.mubr.bf16.gmra.mxu1 %v471_v43 }
 0x1d0   :  { %v711_v45 = vpop.f32.mrf.mxu1 }
 0x1d1   :  { %v712_v48 = vadd.f32 %v711_v45, %v2042_v55 }
 0x1d2   :  { %v713_v46 = vpop.f32.mrf.mxu1 }
 0x1d3   :  { %v2054_v0 = vadd.f32 %v713_v46, %v2048_v60 }
 0x1d4   :  { %v715_v47 = vpop.f32.mrf.mxu1 }
 0x1d5   :  { %v716_v54 = vadd.f32 %v715_v47, %v2042_v55 }
 0x1d6   :  { %v717_v52 = vpop.f32.mrf.mxu1 }
 0x1d7   :  { %v822_v53 = vmax.f32 %v712_v48, %v716_v54  ;;  %v2051_v51 = vadd.f32 %v717_v52, %v2048_v60 }
 0x1d8   :  { %v721_v56 = vpop.f32.mrf.mxu1 }
 0x1d9   :  { %v823_v58 = vrot.slane %v822_v53, 4  ;;  %v829_v2 = vmax.f32 %v2054_v0, %v2051_v51  ;;  %v2062_v8 = vadd.f32 %v721_v56, %v2042_v55 }
 0x1da   :  { %v723_v57 = vpop.f32.mrf.mxu1 }
 0x1db   :  { %v824_v62 = vmax.f32 %v822_v53, %v823_v58  ;;  %v830_v6 = vrot.slane %v829_v2, 4  ;;  %v2070_v12 = vadd.f32 %v723_v57, %v2048_v60 }
 0x1dc   :  { %v725_v59 = vpop.f32.mrf.mxu1 }
 0x1dd   :  { %v825_v3 = vrot.slane %v824_v62, 2  ;;  %v2059_v49 = vadd.f32 %v725_v59, %v2042_v55  ;;  %v831_v11 = vmax.f32 %v829_v2, %v830_v6 }
 0x1de   :  { %v727_v61 = vpop.f32.mrf.mxu1 }
 0x1df   :  { %v826_v50 = vmax.f32 %v824_v62, %v825_v3  ;;  %v2065_v9 = vadd.f32 %v727_v61, %v2048_v60  ;;  %v836_v13 = vmax.f32 %v2062_v8, %v2059_v49  ;;  %v832_v18 = vrot.slane %v831_v11, 2 }
 0x1e0   :  { %v731_v63 = vpop.f32.mrf.mxu1 }
 0x1e1   :  { %v827_v14 = vrot.slane %v826_v50, 1  ;;  %v843_v16 = vmax.f32 %v2070_v12, %v2065_v9  ;;  %v837_v19 = vrot.slane %v836_v13, 4  ;;  %v833_v24 = vmax.f32 %v831_v11, %v832_v18 }
 0x1e2   :  { %v733_v1 = vpop.f32.mrf.mxu1  ;;  %v2082_v30 = vadd.f32 %v731_v63, %v2042_v55 }
 0x1e3   :  { %v828_v20 = vmax.f32 %v826_v50, %v827_v14  ;;  %v844_v22 = vrot.slane %v843_v16, 4  ;;  %v838_v25 = vmax.f32 %v836_v13, %v837_v19  ;;  %v834_v33 = vrot.slane %v833_v24, 1 }
 0x1e4   :  { %v735_v4 = vpop.f32.mrf.mxu1  ;;  %v2090_v37 = vadd.f32 %v733_v1, %v2048_v60 }
 0x1e5   :  { %v2079_v26 = vadd.f32 %v735_v4, %v2042_v55  ;;  %v934_v27 = vsub.f32 %v712_v48, %v828_v20  ;;  %v936_v28 = vsub.f32 %v716_v54, %v828_v20  ;;  %v845_v29 = vmax.f32 %v843_v16, %v844_v22 }
 0x1e6   :  { %v737_v5 = vpop.f32.mrf.mxu1  ;;  %v839_v34 = vrot.slane %v838_v25, 2  ;;  %v835_v42 = vmax.f32 %v833_v24, %v834_v33 }
 0x1e7   :  { %v2085_v32 = vadd.f32 %v737_v5, %v2048_v60  ;;  %v850_v35 = vmax.f32 %v2082_v30, %v2079_v26  ;;  %v966_v36 = vmul.f32 1.442695, %v934_v27  ;;  %v970_v38 = vmul.f32 1.442695, %v936_v28 }
 0x1e8   :  { %v741_v7 = vpop.f32.mrf.mxu1  ;;  %v846_v39 = vrot.slane %v845_v29, 2  ;;  %v840_v43 = vmax.f32 %v838_v25, %v839_v34  ;;  %v935_v48 = vsub.f32 %v2054_v0, %v835_v42  ;;  %v937_v61 = vsub.f32 %v2051_v51, %v835_v42 }
 0x1e9   :  { %v857_v41 = vmax.f32 %v2090_v37, %v2085_v32  ;;  %v851_v44 = vrot.slane %v850_v35, 4  ;;  %1539 = vpow2.f32 %v966_v36  ;;  %v2099_v56 = vadd.f32 %v741_v7, %v2042_v55 }
 0x1ea   :  { %v2067_v10 = vpop.f32.mrf.mxu1  ;;  %1541 = vpow2.f32 %v970_v38  ;;  %v847_v45 = vmax.f32 %v845_v29, %v846_v39  ;;  %v841_v52 = vrot.slane %v840_v43, 1  ;;  %v968_v1 = vmul.f32 1.442695, %v935_v48 }
 0x1eb   :  { %v858_v54 = vrot.slane %v857_v41, 4  ;;  %v852_v53 = vmax.f32 %v850_v35, %v851_v44  ;;  %v972_v7 = vmul.f32 1.442695, %v937_v61 }
 0x1ec   :  { %v745_v15 = vpop.f32.mrf.mxu1  ;;  %v848_v57 = vrot.slane %v847_v45, 1  ;;  %v842_v2 = vmax.f32 %v840_v43, %v841_v52  ;;  %1543 = vpow2.f32 %v968_v1 }
 0x1ed   :  { %v2095_v46 = vadd.f32 %v745_v15, %v2042_v55  ;;  %v859_v62 = vmax.f32 %v857_v41, %v858_v54  ;;  %v853_v3 = vrot.slane %v852_v53, 2  ;;  %v2118_v15 = vadd.f32 %v2067_v10, %v2048_v60 }
 0x1ee   :  { %v747_v17 = vpop.f32.mrf.mxu1  ;;  %v849_v4 = vmax.f32 %v847_v45, %v848_v57  ;;  %v938_v13 = vsub.f32 %v2062_v8, %v842_v2  ;;  %v940_v16 = vsub.f32 %v2059_v49, %v842_v2  ;;  %1545 = vpow2.f32 %v972_v7 }
 0x1ef   :  { %v864_v58 = vmax.f32 %v2099_v56, %v2095_v46  ;;  %v2111_v6 = vadd.f32 %v747_v17, %v2048_v60  ;;  %v860_v11 = vrot.slane %v859_v62, 2  ;;  %v854_v14 = vmax.f32 %v852_v53, %v853_v3 }
 0x1f0   :  { %v751_v21 = vpop.f32.mrf.mxu1  ;;  %v939_v8 = vsub.f32 %v2070_v12, %v849_v4  ;;  %v974_v29 = vmul.f32 1.442695, %v938_v13 }
 0x1f1   :  { %v2108_v0 = vadd.f32 %v751_v21, %v2042_v55  ;;  %v865_v5 = vrot.slane %v864_v58, 4  ;;  %v941_v21 = vsub.f32 %v2065_v9, %v849_v4  ;;  %v871_v10 = vmax.f32 %v2118_v15, %v2111_v6 }
 0x1f2   :  { %v2076_v23 = vpop.f32.mrf.mxu1  ;;  %v861_v24 = vmax.f32 %v859_v62, %v860_v11  ;;  %v855_v12 = vrot.slane %v854_v14, 1  ;;  %v976_v35 = vmul.f32 1.442695, %v939_v8  ;;  %1547 = vpow2.f32 %v974_v29 }
 0x1f3   :  { %v866_v22 = vmax.f32 %v864_v58, %v865_v5  ;;  %v2140_v25 = vadd.f32 %v2076_v23, %v2048_v60  ;;  %v872_v38 = vrot.slane %v871_v10, 4  ;;  %v980_v39 = vmul.f32 1.442695, %v941_v21 }
 0x1f4   :  { %v755_v31 = vpop.f32.mrf.mxu1  ;;  %v856_v42 = vmax.f32 %v854_v14, %v855_v12 }
 0x1f5   :  { %v2105_v63 = vadd.f32 %v755_v31, %v2042_v55  ;;  %v978_v31 = vmul.f32 1.442695, %v940_v16  ;;  %v867_v36 = vrot.slane %v866_v22, 2  ;;  %v873_v48 = vmax.f32 %v871_v10, %v872_v38 }
 0x1f6   :  { %v757_v40 = vpop.f32.mrf.mxu1  ;;  %v2130_v20 = vpop.eup %1539  ;;  %v942_v58 = vsub.f32 %v2082_v30, %v856_v42  ;;  %v944_v62 = vsub.f32 %v2079_v26, %v856_v42 }
 0x1f7   :  { %v878_v51 = vmax.f32 %v2108_v0, %v2105_v63  ;;  %v2122_v18 = vadd.f32 %v757_v40, %v2048_v60  ;;  %v2136_v49 = vpop.eup %1541  ;;  %v862_v40 = vrot.slane %v861_v24, 1  ;;  %1549 = vpow2.f32 %v978_v31 }
 0x1f8   :  { %v761_v47 = vpop.f32.mrf.mxu1  ;;  %v1030_v34 = vadd.f32 %v2136_v49, %v2130_v20  ;;  %1551 = vpow2.f32 %v976_v35  ;;  %v868_v54 = vmax.f32 %v866_v22, %v867_v36  ;;  %v986_v30 = vmul.f32 1.442695, %v944_v62 }
 0x1f9   :  { %v2125_v17 = vadd.f32 %v761_v47, %v2042_v55  ;;  %v879_v27 = vrot.slane %v878_v51, 4  ;;  %v885_v9 = vmax.f32 %v2140_v25, %v2122_v18  ;;  %1553 = vpow2.f32 %v980_v39  ;;  %v2155_v61 = vpop.eup %1543 }
 0x1fa   :  { %v763_v59 = vpop.f32.mrf.mxu1  ;;  %v1031_v47 = vrot.slane %v1030_v34, 4  ;;  %v863_v52 = vmax.f32 %v861_v24, %v862_v40  ;;  %v869_v5 = vrot.slane %v868_v54, 1 }
 0x1fb   :  { %v880_v41 = vmax.f32 %v878_v51, %v879_v27  ;;  %v886_v43 = vrot.slane %v885_v9, 4  ;;  %v2152_v57 = vadd.f32 %v763_v59, %v2048_v60  ;;  %v982_v51 = vmul.f32 1.442695, %v942_v58  ;;  %v2162_v13 = vpop.eup %1545 }
 0x1fc   :  { %v765_v50 = vpop.f32.mrf.mxu1  ;;  %v1032_v4 = vadd.f32 %v1031_v47, %v1030_v34  ;;  %v943_v7 = vsub.f32 %v2090_v37, %v863_v52  ;;  %v945_v59 = vsub.f32 %v2085_v32, %v863_v52  ;;  %v870_v21 = vmax.f32 %v868_v54, %v869_v5 }
 0x1fd   :  { %v2128_v19 = vadd.f32 %v765_v50, %v2042_v55  ;;  %v881_v53 = vrot.slane %v880_v41, 2  ;;  %v887_v1 = vmax.f32 %v885_v9, %v886_v43  ;;  %v874_v50 = vrot.slane %v873_v48, 2 }
 0x1fe   :  { %v767_v23 = vpop.f32.mrf.mxu1  ;;  %v1033_v8 = vrot.slane %v1032_v4, 2  ;;  %v984_v10 = vmul.f32 1.442695, %v943_v7  ;;  %v1037_v27 = vadd.f32 %v2162_v13, %v2155_v61  ;;  %1555 = vpow2.f32 %v982_v51 }
 0x1ff   :  { %v892_v28 = vmax.f32 %v2125_v17, %v2128_v19  ;;  %v2149_v45 = vadd.f32 %v767_v23, %v2048_v60  ;;  %v882_v11 = vmax.f32 %v880_v41, %v881_v53  ;;  %v888_v14 = vrot.slane %v887_v1, 2 }
 0x200   :  { %v875_v22 = vmax.f32 %v873_v48, %v874_v50  ;;  %v988_v37 = vmul.f32 1.442695, %v945_v59  ;;  %1557 = vpow2.f32 %v986_v30  ;;  %v1034_v9 = vadd.f32 %v1033_v8, %v1032_v4  ;;  %v771_v52 = vpop.f32.mrf.mxu1 }
 0x201   :  { %v893_v33 = vrot.slane %v892_v28, 4  ;;  %v899_v3 = vmax.f32 %v2152_v57, %v2149_v45  ;;  %v883_v24 = vrot.slane %v882_v11, 1  ;;  %v889_v32 = vmax.f32 %v887_v1, %v888_v14 }
 0x202   :  { %v876_v34 = vrot.slane %v875_v22, 1  ;;  %1559 = vpow2.f32 %v984_v10  ;;  %v948_v36 = vsub.f32 %v2095_v46, %v870_v21  ;;  %v1038_v39 = vrot.slane %v1037_v27, 4 }
 0x203   :  { %v894_v44 = vmax.f32 %v892_v28, %v893_v33  ;;  %v900_v26 = vrot.slane %v899_v3, 4  ;;  %v2166_v28 = vpop.eup %1547  ;;  %v946_v33 = vsub.f32 %v2099_v56, %v870_v21  ;;  %v884_v38 = vmax.f32 %v882_v11, %v883_v24 }
 0x204   :  { %v2168_v31 = vpop.eup %1549  ;;  %1561 = vpow2.f32 %v988_v37  ;;  %v890_v41 = vrot.slane %v889_v32, 1  ;;  %v877_v56 = vmax.f32 %v875_v22, %v876_v34  ;;  %v994_v48 = vmul.f32 1.442695, %v948_v36 }
 0x205   :  { %v895_v2 = vrot.slane %v894_v44, 2  ;;  %v901_v12 = vmax.f32 %v899_v3, %v900_v26  ;;  %v2171_v35 = vpop.eup %1551  ;;  %v1044_v40 = vadd.f32 %v2168_v31, %v2166_v28  ;;  %v990_v47 = vmul.f32 1.442695, %v946_v33 }
 0x206   :  { %v2174_v23 = vpop.eup %1553  ;;  %v950_v46 = vsub.f32 %v2108_v0, %v884_v38  ;;  %v1039_v53 = vadd.f32 %v1038_v39, %v1037_v27  ;;  %v952_v58 = vsub.f32 %v2105_v63, %v884_v38  ;;  %v891_v1 = vmax.f32 %v889_v32, %v890_v41  ;;  %v773_v0 = vpop.f32.mrf.mxu1 }
 0x207   :  { %v896_v16 = vmax.f32 %v894_v44, %v895_v2  ;;  %v902_v43 = vrot.slane %v901_v12, 2  ;;  %v1035_v44 = vrot.slane %v1034_v9, 1  ;;  %v1051_v54 = vadd.f32 %v2174_v23, %v2171_v35 }
 0x208   :  { %v1045_v62 = vrot.slane %v1044_v40, 4  ;;  %1563 = vpow2.f32 %v990_v47  ;;  %v947_v5 = vsub.f32 %v2118_v15, %v877_v56  ;;  %v998_v11 = vmul.f32 1.442695, %v950_v46  ;;  %v775_v24 = vpop.f32.mrf.mxu1 }
 0x209   :  { %v897_v29 = vrot.slane %v896_v16, 1  ;;  %v903_v3 = vmax.f32 %v901_v12, %v902_v43  ;;  %v1036_v4 = vadd.f32 %v1035_v44, %v1034_v9  ;;  %v1052_v7 = vrot.slane %v1051_v54, 4 }
 0x20a   :  { %1565 = vpow2.f32 %v994_v48  ;;  %v949_v59 = vsub.f32 %v2111_v6, %v877_v56  ;;  %v1002_v30 = vmul.f32 1.442695, %v952_v58  ;;  %v1046_v14 = vadd.f32 %v1045_v62, %v1044_v40  ;;  %v777_v39 = vpop.f32.mrf.mxu1 }
 0x20b   :  { %v898_v42 = vmax.f32 %v896_v16, %v897_v29  ;;  %v904_v51 = vrot.slane %v903_v3, 1  ;;  %v2186_v63 = vpop.eup %1555  ;;  %1567 = vrcp.f32 %v1036_v4  ;;  %v953_v15 = vsub.f32 %v2122_v18, %v891_v1 }
 0x20c   :  { %v1040_v21 = vrot.slane %v1039_v53, 2  ;;  %v1053_v22 = vadd.f32 %v1052_v7, %v1051_v54  ;;  %v992_v10 = vmul.f32 1.442695, %v947_v5  ;;  %1569 = vpow2.f32 %v998_v11  ;;  %v781_v48 = vpop.f32.mrf.mxu1 }
 0x20d   :  { %v954_v2 = vsub.f32 %v2125_v17, %v898_v42  ;;  %v956_v50 = vsub.f32 %v2128_v19, %v898_v42  ;;  %v951_v17 = vsub.f32 %v2140_v25, %v891_v1  ;;  %v905_v26 = vmax.f32 %v903_v3, %v904_v51  ;;  %v2189_v8 = vpop.eup %1557 }
 0x20e   :  { %v996_v27 = vmul.f32 1.442695, %v949_v59  ;;  %1571 = vpow2.f32 %v1002_v30  ;;  %v1047_v32 = vrot.slane %v1046_v14, 2  ;;  %v1058_v29 = vadd.f32 %v2189_v8, %v2186_v63  ;;  %v783_v11 = vpop.f32.mrf.mxu1 }
 0x20f   :  { %v1006_v16 = vmul.f32 1.442695, %v954_v2  ;;  %v1010_v19 = vmul.f32 1.442695, %v956_v50  ;;  %v2192_v6 = vpop.eup %1559  ;;  %v955_v37 = vsub.f32 %v2152_v57, %v905_v26  ;;  %v1000_v12 = vmul.f32 1.442695, %v951_v17 }
 0x210   :  { %v1004_v18 = vmul.f32 1.442695, %v953_v15  ;;  %v2200_v9 = vadd.f32 %v775_v24, %v2042_v55  ;;  %v1041_v33 = vadd.f32 %v1040_v21, %v1039_v53  ;;  %v1054_v34 = vrot.slane %v1053_v22, 2 }
 0x211   :  { %v2195_v25 = vpop.eup %1561  ;;  %1573 = vpow2.f32 %v1006_v16  ;;  %v957_v36 = vsub.f32 %v2149_v45, %v905_v26  ;;  %v1008_v57 = vmul.f32 1.442695, %v955_v37  ;;  %v2204_v38 = vadd.f32 %v771_v52, %v2042_v55 }
 0x212   :  { %1575 = vpow2.f32 %v1010_v19  ;;  %v1048_v40 = vadd.f32 %v1047_v32, %v1046_v14  ;;  %v1059_v41 = vrot.slane %v1058_v29, 4  ;;  %v1065_v42 = vadd.f32 %v2195_v25, %v2192_v6 }
 0x213   :  { %1577 = vpow2.f32 %v992_v10  ;;  %v906_v43 = vmax.f32 %v2204_v38, %v2200_v9  ;;  %v1055_v47 = vadd.f32 %v1054_v34, %v1053_v22  ;;  %v1042_v45 = vrot.slane %v1041_v33, 1 }
 0x214   :  { %1579 = vpow2.f32 %v996_v27  ;;  %v1012_v54 = vmul.f32 1.442695, %v957_v36  ;;  %v1049_v46 = vrot.slane %v1048_v40, 1  ;;  %v1060_v52 = vadd.f32 %v1059_v41, %v1058_v29  ;;  %v785_v27 = vpop.f32.mrf.mxu1 }
 0x215   :  { %1581 = vpow2.f32 %v1000_v12  ;;  %v2210_v44 = vpop.eup %1563  ;;  %v1066_v53 = vrot.slane %v1065_v42, 4  ;;  %v907_v58 = vrot.slane %v906_v43, 4  ;;  %v1056_v1 = vrot.slane %v1055_v47, 1 }
 0x216   :  { %1583 = vpow2.f32 %v1004_v18  ;;  %v2217_v3 = vadd.f32 %v773_v0, %v2048_v60  ;;  %v2220_v4 = vadd.f32 %v777_v39, %v2048_v60  ;;  %v1043_v50 = vadd.f32 %v1042_v45, %v1041_v33  ;;  %v787_v45 = vpop.f32.mrf.mxu1 }
 0x217   :  { %v2212_v56 = vpop.eup %1565  ;;  %1585 = vpow2.f32 %v1008_v57  ;;  %v908_v7 = vmax.f32 %v906_v43, %v907_v58  ;;  %v1050_v59 = vadd.f32 %v1049_v46, %v1048_v40  ;;  %v1061_v30 = vrot.slane %v1060_v52, 2 }
 0x218   :  { %1587 = vpow2.f32 %v1012_v54  ;;  %v1568_v62 = vpop.eup %1567  ;;  %v1072_v2 = vadd.f32 %v2212_v56, %v2210_v44  ;;  %v1067_v14 = vadd.f32 %v1066_v53, %v1065_v42  ;;  %v913_v17 = vmax.f32 %v2217_v3, %v2220_v4 }
 0x219   :  { %v2222_v5 = vpop.eup %1569  ;;  %v909_v0 = vrot.slane %v908_v7, 2  ;;  %v1057_v15 = vadd.f32 %v1056_v1, %v1055_v47  ;;  %1589 = vrcp.f32 %v1043_v50  ;;  %v2238_v32 = vadd.f32 %v1061_v30, %v1060_v52 }
 0x21a   :  { %v1073_v19 = vrot.slane %v1072_v2, 4  ;;  %v914_v24 = vrot.slane %v913_v17, 4  ;;  %1591 = vrcp.f32 %v1050_v59  ;;  %v1068_v29 = vrot.slane %v1067_v14, 2 }
 0x21b   :  { %v2224_v51 = vpop.eup %1571  ;;  %v910_v10 = vmax.f32 %v908_v7, %v909_v0  ;;  %v1158_v18 = vmul.f32 %v1568_v62, %v2130_v20  ;;  %1593 = vrcp.f32 %v1057_v15  ;;  %v2248_v40 = vadd.f32 %v781_v48, %v2042_v55 }
 0x21c   :  { %v1086_v22 = vadd.f32 %v2224_v51, %v2222_v5  ;;  %v915_v36 = vmax.f32 %v913_v17, %v914_v24  ;;  %v1074_v39 = vadd.f32 %v1073_v19, %v1072_v2  ;;  %v2251_v41 = vadd.f32 %v785_v27, %v2042_v55  ;;  %v1635_v55 = vld [vmem:[%s2494_s0] sm:$0xff] }
 0x21d   :  { %v911_v34 = vrot.slane %v910_v10, 1  ;;  %v1160_v46 = vmul.f32 %v1568_v62, %v2136_v49  ;;  %v1063_v52 = vrot.slane %v2238_v32, 1  ;;  %v1069_v53 = vadd.f32 %v1068_v29, %v1067_v14 }
 0x21e   :  { %v2228_v16 = vpop.eup %1573  ;;  %v1087_v43 = vrot.slane %v1086_v22, 4  ;;  %v916_v47 = vrot.slane %v915_v36, 2  ;;  %v920_v48 = vmax.f32 %v2248_v40, %v2251_v41  ;;  %v2264_v58 = vmul.f32 %v1635_v55, %v1158_v18 }
 0x21f   :  { %v2230_v26 = vpop.eup %1575  ;;  %v912_v20 = vmax.f32 %v910_v10, %v911_v34  ;;  %v2273_v30 = vadd.f32 %v787_v45, %v2048_v60  ;;  %v1075_v14 = vrot.slane %v1074_v39, 2  ;;  %v1636_v34 = vld [vmem:[%s2494_s0 + $0x8] sm:$0xff] }
 0x220   :  { %v2232_v21 = vpop.eup %1577  ;;  %v1100_v33 = vadd.f32 %v2230_v26, %v2228_v16  ;;  %v917_v62 = vmax.f32 %v915_v36, %v916_v47  ;;  %v921_v59 = vrot.slane %v920_v48, 4  ;;  %v1088_v0 = vadd.f32 %v1087_v43, %v1086_v22 }
 0x221   :  { %v2236_v37 = vpop.eup %1579  ;;  %v958_v50 = vsub.f32 %v2204_v38, %v912_v20  ;;  %v960_v49 = vsub.f32 %v2200_v9, %v912_v20  ;;  %v2278_v38 = vadd.f32 %v783_v11, %v2048_v60  ;;  %v1192_v36 = vmul.f32 %v1636_v34, %v1160_v46 }
 0x222   :  { %v2240_v12 = vpop.eup %1581  ;;  %v1079_v42 = vadd.f32 %v2236_v37, %v2232_v21  ;;  %v1101_v2 = vrot.slane %v1100_v33, 4  ;;  %v918_v24 = vrot.slane %v917_v62, 1  ;;  %v922_v18 = vmax.f32 %v920_v48, %v921_v59 }
 0x223   :  { %v2245_v57 = vpop.eup %1583  ;;  %v1014_v19 = vmul.f32 1.442695, %v958_v50  ;;  %v1018_v10 = vmul.f32 1.442695, %v960_v49  ;;  %v927_v43 = vmax.f32 %v2278_v38, %v2273_v30  ;;  %v1076_v20 = vadd.f32 %v1075_v14, %v1074_v39 }
 0x224   :  { %v2255_v54 = vpop.eup %1585  ;;  %v1093_v1 = vadd.f32 %v2245_v57, %v2240_v12  ;;  %v1080_v17 = vrot.slane %v1079_v42, 4  ;;  %v1102_v29 = vadd.f32 %v1101_v2, %v1100_v33  ;;  %v919_v22 = vmax.f32 %v917_v62, %v918_v24 }
 0x225   :  { %v2269_v7 = vpop.eup %1587  ;;  %1595 = vpow2.f32 %v1014_v19  ;;  %v1089_v45 = vrot.slane %v1088_v0, 2  ;;  %v923_v48 = vrot.slane %v922_v18, 2  ;;  %v928_v55 = vrot.slane %v927_v43, 4 }
 0x226   :  { %v1107_v15 = vadd.f32 %v2269_v7, %v2255_v54  ;;  %v1094_v27 = vrot.slane %v1093_v1, 4  ;;  %v1081_v47 = vadd.f32 %v1080_v17, %v1079_v42  ;;  %1597 = vpow2.f32 %v1018_v10  ;;  %v1590_v60 = vpop.eup %1589 }
 0x227   :  { %v959_v11 = vsub.f32 %v2217_v3, %v919_v22  ;;  %v961_v33 = vsub.f32 %v2220_v4, %v919_v22  ;;  %v2287_v2 = vpop.eup %1591  ;;  %v1070_v50 = vrot.slane %v1069_v53, 1  ;;  %v1103_v49 = vrot.slane %v1102_v29, 2 }
 0x228   :  { %v1108_v9 = vrot.slane %v1107_v15, 4  ;;  %v1095_v46 = vadd.f32 %v1094_v27, %v1093_v1  ;;  %v924_v24 = vmax.f32 %v922_v18, %v923_v48  ;;  %v929_v39 = vmax.f32 %v927_v43, %v928_v55  ;;  %v2289_v42 = vpop.eup %1593 }
 0x229   :  { %v1016_v59 = vmul.f32 1.442695, %v959_v11  ;;  %v1020_v19 = vmul.f32 1.442695, %v961_v33  ;;  %v1159_v14 = vmul.f32 %v1590_v60, %v2155_v61  ;;  %v1064_v3 = vadd.f32 %v1063_v52, %v2238_v32  ;;  %v1637_v61 = vld [vmem:[%s2492_s1] sm:$0xff] }
 0x22a   :  { %v1109_v62 = vadd.f32 %v1108_v9, %v1107_v15  ;;  %v1077_v17 = vrot.slane %v1076_v20, 1  ;;  %v1090_v4 = vadd.f32 %v1089_v45, %v1088_v0  ;;  %v1082_v10 = vrot.slane %v1081_v47, 2 }
 0x22b   :  { %1599 = vpow2.f32 %v1016_v59  ;;  %v925_v34 = vrot.slane %v924_v24, 1  ;;  %v930_v22 = vrot.slane %v929_v39, 2  ;;  %v1161_v1 = vmul.f32 %v1590_v60, %v2162_v13 }
 0x22c   :  { %v1071_v27 = vadd.f32 %v1070_v50, %v1069_v53  ;;  %v1096_v15 = vrot.slane %v1095_v46, 2  ;;  %v1104_v9 = vadd.f32 %v1103_v49, %v1102_v29  ;;  %v1110_v11 = vrot.slane %v1109_v62, 2  ;;  %v1638_v29 = vld [vmem:[%s2492_s1 + $0x8] sm:$0xff] }
 0x22d   :  { %1601 = vpow2.f32 %v1020_v19  ;;  %v926_v18 = vmax.f32 %v924_v24, %v925_v34  ;;  %v931_v43 = vmax.f32 %v929_v39, %v930_v22  ;;  %v1191_v32 = vmul.f32 %v1637_v61, %v1159_v14 }
 0x22e   :  { %1603 = vrcp.f32 %v1064_v3  ;;  %v1078_v52 = vadd.f32 %v1077_v17, %v1076_v20  ;;  %v1091_v0 = vrot.slane %v1090_v4, 1  ;;  %v1083_v45 = vadd.f32 %v1082_v10, %v1081_v47 }
 0x22f   :  { %v962_v33 = vsub.f32 %v2248_v40, %v926_v18  ;;  %v964_v13 = vsub.f32 %v2251_v41, %v926_v18  ;;  %v932_v53 = vrot.slane %v931_v43, 1  ;;  %v1193_v60 = vmul.f32 %v1638_v29, %v1161_v1 }
 0x230   :  { %1605 = vrcp.f32 %v1071_v27  ;;  %v1097_v48 = vadd.f32 %v1096_v15, %v1095_v46  ;;  %v1105_v55 = vrot.slane %v1104_v9, 1  ;;  %v1111_v50 = vadd.f32 %v1110_v11, %v1109_v62 }
 0x231   :  { %v1022_v49 = vmul.f32 1.442695, %v962_v33  ;;  %v1026_v59 = vmul.f32 1.442695, %v964_v13  ;;  %v933_v19 = vmax.f32 %v931_v43, %v932_v53  ;;  %v1222_v47 = vadd.f32 %v1192_v36, %v2264_v58 }
 0x232   :  { %v2302_v20 = vpop.eup %1595  ;;  %1607 = vrcp.f32 %v1078_v52  ;;  %v1092_v40 = vadd.f32 %v1091_v0, %v1090_v4  ;;  %v1084_v24 = vrot.slane %v1083_v45, 1  ;;  %v1229_v46 = vadd.f32 %v1193_v60, %v1191_v32 }
 0x233   :  { %v2305_v41 = vpop.eup %1597  ;;  %1609 = vpow2.f32 %v1022_v49  ;;  %v963_v39 = vsub.f32 %v2278_v38, %v933_v19  ;;  %v965_v14 = vsub.f32 %v2273_v30, %v933_v19  ;;  %v1098_v3 = vrot.slane %v1097_v48, 1 }
 0x234   :  { %v1114_v62 = vadd.f32 %v2305_v41, %v2302_v20  ;;  %1611 = vpow2.f32 %v1026_v59  ;;  %v1106_v17 = vadd.f32 %v1105_v55, %v1104_v9  ;;  %v1112_v10 = vrot.slane %v1111_v50, 1 }
 0x235   :  { %v1024_v34 = vmul.f32 1.442695, %v963_v39  ;;  %v1028_v58 = vmul.f32 1.442695, %v965_v14  ;;  %v1223_v36 = vrot.slane %v1222_v47, 4  ;;  %1613 = vrcp.f32 %v1092_v40  ;;  %v1642_v14 = vld [vmem:[%s2492_s1 + $0x18] sm:$0xff] }
 0x236   :  { %v1115_v4 = vrot.slane %v1114_v62, 4  ;;  %v1162_v22 = vmul.f32 %v2287_v2, %v2166_v28  ;;  %v1164_v38 = vmul.f32 %v2287_v2, %v2168_v31  ;;  %v1085_v30 = vadd.f32 %v1084_v24, %v1083_v45  ;;  %v1639_v28 = vld [vmem:[%s2494_s0 + $0x10] sm:$0xff]  ;;  %v1640_v2 = vld [vmem:[%s2494_s0 + $0x18] sm:$0xff] }
 0x237   :  { %1615 = vpow2.f32 %v1024_v34  ;;  %v1230_v27 = vrot.slane %v1229_v46, 4  ;;  %v1099_v15 = vadd.f32 %v1098_v3, %v1097_v48  ;;  %v1113_v9 = vadd.f32 %v1112_v10, %v1111_v50 }
 0x238   :  { %v2315_v1 = vpop.eup %1599  ;;  %v1116_v11 = vadd.f32 %v1115_v4, %v1114_v62  ;;  %1617 = vpow2.f32 %v1028_v58  ;;  %v1224_v43 = vadd.f32 %v1223_v36, %v1222_v47  ;;  %v1194_v31 = vmul.f32 %v1639_v28, %v1162_v22  ;;  %v1643_v58 = vld [vmem:[%s2494_s0 + $0x20] sm:$0xff]  ;;  %v1644_v4 = vld [vmem:[%s2494_s0 + $0x28] sm:$0xff] }
 0x239   :  { %1619 = vrcp.f32 %v1106_v17  ;;  %v1196_v52 = vmul.f32 %v1640_v2, %v1164_v38  ;;  %v1231_v45 = vadd.f32 %v1230_v27, %v1229_v46  ;;  %v1163_v53 = vmul.f32 %v2289_v42, %v2171_v35 }
 0x23a   :  { %v2317_v18 = vpop.eup %1601  ;;  %v1117_v61 = vrot.slane %v1116_v11, 2  ;;  %1621 = vrcp.f32 %v1085_v30  ;;  %v1165_v29 = vmul.f32 %v2289_v42, %v2174_v23  ;;  %v1225_v50 = vrot.slane %v1224_v43, 2  ;;  %v1641_v23 = vld [vmem:[%s2492_s1 + $0x10] sm:$0xff] }
 0x23b   :  { %v1604_v32 = vpop.eup %1603  ;;  %v1121_v0 = vadd.f32 %v2317_v18, %v2315_v1  ;;  %1623 = vrcp.f32 %v1099_v15  ;;  %v1236_v49 = vadd.f32 %v1196_v52, %v1194_v31  ;;  %v1232_v35 = vrot.slane %v1231_v45, 2 }
 0x23c   :  { %v1118_v33 = vadd.f32 %v1117_v61, %v1116_v11  ;;  %1625 = vrcp.f32 %v1113_v9  ;;  %v1166_v47 = vmul.f32 %v1604_v32, %v2186_v63  ;;  %v1168_v40 = vmul.f32 %v1604_v32, %v2189_v8 }
 0x23d   :  { %v1606_v13 = vpop.eup %1605  ;;  %v1122_v60 = vrot.slane %v1121_v0, 4  ;;  %v1195_v42 = vmul.f32 %v1641_v23, %v1163_v53  ;;  %v1197_v46 = vmul.f32 %v1642_v14, %v1165_v29  ;;  %v2345_v62 = vadd.f32 %v1225_v50, %v1224_v43  ;;  %v1647_v50 = vld [vmem:[%s2494_s0 + $0x30] sm:$0xff] }
 0x23e   :  { %v1119_v48 = vrot.slane %v1118_v33, 1  ;;  %v1237_v17 = vrot.slane %v1236_v49, 4  ;;  %v1198_v36 = vmul.f32 %v1643_v58, %v1166_v47  ;;  %v1200_v22 = vmul.f32 %v1644_v4, %v1168_v40 }
 0x23f   :  { %v1608_v55 = vpop.eup %1607  ;;  %v1123_v59 = vadd.f32 %v1122_v60, %v1121_v0  ;;  %v1167_v38 = vmul.f32 %v1606_v13, %v2192_v6  ;;  %v2358_v15 = vadd.f32 %v1232_v35, %v1231_v45  ;;  %v2360_v11 = vadd.f32 %v1197_v46, %v1195_v42  ;;  %v1646_v60 = vld [vmem:[%s2492_s1 + $0x28] sm:$0xff] }
 0x240   :  { %v2331_v19 = vpop.eup %1609  ;;  %v1120_v24 = vadd.f32 %v1119_v48, %v1118_v33  ;;  %v1169_v9 = vmul.f32 %v1606_v13, %v2195_v25  ;;  %v1170_v32 = vmul.f32 %v1608_v55, %v2210_v44  ;;  %v1172_v28 = vmul.f32 %v1608_v55, %v2212_v56  ;;  %v1645_v25 = vld [vmem:[%s2492_s1 + $0x20] sm:$0xff]  ;;  %v1650_v42 = vld [vmem:[%s2494_s0 + $0x48] sm:$0xff] }
 0x241   :  { %v2335_v39 = vpop.eup %1611  ;;  %v1124_v3 = vrot.slane %v1123_v59, 2  ;;  %v2367_v6 = vadd.f32 %v1237_v17, %v1236_v49  ;;  %v2371_v53 = vadd.f32 %v1200_v22, %v1198_v36  ;;  %v1199_v44 = vmul.f32 %v1645_v25, %v1167_v38  ;;  %v1657_v25 = vld [vmem:[%s2492_s1 + $0x50] sm:$0xff] }
 0x242   :  { %1627 = vrcp.f32 %v1120_v24  ;;  %v1128_v63 = vadd.f32 %v2335_v39, %v2331_v19  ;;  %v1614_v8 = vpop.eup %1613  ;;  %v1201_v48 = vmul.f32 %v1646_v60, %v1169_v9  ;;  %v1202_v49 = vmul.f32 %v1647_v50, %v1170_v32 }
 0x243   :  { %v1125_v10 = vadd.f32 %v1124_v3, %v1123_v59  ;;  %v1174_v52 = vmul.f32 %v1614_v8, %v2222_v5  ;;  %v1176_v0 = vmul.f32 %v1614_v8, %v2224_v51  ;;  %v1648_v59 = vld [vmem:[%s2494_s0 + $0x38] sm:$0xff]  ;;  %v1251_v46 = vrot.slane %v2371_v53, 4 }
 0x244   :  { %v2347_v34 = vpop.eup %1615  ;;  %v1129_v30 = vrot.slane %v1128_v63, 4  ;;  %v1204_v47 = vmul.f32 %v1648_v59, %v1172_v28  ;;  %v1257_v4 = vadd.f32 %v1201_v48, %v1199_v44 }
 0x245   :  { %v2356_v27 = vpop.eup %1617  ;;  %v1126_v43 = vrot.slane %v1125_v10, 1  ;;  %v1208_v14 = vmul.f32 %v1650_v42, %v1176_v0  ;;  %v1656_v0 = vld [vmem:[%s2492_s1 + $0x48] sm:$0xff] }
 0x246   :  { %v1620_v61 = vpop.eup %1619  ;;  %v1130_v31 = vadd.f32 %v1129_v30, %v1128_v63  ;;  %v1135_v2 = vadd.f32 %v2356_v27, %v2347_v34  ;;  %v1264_v9 = vadd.f32 %v1204_v47, %v1202_v49  ;;  %v1227_v47 = vrot.slane %v2345_v62, 1 }
 0x247   :  { %v1127_v45 = vadd.f32 %v1126_v43, %v1125_v10  ;;  %v1622_v33 = vpop.eup %1621  ;;  %v1178_v5 = vmul.f32 %v1620_v61, %v2228_v16  ;;  %v1180_v51 = vmul.f32 %v1620_v61, %v2230_v26  ;;  %v1649_v26 = vld [vmem:[%s2494_s0 + $0x40] sm:$0xff]  ;;  %v1652_v10 = vld [vmem:[%s2494_s0 + $0x58] sm:$0xff] }
 0x248   :  { %v1131_v56 = vrot.slane %v1130_v31, 2  ;;  %v1136_v13 = vrot.slane %v1135_v2, 4  ;;  %v1624_v29 = vpop.eup %1623  ;;  %v1171_v35 = vmul.f32 %v1622_v33, %v2232_v21  ;;  %v1173_v16 = vmul.f32 %v1622_v33, %v2236_v37  ;;  %v1651_v37 = vld [vmem:[%s2494_s0 + $0x50] sm:$0xff]  ;;  %v1654_v61 = vld [vmem:[%s2492_s1 + $0x38] sm:$0xff] }
 0x249   :  { %1629 = vrcp.f32 %v1127_v45  ;;  %v1626_v55 = vpop.eup %1625  ;;  %v1206_v23 = vmul.f32 %v1649_v26, %v1174_v52  ;;  %v1175_v3 = vmul.f32 %v1624_v29, %v2240_v12  ;;  %v1177_v21 = vmul.f32 %v1624_v29, %v2245_v57  ;;  %v1653_v57 = vld [vmem:[%s2492_s1 + $0x30] sm:$0xff]  ;;  %v1660_v29 = vld [vmem:[%s2494_s0 + $0x68] sm:$0xff] }
 0x24a   :  { %v1132_v40 = vadd.f32 %v1131_v56, %v1130_v31  ;;  %v1137_v24 = vadd.f32 %v1136_v13, %v1135_v2  ;;  %v1210_v17 = vmul.f32 %v1651_v37, %v1178_v5  ;;  %v1212_v58 = vmul.f32 %v1652_v10, %v1180_v51  ;;  %v1655_v2 = vld [vmem:[%s2492_s1 + $0x40] sm:$0xff] }
 0x24b   :  { %v1179_v36 = vmul.f32 %v1626_v55, %v2255_v54  ;;  %v1181_v22 = vmul.f32 %v1626_v55, %v2269_v7  ;;  %v1203_v43 = vmul.f32 %v1653_v57, %v1171_v35  ;;  %v1205_v32 = vmul.f32 %v1654_v61, %v1173_v16  ;;  %v1659_v56 = vld [vmem:[%s2494_s0 + $0x60] sm:$0xff] }
 0x24c   :  { %v1133_v63 = vrot.slane %v1132_v40, 1  ;;  %v1138_v8 = vrot.slane %v1137_v24, 2  ;;  %v1278_v28 = vadd.f32 %v1208_v14, %v1206_v23  ;;  %v1207_v52 = vmul.f32 %v1655_v2, %v1175_v3 }
 0x24d   :  { %v1209_v45 = vmul.f32 %v1656_v0, %v1177_v21  ;;  %v1292_v33 = vadd.f32 %v1212_v58, %v1210_v17  ;;  %v1244_v5 = vrot.slane %v2360_v11, 4  ;;  %v1252_v51 = vadd.f32 %v1251_v46, %v2371_v53  ;;  %v1661_v58 = vld [vmem:[%s2492_s1 + $0x60] sm:$0xff] }
 0x24e   :  { %v1134_v12 = vadd.f32 %v1133_v63, %v1132_v40  ;;  %v1139_v38 = vadd.f32 %v1138_v8, %v1137_v24  ;;  %v1265_v55 = vrot.slane %v1264_v9, 4  ;;  %v1271_v50 = vadd.f32 %v1205_v32, %v1203_v43 }
 0x24f   :  { %v1628_v30 = vpop.eup %1627  ;;  %v1279_v49 = vrot.slane %v1278_v28, 4  ;;  %v1285_v40 = vadd.f32 %v1209_v45, %v1207_v52  ;;  %v1293_v24 = vrot.slane %v1292_v33, 4  ;;  %v1234_v16 = vrot.slane %v2358_v15, 1 }
 0x250   :  { %v1182_v54 = vmul.f32 %v1628_v30, %v2302_v20  ;;  %v1184_v31 = vmul.f32 %v1628_v30, %v2305_v41  ;;  %1631 = vrcp.f32 %v1134_v12  ;;  %v1140_v7 = vrot.slane %v1139_v38, 1  ;;  %v1658_v41 = vld [vmem:[%s2492_s1 + $0x58] sm:$0xff] }
 0x251   :  { %v1211_v20 = vmul.f32 %v1657_v25, %v1179_v36  ;;  %v1213_v44 = vmul.f32 %v1658_v41, %v1181_v22  ;;  %v1239_v26 = vrot.slane %v2367_v6, 2  ;;  %v1258_v23 = vrot.slane %v1257_v4, 4  ;;  %v1662_v22 = vld [vmem:[%s2492_s1 + $0x68] sm:$0xff] }
 0x252   :  { %v1214_v13 = vmul.f32 %v1659_v56, %v1182_v54  ;;  %v1216_v60 = vmul.f32 %v1660_v29, %v1184_v31  ;;  %v1141_v48 = vadd.f32 %v1140_v7, %v1139_v38  ;;  %v1266_v14 = vadd.f32 %v1265_v55, %v1264_v9 }
 0x253   :  { %v1299_v42 = vadd.f32 %v1213_v44, %v1211_v20  ;;  %v1245_v63 = vadd.f32 %v1244_v5, %v2360_v11  ;;  %v1253_v8 = vrot.slane %v1252_v51, 2  ;;  %v1272_v21 = vrot.slane %v1271_v50, 4  ;;  %v1663_v44 = vld [vmem:[%s2494_s0 + $0x70] sm:$0xff] }
 0x254   :  { %v1306_v59 = vadd.f32 %v1216_v60, %v1214_v13  ;;  %1633 = vrcp.f32 %v1141_v48  ;;  %v1280_v37 = vadd.f32 %v1279_v49, %v1278_v28  ;;  %v1286_v17 = vrot.slane %v1285_v40, 4  ;;  %v1664_v13 = vld [vmem:[%s2494_s0 + $0x78] sm:$0xff] }
 0x255   :  { %v1294_v10 = vadd.f32 %v1293_v24, %v1292_v33  ;;  %v1300_v11 = vrot.slane %v1299_v42, 4  ;;  %v1259_v38 = vadd.f32 %v1258_v23, %v1257_v4  ;;  %v1267_v30 = vrot.slane %v1266_v14, 2 }
 0x256   :  { %v1630_v35 = vpop.eup %1629  ;;  %v1307_v3 = vrot.slane %v1306_v59, 4  ;;  %v2451_v43 = vadd.f32 %v1234_v16, %v2358_v15  ;;  %v1246_v61 = vrot.slane %v1245_v63, 2  ;;  %v1254_v32 = vadd.f32 %v1253_v8, %v1252_v51 }
 0x257   :  { %v1183_v53 = vmul.f32 %v1630_v35, %v2315_v1  ;;  %v1185_v46 = vmul.f32 %v1630_v35, %v2317_v18  ;;  %v2447_v1 = vadd.f32 %v1227_v47, %v2345_v62  ;;  %v1240_v18 = vadd.f32 %v1239_v26, %v2367_v6  ;;  %v1665_v26 = vld [vmem:[%s2492_s1 + $0x70] sm:$0xff] }
 0x258   :  { %v1308_v9 = vadd.f32 %v1307_v3, %v1306_v59  ;;  %v1273_v28 = vadd.f32 %v1272_v21, %v1271_v50  ;;  %v1281_v31 = vrot.slane %v1280_v37, 2  ;;  %v1287_v7 = vadd.f32 %v1286_v17, %v1285_v40 }
 0x259   :  { %v1215_v36 = vmul.f32 %v1661_v58, %v1183_v53  ;;  %v1217_v12 = vmul.f32 %v1662_v22, %v1185_v46  ;;  %v1295_v2 = vrot.slane %v1294_v10, 2  ;;  %v1241_v62 = vrot.slane %v1240_v18, 1 }
 0x25a   :  { %v1301_v0 = vadd.f32 %v1300_v11, %v1299_v42  ;;  %v1260_v45 = vrot.slane %v1259_v38, 2  ;;  %v1268_v33 = vadd.f32 %v1267_v30, %v1266_v14  ;;  %v1309_v25 = vrot.slane %v1308_v9, 2  ;;  %v1666_v42 = vld [vmem:[%s2492_s1 + $0x78] sm:$0xff] }
 0x25b   :  { %v1313_v57 = vadd.f32 %v1217_v12, %v1215_v36  ;;  %v1247_v20 = vadd.f32 %v1246_v61, %v1245_v63  ;;  %v1274_v41 = vrot.slane %v1273_v28, 2  ;;  %v1255_v60 = vrot.slane %v1254_v32, 1 }
 0x25c   :  { %v1288_v48 = vrot.slane %v1287_v7, 2  ;;  %v1296_v5 = vadd.f32 %v1295_v2, %v1294_v10  ;;  %v1302_v51 = vrot.slane %v1301_v0, 2  ;;  %v1261_v59 = vadd.f32 %v1260_v45, %v1259_v38 }
 0x25d   :  { %v1632_v54 = vpop.eup %1631  ;;  %v1314_v52 = vrot.slane %v1313_v57, 4  ;;  %v1269_v47 = vrot.slane %v1268_v33, 1  ;;  %v1310_v40 = vadd.f32 %v1309_v25, %v1308_v9  ;;  %v1275_v35 = vadd.f32 %v1274_v41, %v1273_v28 }
 0x25e   :  { %v1186_v6 = vmul.f32 %v1632_v54, %v2331_v19  ;;  %v1188_v4 = vmul.f32 %v1632_v54, %v2335_v39  ;;  %v1282_v39 = vadd.f32 %v1281_v31, %v1280_v37  ;;  %v1242_v14 = vadd.f32 %v1241_v62, %v1240_v18 }
 0x25f   :  { %v1315_v15 = vadd.f32 %v1314_v52, %v1313_v57  ;;  %v1289_v53 = vadd.f32 %v1288_v48, %v1287_v7  ;;  %v1297_v46 = vrot.slane %v1296_v5, 1  ;;  %v1303_v63 = vadd.f32 %v1302_v51, %v1301_v0 }
 0x260   :  { %v1218_v56 = vmul.f32 %v1663_v44, %v1186_v6  ;;  %v1220_v29 = vmul.f32 %v1664_v13, %v1188_v4  ;;  %v1283_v3 = vrot.slane %v1282_v39, 1  ;;  %v1256_v37 = vadd.f32 %v1255_v60, %v1254_v32 }
 0x261   :  { %v1634_v19 = vpop.eup %1633  ;;  %v1316_v24 = vrot.slane %v1315_v15, 2  ;;  %v1262_v17 = vrot.slane %v1261_v59, 1  ;;  %v1311_v10 = vrot.slane %v1310_v40, 1  ;;  %v1270_v36 = vadd.f32 %v1269_v47, %v1268_v33 }
 0x262   :  { %v1320_v55 = vadd.f32 %v1220_v29, %v1218_v56  ;;  %v1187_v50 = vmul.f32 %v1634_v19, %v2347_v34  ;;  %v1189_v49 = vmul.f32 %v1634_v19, %v2356_v27  ;;  %v1248_v27 = vrot.slane %v1247_v20, 1 }
 0x263   :  { %v1317_v58 = vadd.f32 %v1316_v24, %v1315_v15  ;;  %v1276_v22 = vrot.slane %v1275_v35, 1  ;;  %v1351_v38 = vsel %vm1350_vm0, %v1242_v14, %v2447_v1  ;;  %v1284_v18 = vadd.f32 %v1283_v3, %v1282_v39 }
 0x264   :  { %v1321_v16 = vrot.slane %v1320_v55, 4  ;;  %v1219_v23 = vmul.f32 %v1665_v26, %v1187_v50  ;;  %v1221_v34 = vmul.f32 %v1666_v42, %v1189_v49  ;;  %v1249_v30 = vadd.f32 %v1248_v27, %v1247_v20 }
 0x265   :  { %v1290_v9 = vrot.slane %v1289_v53, 1  ;;  %v1298_v57 = vadd.f32 %v1297_v46, %v1296_v5  ;;  %v1304_v61 = vrot.slane %v1303_v63, 1  ;;  %v1353_v31 = vsel %vm1352_vm1, %v1256_v37, %v1351_v38 }
 0x266   :  { %v1322_v8 = vadd.f32 %v1321_v16, %v1320_v55  ;;  %v1327_v21 = vadd.f32 %v1221_v34, %v1219_v23  ;;  %v1263_v32 = vadd.f32 %v1262_v17, %v1261_v59  ;;  %v1312_v7 = vadd.f32 %v1311_v10, %v1310_v40 }
 0x267   :  { %v1318_v2 = vrot.slane %v1317_v58, 1  ;;  %v1355_v52 = vsel %vm1354_vm2, %v1270_v36, %v1353_v31  ;;  %v1277_v62 = vadd.f32 %v1276_v22, %v1275_v35  ;;  %v1364_v1 = vsel %vm1350_vm0, %v1249_v30, %v2451_v43 }
 0x268   :  { %v1323_v12 = vrot.slane %v1322_v8, 2  ;;  %v1328_v11 = vrot.slane %v1327_v21, 4  ;;  %v1357_v4 = vsel %vm1356_vm3, %v1284_v18, %v1355_v52  ;;  %v1291_v45 = vadd.f32 %v1290_v9, %v1289_v53 }
 0x269   :  { %v1359_v33 = vsel %vm1358_vm4, %v1298_v57, %v1357_v4  ;;  %v1305_v25 = vadd.f32 %v1304_v61, %v1303_v63  ;;  %v1365_v41 = vsel %vm1352_vm1, %v1263_v32, %v1364_v1  ;;  %v1319_v56 = vadd.f32 %v1318_v2, %v1317_v58 }
 0x26a   :  { %v1324_v28 = vadd.f32 %v1323_v12, %v1322_v8  ;;  %v1329_v54 = vadd.f32 %v1328_v11, %v1327_v21  ;;  %v1361_v44 = vsel %vm1360_vm5, %v1312_v7, %v1359_v33  ;;  %v1366_v13 = vsel %vm1354_vm2, %v1277_v62, %v1365_v41 }
 0x26b   :  { %v1367_v43 = vsel %vm1356_vm3, %v1291_v45, %v1366_v13 }
 0x26c   :  { %v1325_v0 = vrot.slane %v1324_v28, 1  ;;  %v1330_v6 = vrot.slane %v1329_v54, 2  ;;  %v1368_v60 = vsel %vm1358_vm4, %v1305_v25, %v1367_v43 }
 0x26d   :  { %v1369_v48 = vsel %vm1360_vm5, %v1319_v56, %v1368_v60 }
 0x26e   :  { %v1326_v15 = vadd.f32 %v1325_v0, %v1324_v28  ;;  %v1331_v20 = vadd.f32 %v1330_v6, %v1329_v54 }
 0x270   :  { %v1363_v29 = vsel %vm1362_vm6, %v1326_v15, %v1361_v44  ;;  %v1332_v19 = vrot.slane %v1331_v20, 1 }
 0x271   :  { %1373 = vst [vmem:[%s2497_s6] sm:$0xff] %v1363_v29 }
 0x272   :  { %v1333_v39 = vadd.f32 %v1332_v19, %v1331_v20 }
 0x274   :  { %v1370_v5 = vsel %vm1362_vm6, %v1333_v39, %v1369_v48 }
 0x275   :  { %1374 = vst [vmem:[%s2497_s6 + $0x8] sm:$0xff] %v1370_v5 }

// kernel: nn4snli_forward.7
= control target key start
LH: loop header
LB: loop body
LE: loop exit
PB: predicated region body
PF: predicated region fallthrough
CT: control target
= control target key end

     0   :  { %s3744_s0 = inlined_call_operand.vmem [shape: f32[4,16,128], index: 0, kind: input, shape index: {}]   ;;  %s3745_s1 = inlined_call_operand.vmem [shape: bf16[128,128], index: 1, kind: input, shape index: {}]   ;;  %s3746_s2 = inlined_call_operand.vmem [shape: f32[1,128], index: 2, kind: input, shape index: {}]   ;;  %s3747_s3 = inlined_call_operand.vmem [shape: bf16[128,128], index: 3, kind: input, shape index: {}]   ;;  %s3748_s4 = inlined_call_operand.vmem [shape: f32[1,128], index: 4, kind: input, shape index: {}]   ;;  %s3749_s5 = inlined_call_operand.vmem [shape: bf16[128,128], index: 5, kind: input, shape index: {}]   ;;  %s3750_s6 = inlined_call_operand.vmem [shape: bf16[128,128], index: 6, kind: input, shape index: {}]   ;;  %s3751_s7 = inlined_call_operand.vmem [shape: f32[1,128], index: 7, kind: input, shape index: {}]   ;;  %s3752_s8 = inlined_call_operand.vmem [shape: bf16[128,128], index: 8, kind: input, shape index: {}]   ;;  %s3753_s9 = inlined_call_operand.hbm [shape: bf16[128,128], index: 9, kind: input, shape index: {}]   ;;  %s3754_s10 = inlined_call_operand.hbm [shape: bf16[128,128], index: 10, kind: input, shape index: {}]   ;;  %s3755_s11 = inlined_call_operand.hbm [shape: f32[1,128], index: 11, kind: input, shape index: {}]   ;;  %s3756_s12 = inlined_call_operand.hbm [shape: bf16[128,128], index: 12, kind: input, shape index: {}]   ;;  %s3757_s13 = inlined_call_operand.hbm [shape: bf16[128,128], index: 13, kind: input, shape index: {}]   ;;  %s3758_s14 = inlined_call_operand.hbm [shape: bf16[128,128], index: 14, kind: input, shape index: {}]   ;;  %s3759_s15 = inlined_call_operand.hbm [shape: f32[1,128], index: 15, kind: input, shape index: {}]   ;;  %s3760_s16 = inlined_call_operand.vmem [shape: f32[4,16,128], index: 16, kind: output, shape index: {}]  }
   0x1   :  { %3765 = sst [smem:[#allocation17_spill]] %s3744_s0 }
   0x2   :  { %3766 = sst [smem:[#allocation18_spill]] %s3754_s10 }
   0x3   :  { %21 = vsyncpa [#allocation3], 0 }
   0x4   :  { %22 = vsyncpa [#allocation5], 0 }
   0x5   :  { %23 = vsyncpa [#allocation8], 0 }
   0x6   :  { %24 = vsyncpa [#allocation11], 0  ;;  %s3230_s21 = smov 0  }
   0x7 LB: > { %s3761_s22 = sadd.s32 4294967295, %s3130_s21   ;;  %p2315_p0 = scmp.ge.s32.totalorder %s3130_s21, 1  ;;  %s3130_s21 = sphi %s3230_s21, %s30_s21  }
   0x8   : > { %p402_p1 = scmp.lt.s32.totalorder %s3130_s21, 3  ;;  %p3240_p2 = scmp.eq.s32.totalorder %s3761_s22, 0 }
   0x9   : > { %s3132_s25 = smov [#allocation4]   ;;  %s3133_s27 = smov [#allocation7]  }
   0xa   : > { %s3767_s23 = scalar_select %p3240_p2, 1, 0 }
   0xb   : > { %p3244_p3 = pnand %p2315_p0, %p402_p1  ;;  %s451_s26 = sshll.u32 %s3132_s25, 4  ;;  %s452_s26 = int_to_ptr.vmem [resolvable:$true] %s451_s26 }
   0xc   : > { %s475_s28 = sshll.u32 %s3133_s27, 4  ;;  %s3134_s30 = smov [#allocation10]   ;;  %s3250_s28 = int_to_ptr.vmem [resolvable:$true] %s475_s28 }
   0xd   : > { %s3768_s24 = scalar_select %p3244_p3, 1, 0 }
   0xe   : > { %p2759_p4 = pneg %p3244_p3  ;;  %s501_s0 = sshll.u32 %s3134_s30, 4  ;;  %s3258_s0 = int_to_ptr.vmem [resolvable:$true] %s501_s0 }
   0xf   : > { %s3135_s17 = smov [#allocation2]   ;;  %s2937_s20 = scalar_lea.vmem %s452_s26, 1024 }
  0x10   : > { %p3254_p5 = pnand %p3240_p2, %p2759_p4  ;;  %s3260_s18 = sshll.u32 %s3135_s17, 4  ;;  %s439_s18 = int_to_ptr.vmem [resolvable:$true] %s3260_s18 }
  0x11   : > { %p2938_p7 = scmp.ne.s32.totalorder %s452_s26, %s2937_s20  ;;  %p2945_p10 = scmp.lt.s32.totalorder %s452_s26, %s452_s26 }
  0x12   : > { %p3264_p6 = pneg %p3254_p5  ;;  %p2946_p11 = scmp.lt.s32.totalorder %s2937_s20, %s2937_s20 }
  0x14   : > { %p2940_p8 = pnand %p2938_p7, %p3264_p6  ;;  %p2947_p12 = por %p2946_p11, %p2945_p10 }
  0x16   : > { %p2941_p9 = pneg %p2940_p8 }
  0x18   : > { %p2948_p13 = pnand %p2947_p12, %p2941_p9 }
  0x1a   : > { %2951 = shalt.err (!%p2948_p13)
}
  0x1b   : > { %s3136_s25 = smov 64   ;;  %s3137_s27 = smov 4  }
  0x1c   : > { %s3771_s10 = sld [smem:[#allocation18_spill]]  ;;  %s2963_s22 = scalar_lea.vmem %s3250_s28, 1024 }
  0x1d   : > { %p2964_p0 = scmp.ne.s32.totalorder %s3250_s28, %s2963_s22  ;;  %p2971_p7 = scmp.lt.s32.totalorder %s3250_s28, %s3250_s28 }
  0x1e   : > { %p2972_p8 = scmp.lt.s32.totalorder %s2963_s22, %s2963_s22 }
  0x1f   : > { %p2966_p1 = pnand %p2964_p0, %p3264_p6 }
  0x20   : > { %p2973_p9 = por %p2972_p8, %p2971_p7 }
  0x21   : > { %p2967_p4 = pneg %p2966_p1 }
  0x22   : > { %2765 = dma.hbm_to_vmem [thread:$0]  (!%p3254_p5), %s3771_s10, 1024, %s452_s26, [#allocation5], %s3136_s25, %s3136_s25, %s3137_s27  }
  0x23   : > { %p2974_p10 = pnand %p2973_p9, %p2967_p4 }
  0x25   : > { %2977 = shalt.err (!%p2974_p10)
}
  0x26   : > { %2771 = dma.hbm_to_vmem [thread:$0]  (!%p3254_p5), %s3756_s12, 1024, %s3250_s28, [#allocation8], %s3136_s25, %s3136_s25, %s3137_s27  }
  0x27   : > { %s2989_s26 = scalar_lea.vmem %s3258_s0, 1024  ;;  %p2997_p0 = scmp.lt.s32.totalorder %s3258_s0, %s3258_s0 }
  0x28   : > { %p2990_p11 = scmp.ne.s32.totalorder %s3258_s0, %s2989_s26  ;;  %p2998_p1 = scmp.lt.s32.totalorder %s2989_s26, %s2989_s26 }
  0x2a   : > { %p2992_p12 = pnand %p2990_p11, %p3264_p6  ;;  %p2999_p4 = por %p2998_p1, %p2997_p0 }
  0x2c   : > { %p2993_p13 = pneg %p2992_p12 }
  0x2e   : > { %p3000_p7 = pnand %p2999_p4, %p2993_p13 }
  0x30   : > { %3003 = shalt.err (!%p3000_p7)
}
  0x31   : > { %2777 = dma.hbm_to_vmem [thread:$0]  (!%p3254_p5), %s3758_s14, 1024, %s3258_s0, [#allocation11], %s3136_s25, %s3136_s25, %s3137_s27  }
  0x32   : > { %s3015_s28 = scalar_lea.vmem %s439_s18, 1024  ;;  %p3023_p11 = scmp.lt.s32.totalorder %s439_s18, %s439_s18 }
  0x33   : > { %p3016_p8 = scmp.ne.s32.totalorder %s439_s18, %s3015_s28  ;;  %p3024_p12 = scmp.lt.s32.totalorder %s3015_s28, %s3015_s28 }
  0x35   : > { %p3018_p9 = pnand %p3016_p8, %p3264_p6  ;;  %p3025_p13 = por %p3024_p12, %p3023_p11 }
  0x37   : > { %p3019_p10 = pneg %p3018_p9 }
  0x39   : > { %p3026_p0 = pnand %p3025_p13, %p3019_p10 }
  0x3b   : > { %3029 = shalt.err (!%p3026_p0)
}
  0x3c   : > { %2762 = dma.hbm_to_vmem [thread:$0]  (!%p3254_p5), %s3753_s9, 1024, %s439_s18, [#allocation3], %s3136_s25, %s3136_s25, %s3137_s27  }
  0x3d   : > { %s3138_s0 = smov [#allocation6]   ;;  %s3139_s22 = smov [#allocation9]  }
  0x3e   : > { %s465_s26 = sshll.u32 %s3138_s0, 4  ;;  %s488_s17 = sshll.u32 %s3139_s22, 4  ;;  %s466_s26 = int_to_ptr.vmem [resolvable:$true] %s465_s26  ;;  %s489_s17 = int_to_ptr.vmem [resolvable:$true] %s488_s17 }
  0x3f   : > { %s3041_s10 = scalar_lea.vmem %s466_s26, 16  ;;  %s3048_s28 = scalar_lea.vmem %s466_s26, 32 }
  0x40   : > { %p3042_p1 = scmp.ne.s32.totalorder %s466_s26, %s3041_s10  ;;  %p3049_p8 = scmp.lt.s32.totalorder %s466_s26, %s466_s26 }
  0x41   : > { %p3050_p9 = scmp.lt.s32.totalorder %s3048_s28, %s3041_s10 }
  0x42   : > { %p3044_p4 = pnand %p3042_p1, %p3264_p6 }
  0x43   : > { %p3051_p10 = por %p3050_p9, %p3049_p8 }
  0x44   : > { %p3045_p7 = pneg %p3044_p4 }
  0x46   : > { %p3052_p11 = pnand %p3051_p10, %p3045_p7 }
  0x48   : > { %3055 = shalt.err (!%p3052_p11)
}
  0x49   : > { %2768 = dma.hbm_to_vmem [thread:$0]  (!%p3254_p5), %s3755_s11, 16, %s466_s26, [#allocation5]  }
  0x4a   : > { %s3067_s30 = scalar_lea.vmem %s489_s17, 1024  ;;  %p3075_p1 = scmp.lt.s32.totalorder %s489_s17, %s489_s17 }
  0x4b   : > { %p3068_p12 = scmp.ne.s32.totalorder %s489_s17, %s3067_s30  ;;  %p3076_p4 = scmp.lt.s32.totalorder %s3067_s30, %s3067_s30 }
  0x4d   : > { %p3070_p13 = pnand %p3068_p12, %p3264_p6  ;;  %p3077_p2 = por %p3076_p4, %p3075_p1 }
  0x4f   : > { %p3071_p0 = pneg %p3070_p13 }
  0x51   : > { %p3078_p3 = pnand %p3077_p2, %p3071_p0 }
  0x53   : > { %3081 = shalt.err (!%p3078_p3)
}
  0x54   : > { %2774 = dma.hbm_to_vmem [thread:$0]  (!%p3254_p5), %s3757_s13, 1024, %s489_s17, [#allocation8], %s3136_s25, %s3136_s25, %s3137_s27  }
  0x55   : > { %s3140_s26 = smov [#allocation12]  }
  0x56   : > { %s515_s22 = sshll.u32 %s3140_s26, 4  ;;  %s516_s22 = int_to_ptr.vmem [resolvable:$true] %s515_s22 }
  0x57   : > { %s3093_s28 = scalar_lea.vmem %s516_s22, 16  ;;  %s3100_s20 = scalar_lea.vmem %s516_s22, 32 }
  0x58   : > { %p3094_p7 = scmp.ne.s32.totalorder %s516_s22, %s3093_s28  ;;  %p3101_p2 = scmp.lt.s32.totalorder %s516_s22, %s516_s22 }
  0x59   : > { %p3102_p3 = scmp.lt.s32.totalorder %s3100_s20, %s3093_s28 }
  0x5a   : > { %p3096_p8 = pnand %p3094_p7, %p3264_p6 }
  0x5b   : > { %p3103_p10 = por %p3102_p3, %p3101_p2 }
  0x5c   : > { %p3097_p9 = pneg %p3096_p8 }
  0x5e   : > { %p3104_p11 = pnand %p3103_p10, %p3097_p9 }
  0x60   : > { %3107 = shalt.err (!%p3104_p11)
}
  0x61   : > { %2780 = dma.hbm_to_vmem [thread:$0]  (!%p3254_p5), %s3759_s15, 16, %s516_s22, [#allocation11]  }
  0x62   : > { %p3772_p12 = scmp.ne.s32.totalorder %s3768_s24, 0 }
  0x63   : > { %p3773_p13 = scmp.ne.s32.totalorder (!%p3772_p12), %s3767_s23, 0 }
  0x64   : > { %538 = sbr.rel (%p3772_p12) target bundleno = 1092 (0x444), region = 84 }
  0x69   : > { %3113 = dma.done.wait (%p3773_p13), [#allocation3], 1024  }
  0x6a   : > { %3115 = vsyncadd (%p3773_p13), [#allocation3], 4294966272 }
  0x6b   : > { %3117 = dma.done.wait (%p3773_p13), [#allocation5], 1040  }
  0x6c   : > { %3119 = vsyncadd (%p3773_p13), [#allocation5], 4294966256 }
  0x6d   : > { %3121 = dma.done.wait (%p3773_p13), [#allocation8], 2048  }
  0x6e   : > { %3123 = vsyncadd (%p3773_p13), [#allocation8], 4294965248 }
  0x6f   : > { %3125 = dma.done.wait (%p3773_p13), [#allocation11], 1040  }
  0x70   : > { %3127 = vsyncadd (%p3773_p13), [#allocation11], 4294966256  ;;  %s3774_s24 = sadd.s32 4294967295, %s3130_s21   ;;  %v633_v0 = vlaneseq  ;;  %v2816_v2 = vld [vmem:[%s3745_s1 + $0x38] sm:$0xff]   ;;  %v2817_v3 = vld [vmem:[%s3745_s1 + $0x30] sm:$0xff]   ;;  %s3777_s28 = sld [smem:[#allocation17_spill]] }
  0x71   : > { %s2332_s29 = sshll.u32 %s3774_s24, 1  ;;  %2531 = vmatprep.subr.bf16.mxu0 %v2816_v2  ;;  %v2818_v5 = vld [vmem:[%s3745_s1 + $0x28] sm:$0xff]   ;;  %v2819_v6 = vld [vmem:[%s3745_s1 + $0x20] sm:$0xff]   ;;  %v2824_v10 = vld [vmem:[%s3747_s3 + $0x38] sm:$0xff]   ;;  %v3141_v42 = vmov 0.0   ;;  %vm3142_vm3 = vmmov 0  }
  0x72   : > { %p615_p5 = scmp.lt.s32.totalorder %s2332_s29, 3  ;;  %v3363_v1 = vshrl.u32 %v633_v0, 7  ;;  %2532 = vmatpush3.bf16.msra.mxu0 %v2816_v2  ;;  %v2825_v11 = vld [vmem:[%s3747_s3 + $0x30] sm:$0xff]   ;;  %v2820_v12 = vld [vmem:[%s3745_s1 + $0x18] sm:$0xff]   ;;  %2551 = vmatprep.subr.bf16.mxu1 %v2824_v10  ;;  %v2826_v14 = vld [vmem:[%s3747_s3 + $0x28] sm:$0xff]   ;;  %vm991_vm4 = vcmask 1041409  }
  0x73   : > { %2533 = vmatprep.subr.bf16.mxu0 %v2817_v3  ;;  %2552 = vmatpush3.bf16.msra.mxu1 %v2824_v10  ;;  %v2821_v13 = vld [vmem:[%s3745_s1 + $0x10] sm:$0xff]   ;;  %v2827_v15 = vld [vmem:[%s3747_s3 + $0x20] sm:$0xff]   ;;  %v2822_v16 = vld [vmem:[%s3745_s1 + $0x8] sm:$0xff]   ;;  %vm1055_vm6 = vcmask 1042434   ;;  %vm1057_vm7 = vcmask 1043459  }
  0x74   : > { %s3779_s29 = smov (!%p615_p5, %s2332_s29), 3  ;;  %vm635_vm0 = vcmp.eq.s32.totalorder %v3363_v1, 7  ;;  %2553 = vmatprep.subr.bf16.mxu1 %v2825_v11  ;;  %v2828_v17 = vld [vmem:[%s3747_s3 + $0x18] sm:$0xff]   ;;  %v2823_v18 = vld [vmem:[%s3745_s1] sm:$0xff]   ;;  %v2829_v22 = vld [vmem:[%s3747_s3 + $0x10] sm:$0xff]   ;;  %vm986_vm5 = vcmp.eq.s32.totalorder %v3363_v1, 1 }
  0x75   : > { %s2435_s17 = sshll.u32 %s3779_s29, 4  ;;  %vm3377_vm1 = vmneg %vm635_vm0  ;;  %v2830_v23 = vld [vmem:[%s3747_s3 + $0x8] sm:$0xff]   ;;  %v2831_v24 = vld [vmem:[%s3747_s3] sm:$0xff]  }
  0x76   : > { %s3389_s20 = scalar_lea.vmem %s3777_s28, %s2435_s17  ;;  %2534 = vmatpush3.bf16.msra.mxu0 %v2817_v3  ;;  %vm2349_vm2 = vmpackc.low %vm3377_vm1, %vm3377_vm1  ;;  %v2338_v27 = vld [vmem:[%s3746_s2] ss:$0 sm:$0xff]  ;;  %v2832_v40 = vld [vmem:[%s3749_s5 + $0x38] sm:$0xff]   ;;  %s626_s22 = scalar_lea.vmem %s3760_s16, %s2435_s17 }
  0x77   : > { %2535 = vmatprep.subr.bf16.mxu0 %v2818_v5  ;;  %v3398_v7 = vld [vmem:[%s3389_s20] sm:$0xff]  ;;  %v3401_v8 = vld [vmem:[%s3389_s20 + $0x8] sm:$0xff]  ;;  %2554 = vmatpush3.bf16.msra.mxu1 %v2825_v11  ;;  %v3441_v19 = vld [vmem:[%s3389_s20 + $0x10] sm:$0xff] }
  0x78   : > { %v3405_v9 = vpack.c.bf16 %v3401_v8, %v3398_v7  ;;  %2555 = vmatprep.subr.bf16.mxu1 %v2826_v14  ;;  %v3444_v20 = vld [vmem:[%s3389_s20 + $0x18] sm:$0xff]  ;;  %v2834_v43 = vld [vmem:[%s3749_s5 + $0x30] sm:$0xff]   ;;  %v2836_v45 = vld [vmem:[%s3749_s5 + $0x28] sm:$0xff]  }
  0x79   : > { %v3448_v21 = vpack.c.bf16 %v3444_v20, %v3441_v19  ;;  %v2833_v41 = vld [vmem:[%s3750_s6 + $0x38] sm:$0xff]   ;;  %v2835_v44 = vld [vmem:[%s3750_s6 + $0x30] sm:$0xff]   ;;  %v2837_v46 = vld [vmem:[%s3750_s6 + $0x28] sm:$0xff]  }
  0x7a   : > { %2536 = vmatpush3.bf16.msra.mxu0 %v2818_v5  ;;  %2547 = vmatprep.mubr.msk.bf16.mxu0 %vm2349_vm2, %v3405_v9  ;;  %v2838_v47 = vld [vmem:[%s3749_s5 + $0x20] sm:$0xff]   ;;  %v2840_v49 = vld [vmem:[%s3749_s5 + $0x18] sm:$0xff]   ;;  %v2842_v51 = vld [vmem:[%s3749_s5 + $0x10] sm:$0xff]  }
  0x7b   : > { %2537 = vmatprep.subr.bf16.mxu0 %v2819_v6  ;;  %2556 = vmatpush3.bf16.msra.mxu1 %v2826_v14  ;;  %v2839_v48 = vld [vmem:[%s3750_s6 + $0x20] sm:$0xff]   ;;  %v2841_v50 = vld [vmem:[%s3750_s6 + $0x18] sm:$0xff]   ;;  %v2843_v52 = vld [vmem:[%s3750_s6 + $0x10] sm:$0xff]  }
  0x7c   : > { %2557 = vmatprep.subr.bf16.mxu1 %v2827_v15  ;;  %v2844_v53 = vld [vmem:[%s3749_s5 + $0x8] sm:$0xff]   ;;  %v2846_v55 = vld [vmem:[%s3749_s5] sm:$0xff]   ;;  %v3542_v58 = vld [vmem:[%s3752_s8 + $0x38] sm:$0xff]  }
  0x7d   : > { %v2845_v54 = vld [vmem:[%s3750_s6 + $0x8] sm:$0xff]   ;;  %v2847_v56 = vld [vmem:[%s3750_s6] sm:$0xff]  }
  0x7e   : > { %2538 = vmatpush3.bf16.msra.mxu0 %v2819_v6  ;;  %v3536_v57 = vld [vmem:[#allocation7 + $0x38] sm:$0xff]  }
  0x7f   : > { %2539 = vmatprep.subr.bf16.mxu0 %v2820_v12  ;;  %2558 = vmatpush3.bf16.msra.mxu1 %v2827_v15  ;;  %v2357_v59 = vld [vmem:[%s3748_s4] ss:$0 sm:$0xff] }
  0x80   : > { %2559 = vmatprep.subr.bf16.mxu1 %v2828_v17 }
  0x82   : > { %2540 = vmatpush3.bf16.msra.mxu0 %v2820_v12 }
  0x83   : > { %2541 = vmatprep.subr.bf16.mxu0 %v2821_v13  ;;  %2560 = vmatpush3.bf16.msra.mxu1 %v2828_v17 }
  0x84   : > { %2561 = vmatprep.subr.bf16.mxu1 %v2829_v22 }
  0x86   : > { %2542 = vmatpush3.bf16.msra.mxu0 %v2821_v13 }
  0x87   : > { %2543 = vmatprep.subr.bf16.mxu0 %v2822_v16  ;;  %2562 = vmatpush3.bf16.msra.mxu1 %v2829_v22 }
  0x88   : > { %2563 = vmatprep.subr.bf16.mxu1 %v2830_v23 }
  0x8a   : > { %2544 = vmatpush3.bf16.msra.mxu0 %v2822_v16 }
  0x8b   : > { %2545 = vmatprep.subr.bf16.mxu0 %v2823_v18  ;;  %2564 = vmatpush3.bf16.msra.mxu1 %v2830_v23 }
  0x8c   : > { %2565 = vmatprep.subr.bf16.mxu1 %v2831_v24 }
  0x8e   : > { %2546 = vmatpush3.bf16.msra.mxu0 %v2823_v18 }
  0x8f   : > { %2566 = vmatpush3.bf16.msra.mxu1 %v2831_v24  ;;  %2571 = vmatprep.subr.bf16.mxu0 %v3141_v42 }
  0x90   : > { %2591 = vmatprep.subr.bf16.mxu1 %v3141_v42 }
  0x91   : > { %2548 = vmatmul.mubr.msk.bf16.vlgmr.msra.gmra.mxu0 %vm2349_vm2, %v3448_v21 }
  0x92   : > { %2572 = vmatpush3.bf16.msra.mxu0 %v2833_v41  ;;  %2587 = vmatprep.mubr.msk.bf16.mxu0 %vm3142_vm3, %v3141_v42 }
  0x93   : > { %2573 = vmatprep.subr.bf16.mxu0 %v3141_v42 }
  0x96   : > { %2574 = vmatpush3.bf16.msra.mxu0 %v2835_v44 }
  0x97   : > { %2575 = vmatprep.subr.bf16.mxu0 %v3141_v42 }
  0x9a   : > { %2576 = vmatpush3.bf16.msra.mxu0 %v2837_v46 }
  0x9b   : > { %2577 = vmatprep.subr.bf16.mxu0 %v3141_v42 }
  0x9e   : > { %2578 = vmatpush3.bf16.msra.mxu0 %v2839_v48 }
  0x9f   : > { %2579 = vmatprep.subr.bf16.mxu0 %v3141_v42 }
  0xa2   : > { %2580 = vmatpush3.bf16.msra.mxu0 %v2841_v50 }
  0xa3   : > { %2581 = vmatprep.subr.bf16.mxu0 %v3141_v42 }
  0xa6   : > { %2582 = vmatpush3.bf16.msra.mxu0 %v2843_v52 }
  0xa7   : > { %2583 = vmatprep.subr.bf16.mxu0 %v3141_v42 }
  0xaa   : > { %2584 = vmatpush3.bf16.msra.mxu0 %v2845_v54 }
  0xab   : > { %2585 = vmatprep.subr.bf16.mxu0 %v3141_v42 }
  0xae   : > { %2586 = vmatpush3.bf16.msra.mxu0 %v2847_v56 }
  0xaf   : > { %2611 = vmatprep.subr.bf16.mxu0 %v3542_v58 }
 0x151   : > { %v2549_v25 = vpop.f32.mrf.mxu0 }
 0x152   : > { %v758_v31 = vadd.f32 %v2549_v25, %v2338_v27 }
 0x153   : > { %v749_v26 = vpop.f32.mrf.mxu0 }
 0x154   : > { %v750_v29 = vadd.f32 %v2338_v27, %v749_v26  ;;  %v766_v37 = vmax.f32 %v758_v31, 0.0 }
 0x155   : > { %v2550_v28 = vpop.f32.mrf.mxu0 }
 0x156   : > { %v761_v30 = vadd.f32 %v2550_v28, %v2338_v27  ;;  %v764_v35 = vmax.f32 %v750_v29, 0.0 }
 0x157   : > { %v752_v32 = vpop.f32.mrf.mxu0 }
 0x158   : > { %v753_v33 = vadd.f32 %v2338_v27, %v752_v32  ;;  %v767_v34 = vmax.f32 %v761_v30, 0.0 }
 0x15a   : > { %v765_v36 = vmax.f32 %v753_v33, 0.0  ;;  %v769_v39 = vpack.c.bf16 %v767_v34, %v766_v37 }
 0x15c   : > { %v768_v38 = vpack.c.bf16 %v765_v36, %v764_v35 }
 0x15e   : > { %2567 = vmatprep.mubr.bf16.mxu1 %v768_v38 }
 0x15f   : > { %2568 = vmatmul.mubr.bf16.vlgmr.msra.gmra.mxu1 %v769_v39 }
 0x160   : > { %2592 = vmatpush3.bf16.msra.mxu1 %v2832_v40  ;;  %2607 = vmatprep.mubr.msk.bf16.mxu1 %vm3142_vm3, %v3141_v42 }
 0x161   : > { %2593 = vmatprep.subr.bf16.mxu1 %v3141_v42 }
 0x164   : > { %2594 = vmatpush3.bf16.msra.mxu1 %v2834_v43 }
 0x165   : > { %2595 = vmatprep.subr.bf16.mxu1 %v3141_v42 }
 0x168   : > { %2596 = vmatpush3.bf16.msra.mxu1 %v2836_v45 }
 0x169   : > { %2597 = vmatprep.subr.bf16.mxu1 %v3141_v42 }
 0x16c   : > { %2598 = vmatpush3.bf16.msra.mxu1 %v2838_v47 }
 0x16d   : > { %2599 = vmatprep.subr.bf16.mxu1 %v3141_v42 }
 0x170   : > { %2600 = vmatpush3.bf16.msra.mxu1 %v2840_v49 }
 0x171   : > { %2601 = vmatprep.subr.bf16.mxu1 %v3141_v42 }
 0x174   : > { %2602 = vmatpush3.bf16.msra.mxu1 %v2842_v51 }
 0x175   : > { %2603 = vmatprep.subr.bf16.mxu1 %v3141_v42 }
 0x178   : > { %2604 = vmatpush3.bf16.msra.mxu1 %v2844_v53 }
 0x179   : > { %2605 = vmatprep.subr.bf16.mxu1 %v3141_v42 }
 0x17c   : > { %2606 = vmatpush3.bf16.msra.mxu1 %v2846_v55 }
 0x17d   : > { %2631 = vmatprep.subr.bf16.mxu1 %v3536_v57 }
 0x21f   : > { %v2569_v60 = vpop.f32.mrf.mxu1 }
 0x220   : > { %v884_v61 = vadd.f32 %v2569_v60, %v2357_v59 }
 0x221   : > { %v875_v62 = vpop.f32.mrf.mxu1 }
 0x222   : > { %v902_v63 = vrot.slane %v884_v61, 4  ;;  %v876_v0 = vadd.f32 %v2357_v59, %v875_v62 }
 0x223   : > { %v2570_v2 = vpop.f32.mrf.mxu1 }
 0x224   : > { %v903_v3 = vmax.f32 %v884_v61, %v902_v63  ;;  %v890_v4 = vrot.slane %v876_v0, 4  ;;  %v887_v5 = vadd.f32 %v2570_v2, %v2357_v59 }
 0x225   : > { %v878_v6 = vpop.f32.mrf.mxu1 }
 0x226   : > { %v904_v10 = vrot.slane %v903_v3, 2  ;;  %v891_v11 = vmax.f32 %v876_v0, %v890_v4  ;;  %v908_v12 = vrot.slane %v887_v5, 4  ;;  %v879_v13 = vadd.f32 %v2357_v59, %v878_v6 }
 0x228   : > { %v905_v14 = vmax.f32 %v903_v3, %v904_v10  ;;  %v892_v15 = vrot.slane %v891_v11, 2  ;;  %v909_v16 = vmax.f32 %v887_v5, %v908_v12  ;;  %v896_v17 = vrot.slane %v879_v13, 4 }
 0x22a   : > { %v906_v18 = vrot.slane %v905_v14, 1  ;;  %v893_v22 = vmax.f32 %v891_v11, %v892_v15  ;;  %v910_v23 = vrot.slane %v909_v16, 2  ;;  %v897_v24 = vmax.f32 %v879_v13, %v896_v17 }
 0x22b   : > { %v638_v15 = vsel %vm635_vm0, 0.0, %v3441_v19 }
 0x22c   : > { %v907_v25 = vmax.f32 %v905_v14, %v906_v18  ;;  %v894_v26 = vrot.slane %v893_v22, 1  ;;  %v911_v27 = vmax.f32 %v909_v16, %v910_v23  ;;  %v898_v28 = vrot.slane %v897_v24, 2 }
 0x22d   : > { %v636_v18 = vsel %vm635_vm0, 0.0, %v3398_v7 }
 0x22e   : > { %v916_v29 = vsub.f32 %v884_v61, %v907_v25  ;;  %v895_v30 = vmax.f32 %v893_v22, %v894_v26  ;;  %v912_v31 = vrot.slane %v911_v27, 1  ;;  %v899_v32 = vmax.f32 %v897_v24, %v898_v28 }
 0x22f   : > { %v639_v25 = vsel %vm635_vm0, 0.0, %v3444_v20 }
 0x230   : > { %v922_v33 = vmul.f32 1.442695, %v916_v29  ;;  %v914_v34 = vsub.f32 %v876_v0, %v895_v30  ;;  %v913_v35 = vmax.f32 %v911_v27, %v912_v31  ;;  %v900_v36 = vrot.slane %v899_v32, 1 }
 0x231   : > { %v637_v30 = vsel %vm635_vm0, 0.0, %v3401_v8 }
 0x232   : > { %2896 = vpow2.f32 %v922_v33  ;;  %v918_v37 = vmul.f32 1.442695, %v914_v34  ;;  %v917_v38 = vsub.f32 %v887_v5, %v913_v35  ;;  %v901_v39 = vmax.f32 %v899_v32, %v900_v36 }
 0x234   : > { %2898 = vpow2.f32 %v918_v37  ;;  %v924_v40 = vmul.f32 1.442695, %v917_v38  ;;  %v915_v41 = vsub.f32 %v879_v13, %v901_v39 }
 0x236   : > { %2900 = vpow2.f32 %v924_v40  ;;  %v920_v43 = vmul.f32 1.442695, %v915_v41 }
 0x238   : > { %2902 = vpow2.f32 %v920_v43 }
 0x23f   : > { %v2897_v44 = vpop.eup %2896 }
 0x240   : > { %v938_v45 = vrot.slane %v2897_v44, 4 }
 0x241   : > { %v2899_v46 = vpop.eup %2898 }
 0x242   : > { %v939_v47 = vadd.f32 %v2897_v44, %v938_v45  ;;  %v926_v48 = vrot.slane %v2899_v46, 4 }
 0x243   : > { %v2901_v49 = vpop.eup %2900 }
 0x244   : > { %v940_v50 = vrot.slane %v939_v47, 2  ;;  %v927_v51 = vadd.f32 %v2899_v46, %v926_v48  ;;  %v944_v52 = vrot.slane %v2901_v49, 4 }
 0x245   : > { %v2903_v53 = vpop.eup %2902 }
 0x246   : > { %v941_v54 = vadd.f32 %v940_v50, %v939_v47  ;;  %v928_v55 = vrot.slane %v927_v51, 2  ;;  %v945_v56 = vadd.f32 %v2901_v49, %v944_v52  ;;  %v932_v59 = vrot.slane %v2903_v53, 4 }
 0x248   : > { %v942_v60 = vrot.slane %v941_v54, 1  ;;  %v929_v61 = vadd.f32 %v928_v55, %v927_v51  ;;  %v946_v62 = vrot.slane %v945_v56, 2  ;;  %v933_v63 = vadd.f32 %v2903_v53, %v932_v59 }
 0x249   : > { %v3143_v51 = vmov 1983009808  }
 0x24a   : > { %v930_v0 = vrot.slane %v929_v61, 1  ;;  %v947_v2 = vadd.f32 %v946_v62, %v945_v56  ;;  %v934_v3 = vrot.slane %v933_v63, 2  ;;  %v943_v4 = vadd.f32 %v942_v60, %v941_v54 }
 0x24b   : > { %v1002_v52 = vunpack.c.l.s4 %v3143_v51 }
 0x24c   : > { %v948_v5 = vrot.slane %v947_v2, 1  ;;  %v935_v6 = vadd.f32 %v934_v3, %v933_v63  ;;  %v931_v10 = vadd.f32 %v930_v0, %v929_v61  ;;  %2904 = vrcp.f32 %v943_v4 }
 0x24d   : > { %v1003_v61 = vunpack.c.0.s8 %v1002_v52 }
 0x24e   : > { %v936_v11 = vrot.slane %v935_v6, 1  ;;  %v949_v12 = vadd.f32 %v948_v5, %v947_v2  ;;  %2906 = vrcp.f32 %v931_v10 }
 0x24f   : > { %v1006_v4 = vsub.s32 %v1003_v61, %v3363_v1 }
 0x250   : > { %v937_v13 = vadd.f32 %v936_v11, %v935_v6  ;;  %2908 = vrcp.f32 %v949_v12 }
 0x252   : > { %2910 = vrcp.f32 %v937_v13 }
 0x259   : > { %v2905_v14 = vpop.eup %2904 }
 0x25a   : > { %v956_v16 = vmul.f32 %v2905_v14, %v2897_v44 }
 0x25b   : > { %v2907_v17 = vpop.eup %2906 }
 0x25c   : > { %v954_v22 = vmul.f32 %v2907_v17, %v2899_v46  ;;  %v960_v23 = vmul.f32 %v956_v16, %v638_v15 }
 0x25d   : > { %v2909_v24 = vpop.eup %2908 }
 0x25e   : > { %v957_v26 = vmul.f32 %v2909_v24, %v2901_v49  ;;  %v958_v27 = vmul.f32 %v954_v22, %v636_v18  ;;  %v974_v28 = vrot.slane %v960_v23, 4 }
 0x25f   : > { %v2911_v29 = vpop.eup %2910 }
 0x260   : > { %v955_v31 = vmul.f32 %v2911_v29, %v2903_v53  ;;  %v961_v32 = vmul.f32 %v957_v26, %v639_v25  ;;  %v962_v33 = vrot.slane %v958_v27, 4  ;;  %v975_v34 = vadd.f32 %v974_v28, %v960_v23  ;;  %v2855_v29 = vld [vmem:[%s3752_s8 + $0x30] sm:$0xff]  }
 0x262   : > { %v959_v35 = vmul.f32 %v955_v31, %v637_v30  ;;  %v963_v36 = vadd.f32 %v962_v33, %v958_v27  ;;  %v976_v37 = vrot.slane %v975_v34, 2  ;;  %v980_v38 = vrot.slane %v961_v32, 4  ;;  %v2849_v27 = vld [vmem:[#allocation7 + $0x30] sm:$0xff]   ;;  %v2850_v30 = vld [vmem:[#allocation7 + $0x28] sm:$0xff]  }
 0x263   : > { %v2857_v31 = vld [vmem:[%s3752_s8 + $0x28] sm:$0xff]   ;;  %v2861_v33 = vld [vmem:[%s3752_s8 + $0x18] sm:$0xff]  }
 0x264   : > { %v964_v39 = vrot.slane %v963_v36, 2  ;;  %v968_v40 = vrot.slane %v959_v35, 4  ;;  %v977_v41 = vadd.f32 %v976_v37, %v975_v34  ;;  %v981_v43 = vadd.f32 %v980_v38, %v961_v32  ;;  %v2851_v32 = vld [vmem:[#allocation7 + $0x20] sm:$0xff]   ;;  %v2863_v34 = vld [vmem:[%s3752_s8 + $0x10] sm:$0xff]  }
 0x265   : > { %v2858_v37 = vld [vmem:[#allocation7] sm:$0xff]  }
 0x266   : > { %v965_v44 = vadd.f32 %v964_v39, %v963_v36  ;;  %v969_v45 = vadd.f32 %v968_v40, %v959_v35  ;;  %v982_v46 = vrot.slane %v981_v43, 2  ;;  %v978_v47 = vrot.slane %v977_v41, 1  ;;  %v2856_v35 = vld [vmem:[#allocation7 + $0x8] sm:$0xff]   ;;  %v2867_v38 = vld [vmem:[%s3752_s8] sm:$0xff]   ;;  %v2869_v40 = vld [vmem:[#allocation2 + $0x38] sm:$0xff]  }
 0x267   : > { %v2865_v36 = vld [vmem:[%s3752_s8 + $0x8] sm:$0xff]   ;;  %v2860_v39 = vld [vmem:[#allocation9 + $0x38] sm:$0xff]  }
 0x268   : > { %v966_v48 = vrot.slane %v965_v44, 1  ;;  %v970_v49 = vrot.slane %v969_v45, 2  ;;  %v983_v50 = vadd.f32 %v982_v46, %v981_v43  ;;  %v979_v56 = vadd.f32 %v978_v47, %v977_v41  ;;  %v2862_v41 = vld [vmem:[#allocation9 + $0x30] sm:$0xff]   ;;  %v2866_v47 = vld [vmem:[#allocation9 + $0x20] sm:$0xff]  }
 0x269   : > { %v2871_v43 = vld [vmem:[#allocation2 + $0x30] sm:$0xff]   ;;  %v1258_v46 = vpack.c.bf16 %v3401_v8, %v3401_v8  ;;  %v1260_v8 = vpack.c.bf16 %v3444_v20, %v3444_v20 }
 0x26a   : > { %v967_v53 = vadd.f32 %v966_v48, %v965_v44  ;;  %v971_v54 = vadd.f32 %v970_v49, %v969_v45  ;;  %v984_v55 = vrot.slane %v983_v50, 1  ;;  %v1028_v2 = vpack.c.bf16 %v979_v56, %v979_v56  ;;  %v2864_v44 = vld [vmem:[#allocation9 + $0x28] sm:$0xff]   ;;  %v2875_v49 = vld [vmem:[#allocation2 + $0x20] sm:$0xff]  }
 0x26b   : > { %v2873_v45 = vld [vmem:[#allocation2 + $0x28] sm:$0xff]   ;;  %v1259_v48 = vpack.c.bf16 %v3441_v19, %v3441_v19  ;;  %v1508_v51 = vunpack.c.l.b16 %v1258_v46  ;;  %v2870_v19 = vld [vmem:[#allocation9 + $0x10] sm:$0xff]  }
 0x26c   : > { %v972_v59 = vrot.slane %v971_v54, 1  ;;  %v985_v60 = vadd.f32 %v984_v55, %v983_v50  ;;  %v1026_v0 = vpack.c.bf16 %v967_v53, %v967_v53  ;;  %v1052_v17 = vunpack.c.l.b16 %v1028_v2  ;;  %v2872_v20 = vld [vmem:[#allocation9 + $0x8] sm:$0xff]   ;;  %v2874_v2 = vld [vmem:[#allocation9] sm:$0xff]  }
 0x26d   : > { %v1509_v52 = vunpack.c.l.b16 %v1259_v48  ;;  %v1512_v55 = vrot.slane %v1508_v51, 6 }
 0x26e   : > { %v973_v62 = vadd.f32 %v972_v59, %v971_v54  ;;  %v993_v63 = vsel %vm991_vm4, %v985_v60, %v979_v56  ;;  %v1029_v6 = vpack.c.bf16 %v985_v60, %v985_v60  ;;  %v1050_v14 = vunpack.c.l.b16 %v1026_v0  ;;  %v2878_v0 = vld [vmem:[#allocation2 + $0x8] sm:$0xff]  }
 0x26f   : > { %v997_v11 = vsel %vm986_vm5, 0.0, %v993_v63  ;;  %v1514_v59 = vrot.slane %v1509_v52, 5 }
 0x270   : > { %v992_v3 = vsel %vm991_vm4, %v973_v62, %v967_v53  ;;  %v1027_v5 = vpack.c.bf16 %v973_v62, %v973_v62  ;;  %v1053_v22 = vunpack.c.l.b16 %v1029_v6  ;;  %v2876_v53 = vld [vmem:[#allocation2 + $0x18] sm:$0xff]  }
 0x271   : > { %v996_v10 = vsel %vm986_vm5, 0.0, %v992_v3  ;;  %v1251_v12 = vsel %vm1055_vm6, %v979_v56, %v992_v3  ;;  %v1510_v56 = vunpack.c.l.b16 %v1260_v8  ;;  %v2880_v6 = vld [vmem:[#allocation4 + $0x38] sm:$0xff]  }
 0x272   : > { %v1000_v13 = vcombine.low %v996_v10, %v997_v11  ;;  %v1051_v15 = vunpack.c.l.b16 %v1027_v5  ;;  %v3566_v16 = vsel %vm1057_vm7, %v985_v60, %v1251_v12  ;;  %v2877_v60 = vld [vmem:[#allocation2 + $0x10] sm:$0xff]   ;;  %v2881_v10 = vld [vmem:[#allocation10 + $0x38] sm:$0xff]  }
 0x273   : > { %v1516_v62 = vrot.slane %v1510_v56, 4  ;;  %v2882_v11 = vld [vmem:[#allocation4 + $0x30] sm:$0xff]  }
 0x274   : > { %v3568_v18 = vrot.slane %v1000_v13, %v1006_v4  ;;  %v1054_v23 = vsel %vm991_vm4, %v1051_v15, %v1050_v14  ;;  %v2879_v4 = vld [vmem:[#allocation2] sm:$0xff]   ;;  %v2883_v12 = vld [vmem:[#allocation10 + $0x30] sm:$0xff]   ;;  %v2884_v13 = vld [vmem:[#allocation4 + $0x28] sm:$0xff]  }
 0x275   : > { %v1056_v24 = vsel %vm1055_vm6, %v1052_v17, %v1054_v23  ;;  %v2885_v14 = vld [vmem:[#allocation10 + $0x28] sm:$0xff]   ;;  %v2886_v15 = vld [vmem:[#allocation4 + $0x20] sm:$0xff]  }
 0x276   : > { %v1009_v25 = vpack.c.bf16 %v3568_v18, %v3568_v18  ;;  %v1058_v26 = vsel %vm1057_vm7, %v1053_v22, %v1056_v24  ;;  %v2887_v17 = vld [vmem:[#allocation10 + $0x20] sm:$0xff]   ;;  %v2888_v22 = vld [vmem:[#allocation4 + $0x18] sm:$0xff]   ;;  %v2890_v24 = vld [vmem:[#allocation4 + $0x10] sm:$0xff]  }
 0x277   : > { %v1059_v28 = vpack.c.b16 %v1058_v26, %v1058_v26  ;;  %v2889_v23 = vld [vmem:[#allocation10 + $0x18] sm:$0xff]   ;;  %v2892_v26 = vld [vmem:[#allocation4 + $0x8] sm:$0xff]  }
 0x278   : > { %2608 = vmatmul.mubr.bf16.vlgmr.msra.gmra.mxu1 %v1009_v25  ;;  %v2891_v25 = vld [vmem:[#allocation10 + $0x10] sm:$0xff]  }
 0x279   : > { %2588 = vmatmul.mubr.bf16.vlgmr.msra.gmra.mxu0 %v1059_v28  ;;  %2632 = vmatpush3.bf16.msra.mxu1 %v3536_v57  ;;  %v2859_v57 = vld [vmem:[%s3752_s8 + $0x20] sm:$0xff]  }
 0x27a   : > { %2633 = vmatprep.subr.bf16.mxu1 %v2849_v27  ;;  %2612 = vmatpush3.bf16.msra.mxu0 %v3542_v58  ;;  %v2852_v58 = vld [vmem:[#allocation7 + $0x18] sm:$0xff]  }
 0x27b   : > { %2613 = vmatprep.subr.bf16.mxu0 %v2855_v29  ;;  %2647 = vmatprep.mubr.bf16.mxu1 %v3405_v9  ;;  %v2894_v28 = vld [vmem:[#allocation4] sm:$0xff]  }
 0x27c   : > { %2627 = vmatprep.mubr.bf16.mxu0 %v3405_v9  ;;  %v2854_v9 = vld [vmem:[#allocation7 + $0x10] sm:$0xff]  }
 0x27d   : > { %2634 = vmatpush3.bf16.msra.mxu1 %v2849_v27  ;;  %v2893_v27 = vld [vmem:[#allocation10 + $0x8] sm:$0xff]  }
 0x27e   : > { %2635 = vmatprep.subr.bf16.mxu1 %v2850_v30  ;;  %2614 = vmatpush3.bf16.msra.mxu0 %v2855_v29  ;;  %v2895_v29 = vld [vmem:[#allocation10] sm:$0xff]  }
 0x27f   : > { %2615 = vmatprep.subr.bf16.mxu0 %v2857_v31 }
 0x281   : > { %2636 = vmatpush3.bf16.msra.mxu1 %v2850_v30 }
 0x282   : > { %2637 = vmatprep.subr.bf16.mxu1 %v2851_v32  ;;  %2616 = vmatpush3.bf16.msra.mxu0 %v2857_v31 }
 0x283   : > { %2617 = vmatprep.subr.bf16.mxu0 %v2859_v57 }
 0x285   : > { %2638 = vmatpush3.bf16.msra.mxu1 %v2851_v32  ;;  %v2382_v32 = vld [vmem:[%s3751_s7] ss:$0 sm:$0xff] }
 0x286   : > { %2639 = vmatprep.subr.bf16.mxu1 %v2852_v58  ;;  %2618 = vmatpush3.bf16.msra.mxu0 %v2859_v57 }
 0x287   : > { %2619 = vmatprep.subr.bf16.mxu0 %v2861_v33 }
 0x289   : > { %2640 = vmatpush3.bf16.msra.mxu1 %v2852_v58 }
 0x28a   : > { %2641 = vmatprep.subr.bf16.mxu1 %v2854_v9  ;;  %2620 = vmatpush3.bf16.msra.mxu0 %v2861_v33 }
 0x28b   : > { %2621 = vmatprep.subr.bf16.mxu0 %v2863_v34 }
 0x28d   : > { %2642 = vmatpush3.bf16.msra.mxu1 %v2854_v9 }
 0x28e   : > { %2643 = vmatprep.subr.bf16.mxu1 %v2856_v35  ;;  %2622 = vmatpush3.bf16.msra.mxu0 %v2863_v34 }
 0x28f   : > { %2623 = vmatprep.subr.bf16.mxu0 %v2865_v36 }
 0x291   : > { %2644 = vmatpush3.bf16.msra.mxu1 %v2856_v35 }
 0x292   : > { %2645 = vmatprep.subr.bf16.mxu1 %v2858_v37  ;;  %2624 = vmatpush3.bf16.msra.mxu0 %v2865_v36 }
 0x293   : > { %2625 = vmatprep.subr.bf16.mxu0 %v2867_v38 }
 0x295   : > { %2646 = vmatpush3.bf16.msra.mxu1 %v2858_v37 }
 0x296   : > { %2671 = vmatprep.subr.bf16.mxu1 %v3141_v42  ;;  %2626 = vmatpush3.bf16.msra.mxu0 %v2867_v38 }
 0x297   : > { %2651 = vmatprep.subr.bf16.mxu0 %v3141_v42 }
 0x298   : > { %2648 = vmatmul.mubr.bf16.vlgmr.msra.gmra.mxu1 %v3448_v21 }
 0x299   : > { %2672 = vmatpush3.bf16.msra.mxu1 %v2860_v39  ;;  %2628 = vmatmul.mubr.bf16.vlgmr.msra.gmra.mxu0 %v3448_v21  ;;  %v1257_v21 = vpack.c.bf16 %v3398_v7, %v3398_v7  ;;  %v2868_v7 = vld [vmem:[#allocation9 + $0x18] sm:$0xff]  }
 0x29a   : > { %2673 = vmatprep.subr.bf16.mxu1 %v3141_v42  ;;  %2652 = vmatpush3.bf16.msra.mxu0 %v2869_v40 }
 0x29b   : > { %2653 = vmatprep.subr.bf16.mxu0 %v3141_v42  ;;  %2687 = vmatprep.mubr.msk.bf16.mxu1 %vm3142_vm3, %v3141_v42  ;;  %v1507_v50 = vunpack.c.l.b16 %v1257_v21 }
 0x29c   : > { %2667 = vmatprep.mubr.msk.bf16.mxu0 %vm3142_vm3, %v3141_v42 }
 0x29d   : > { %2674 = vmatpush3.bf16.msra.mxu1 %v2862_v41  ;;  %v1511_v54 = vrot.slane %v1507_v50, 7 }
 0x29e   : > { %2675 = vmatprep.subr.bf16.mxu1 %v3141_v42  ;;  %2654 = vmatpush3.bf16.msra.mxu0 %v2871_v43 }
 0x29f   : > { %2655 = vmatprep.subr.bf16.mxu0 %v3141_v42  ;;  %v1513_v61 = vsel %vm991_vm4, %v1512_v55, %v1511_v54  ;;  %v3678_v55 = vsub.s32 0, %v3363_v1 }
 0x2a0   : > { %v1515_v63 = vsel %vm1055_vm6, %v1514_v59, %v1513_v61 }
 0x2a1   : > { %2676 = vmatpush3.bf16.msra.mxu1 %v2864_v44  ;;  %v1517_v3 = vsel %vm1057_vm7, %v1516_v62, %v1515_v63 }
 0x2a2   : > { %2677 = vmatprep.subr.bf16.mxu1 %v3141_v42  ;;  %2656 = vmatpush3.bf16.msra.mxu0 %v2873_v45  ;;  %v1518_v5 = vpack.c.b16 %v1517_v3, %v1517_v3 }
 0x2a3   : > { %2657 = vmatprep.subr.bf16.mxu0 %v3141_v42 }
 0x2a5   : > { %2678 = vmatpush3.bf16.msra.mxu1 %v2866_v47 }
 0x2a6   : > { %2679 = vmatprep.subr.bf16.mxu1 %v3141_v42  ;;  %2658 = vmatpush3.bf16.msra.mxu0 %v2875_v49  ;;  %v3144_v49 = vmov 1966171168  }
 0x2a7   : > { %2659 = vmatprep.subr.bf16.mxu0 %v3141_v42  ;;  %v1922_v50 = vunpack.c.l.s4 %v3144_v49 }
 0x2a9   : > { %2680 = vmatpush3.bf16.msra.mxu1 %v2868_v7  ;;  %v1923_v8 = vunpack.c.0.s8 %v1922_v50 }
 0x2aa   : > { %2681 = vmatprep.subr.bf16.mxu1 %v3141_v42  ;;  %2660 = vmatpush3.bf16.msra.mxu0 %v2876_v53 }
 0x2ab   : > { %2661 = vmatprep.subr.bf16.mxu0 %v3141_v42  ;;  %v3673_v52 = vsub.s32 %v1923_v8, %v3363_v1 }
 0x2ad   : > { %2682 = vmatpush3.bf16.msra.mxu1 %v2870_v19 }
 0x2ae   : > { %2683 = vmatprep.subr.bf16.mxu1 %v3141_v42  ;;  %2662 = vmatpush3.bf16.msra.mxu0 %v2877_v60 }
 0x2af   : > { %2663 = vmatprep.subr.bf16.mxu0 %v3141_v42 }
 0x2b1   : > { %2684 = vmatpush3.bf16.msra.mxu1 %v2872_v20 }
 0x2b2   : > { %2685 = vmatprep.subr.bf16.mxu1 %v3141_v42  ;;  %2664 = vmatpush3.bf16.msra.mxu0 %v2878_v0 }
 0x2b3   : > { %2665 = vmatprep.subr.bf16.mxu0 %v3141_v42 }
 0x2b5   : > { %2686 = vmatpush3.bf16.msra.mxu1 %v2874_v2 }
 0x2b6   : > { %2666 = vmatpush3.bf16.msra.mxu0 %v2879_v4  ;;  %2711 = vmatprep.subr.bf16.mxu1 %v3141_v42 }
 0x2b7   : > { %2691 = vmatprep.subr.bf16.mxu0 %v3141_v42 }
 0x2b8   : > { %2688 = vmatmul.mubr.bf16.vlgmr.msra.gmra.mxu1 %v1518_v5 }
 0x2b9   : > { %2668 = vmatmul.mubr.bf16.vlgmr.msra.gmra.mxu0 %v1518_v5  ;;  %2727 = vmatprep.mubr.msk.bf16.mxu1 %vm3142_vm3, %v3141_v42 }
 0x2ba   : > { %2707 = vmatprep.mubr.msk.bf16.mxu0 %vm3142_vm3, %v3141_v42  ;;  %2692 = vmatpush3.bf16.msra.mxu0 %v2880_v6 }
 0x2bb   : > { %2712 = vmatpush3.bf16.msra.mxu1 %v2881_v10  ;;  %2693 = vmatprep.subr.bf16.mxu0 %v3141_v42 }
 0x2bc   : > { %2713 = vmatprep.subr.bf16.mxu1 %v3141_v42 }
 0x2be   : > { %2694 = vmatpush3.bf16.msra.mxu0 %v2882_v11 }
 0x2bf   : > { %2714 = vmatpush3.bf16.msra.mxu1 %v2883_v12  ;;  %2695 = vmatprep.subr.bf16.mxu0 %v3141_v42 }
 0x2c0   : > { %2715 = vmatprep.subr.bf16.mxu1 %v3141_v42 }
 0x2c2   : > { %2696 = vmatpush3.bf16.msra.mxu0 %v2884_v13 }
 0x2c3   : > { %2716 = vmatpush3.bf16.msra.mxu1 %v2885_v14  ;;  %2697 = vmatprep.subr.bf16.mxu0 %v3141_v42 }
 0x2c4   : > { %2717 = vmatprep.subr.bf16.mxu1 %v3141_v42 }
 0x2c6   : > { %2698 = vmatpush3.bf16.msra.mxu0 %v2886_v15 }
 0x2c7   : > { %2718 = vmatpush3.bf16.msra.mxu1 %v2887_v17  ;;  %2699 = vmatprep.subr.bf16.mxu0 %v3141_v42 }
 0x2c8   : > { %2719 = vmatprep.subr.bf16.mxu1 %v3141_v42 }
 0x2ca   : > { %2700 = vmatpush3.bf16.msra.mxu0 %v2888_v22 }
 0x2cb   : > { %2720 = vmatpush3.bf16.msra.mxu1 %v2889_v23  ;;  %2701 = vmatprep.subr.bf16.mxu0 %v3141_v42 }
 0x2cc   : > { %2721 = vmatprep.subr.bf16.mxu1 %v3141_v42 }
 0x2ce   : > { %2702 = vmatpush3.bf16.msra.mxu0 %v2890_v24 }
 0x2cf   : > { %2722 = vmatpush3.bf16.msra.mxu1 %v2891_v25  ;;  %2703 = vmatprep.subr.bf16.mxu0 %v3141_v42 }
 0x2d0   : > { %2723 = vmatprep.subr.bf16.mxu1 %v3141_v42 }
 0x2d2   : > { %2704 = vmatpush3.bf16.msra.mxu0 %v2892_v26 }
 0x2d3   : > { %2724 = vmatpush3.bf16.msra.mxu1 %v2893_v27  ;;  %2705 = vmatprep.subr.bf16.mxu0 %v3141_v42 }
 0x2d4   : > { %2725 = vmatprep.subr.bf16.mxu1 %v3141_v42 }
 0x2d6   : > { %2706 = vmatpush3.bf16.msra.mxu0 %v2894_v28 }
 0x2d7   : > { %2726 = vmatpush3.bf16.msra.mxu1 %v2895_v29 }
 0x338   : > { %v1231_v30 = vpop.f32.mrf.mxu1 }
 0x339   : > { %v1143_v31 = vpop.f32.mrf.mxu0 }
 0x33a   : > { %v1232_v57 = vadd.f32 %v1231_v30, %v1143_v31  ;;  %v2609_v58 = vpop.f32.mrf.mxu1 }
 0x33b   : > { %v2589_v33 = vpop.f32.mrf.mxu0 }
 0x33c   : > { %v1244_v9 = vadd.f32 %v2382_v32, %v1232_v57  ;;  %v1234_v34 = vpop.f32.mrf.mxu1 }
 0x33d   : > { %v1146_v35 = vpop.f32.mrf.mxu0 }
 0x33e   : > { %v1245_v36 = vmul.f32 0.5, %v1244_v9  ;;  %v2610_v37 = vpop.f32.mrf.mxu1 }
 0x33f   : > { %v2590_v38 = vpop.f32.mrf.mxu0 }
 0x340   : > { %2912 = vtanh.f32 %v1245_v36 }
 0x34d   : > { %v2913_v39 = vpop.eup %2912 }
 0x34e   : > { %v1247_v42 = vadd.f32 1.0, %v2913_v39 }
 0x350   : > { %v1248_v40 = vmul.f32 0.5, %v1247_v42 }
 0x352   : > { %v1250_v41 = vsub.f32 1.0, %v1248_v40  ;;  %v1249_v43 = vmul.f32 %v1248_v40, %v3568_v18 }
 0x354   : > { %v1254_v44 = vmul.f32 %v3566_v16, %v1250_v41 }
 0x356   : > { %v1255_v45 = vadd.f32 %v1254_v44, %v1249_v43 }
 0x358   : > { %v1256_v21 = vpack.c.bf16 %v1255_v45, %v1255_v45  ;;  %v3658_v46 = vpop.f32.mrf.mxu1 }
 0x359   : > { %v3660_v47 = vpop.f32.mrf.mxu0 }
 0x35a   : > { %2708 = vmatmul.mubr.bf16.vlgmr.msra.gmra.mxu0 %v1256_v21  ;;  %2728 = vmatmul.mubr.bf16.vlgmr.msra.gmra.mxu1 %v1256_v21  ;;  %v3662_v48 = vpop.f32.mrf.mxu1 }
 0x35b   : > { %v3664_v51 = vpop.f32.mrf.mxu0 }
 0x35c   : > { %v3666_v7 = vpop.f32.mrf.mxu1 }
 0x35d   : > { %v3668_v18 = vpop.f32.mrf.mxu0 }
 0x35e   : > { %v3670_v16 = vpop.f32.mrf.mxu1 }
 0x35f   : > { %v3675_v53 = vpop.f32.mrf.mxu0 }
 0x378   : > { %v1706_v54 = vpop.f32.mrf.mxu1 }
 0x379   : > { %v2040_v19 = vrot.slane %v1706_v54, %v3673_v52  ;;  %v1602_v56 = vpop.f32.mrf.mxu0 }
 0x37a   : > { %v1927_v59 = vrot.slane %v1602_v56, %v3673_v52  ;;  %v2689_v60 = vpop.f32.mrf.mxu1 }
 0x37b   : > { %v2041_v61 = vcombine.high %v2040_v19, %v2040_v19  ;;  %v2048_v20 = vrot.slane %v2040_v19, %v3673_v52  ;;  %v2669_v62 = vpop.f32.mrf.mxu0 }
 0x37c   : > { %v1928_v63 = vcombine.high %v1927_v59, %v1927_v59  ;;  %v1935_v0 = vrot.slane %v1927_v59, %v3673_v52  ;;  %v1709_v2 = vpop.f32.mrf.mxu1 }
 0x37d   : > { %v2055_v3 = vrot.slane %v2041_v61, %v3673_v52  ;;  %v2056_v4 = vcombine.high %v2048_v20, %v2048_v20  ;;  %v2061_v5 = vrot.slane %v2048_v20, %v3678_v55  ;;  %v1605_v6 = vpop.f32.mrf.mxu0 }
 0x37e   : > { %v1942_v10 = vrot.slane %v1928_v63, %v3673_v52  ;;  %v1943_v11 = vcombine.high %v1935_v0, %v1935_v0  ;;  %v1948_v12 = vrot.slane %v1935_v0, %v3678_v55  ;;  %v2690_v13 = vpop.f32.mrf.mxu1 }
 0x37f   : > { %v2057_v14 = vcombine.high %v2055_v3, %v2055_v3  ;;  %v2065_v15 = vrot.slane %v2055_v3, %v3678_v55  ;;  %v2069_v17 = vrot.slane %v2056_v4, %v3678_v55  ;;  %v2078_v22 = vsel %vm635_vm0, %v2061_v5, 0.0  ;;  %v2670_v23 = vpop.f32.mrf.mxu0 }
 0x380   : > { %v2082_v24 = vsub.f32 %v3662_v48, %v2078_v22  ;;  %v1944_v25 = vcombine.high %v1942_v10, %v1942_v10  ;;  %v1952_v26 = vrot.slane %v1942_v10, %v3678_v55  ;;  %v1956_v27 = vrot.slane %v1943_v11, %v3678_v55 }
 0x381   : > { %v2073_v28 = vrot.slane %v2057_v14, %v3678_v55  ;;  %v2079_v29 = vsel %vm635_vm0, %v2065_v15, 0.0  ;;  %v2080_v30 = vsel %vm635_vm0, %v2069_v17, 0.0  ;;  %v1965_v31 = vsel %vm635_vm0, %v1948_v12, 0.0 }
 0x382   : > { %v2083_v32 = vsub.f32 %v3670_v16, %v2079_v29  ;;  %v2084_v57 = vsub.f32 %v3658_v46, %v2080_v30  ;;  %v1960_v58 = vrot.slane %v1944_v25, %v3678_v55  ;;  %v1966_v33 = vsel %vm635_vm0, %v1952_v26, 0.0 }
 0x383   : > { %v2081_v9 = vsel %vm635_vm0, %v2073_v28, 0.0  ;;  %v1967_v34 = vsel %vm635_vm0, %v1956_v27, 0.0  ;;  %v1969_v35 = vsub.f32 %v3664_v51, %v1965_v31  ;;  %v1970_v36 = vsub.f32 %v3675_v53, %v1966_v33 }
 0x384   : > { %v2085_v37 = vsub.f32 %v3666_v7, %v2081_v9  ;;  %v1968_v38 = vsel %vm635_vm0, %v1960_v58, 0.0  ;;  %v1971_v39 = vsub.f32 %v3660_v47, %v1967_v34 }
 0x385   : > { %v1972_v42 = vsub.f32 %v3668_v18, %v1968_v38  ;;  %v2432_v18 = vld [vmem:[#allocation12] ss:$0 sm:$0xff] }
 0x41a   : > { %v1810_v40 = vpop.f32.mrf.mxu0  ;;  %v1914_v41 = vpop.f32.mrf.mxu1 }
 0x41b   : > { %v2093_v43 = vrot.slane %v1914_v41, %v3673_v52  ;;  %v1980_v50 = vrot.slane %v1810_v40, %v3673_v52 }
 0x41c   : > { %v2709_v44 = vpop.f32.mrf.mxu0  ;;  %v2729_v45 = vpop.f32.mrf.mxu1 }
 0x41d   : > { %v2094_v21 = vcombine.high %v2093_v43, %v2093_v43  ;;  %v2101_v46 = vrot.slane %v2093_v43, %v3673_v52  ;;  %v1981_v56 = vcombine.high %v1980_v50, %v1980_v50  ;;  %v1988_v3 = vrot.slane %v1980_v50, %v3673_v52 }
 0x41e   : > { %v1813_v48 = vpop.f32.mrf.mxu0  ;;  %v1917_v49 = vpop.f32.mrf.mxu1 }
 0x41f   : > { %v2108_v1 = vrot.slane %v2094_v21, %v3673_v52  ;;  %v2109_v51 = vcombine.high %v2101_v46, %v2101_v46  ;;  %v2114_v47 = vrot.slane %v2101_v46, %v3678_v55  ;;  %v1995_v4 = vrot.slane %v1981_v56, %v3673_v52  ;;  %v2922_v46 = vld [vmem:[%s3389_s20] sm:$0xff] }
 0x420   : > { %v2710_v7 = vpop.f32.mrf.mxu0  ;;  %v2730_v8 = vpop.f32.mrf.mxu1  ;;  %v1996_v12 = vcombine.high %v1988_v3, %v1988_v3  ;;  %v2001_v14 = vrot.slane %v1988_v3, %v3678_v55 }
 0x421   : > { %v2110_v16 = vcombine.high %v2108_v1, %v2108_v1  ;;  %v2118_v53 = vrot.slane %v2108_v1, %v3678_v55  ;;  %v2122_v54 = vrot.slane %v2109_v51, %v3678_v55  ;;  %v2131_v19 = vadd.f32 %v2114_v47, %v2082_v24  ;;  %v2431_v24 = vld [vmem:[#allocation6] ss:$0 sm:$0xff]  ;;  %v2923_v47 = vld [vmem:[%s3389_s20 + $0x8] sm:$0xff] }
 0x422   : > { %v1997_v13 = vcombine.high %v1995_v4, %v1995_v4  ;;  %v2005_v15 = vrot.slane %v1995_v4, %v3678_v55  ;;  %v2009_v17 = vrot.slane %v1996_v12, %v3678_v55  ;;  %v2018_v23 = vadd.f32 %v2001_v14, %v1969_v35 }
 0x423   : > { %v2126_v59 = vrot.slane %v2110_v16, %v3678_v55  ;;  %v2132_v60 = vadd.f32 %v2118_v53, %v2083_v32  ;;  %v2133_v61 = vadd.f32 %v2122_v54, %v2084_v57  ;;  %v2142_v20 = vadd.f32 %v2432_v18, %v2131_v19  ;;  %v2925_v53 = vld [vmem:[%s3389_s20 + $0x18] sm:$0xff] }
 0x424   : > { %v2013_v22 = vrot.slane %v1997_v13, %v3678_v55  ;;  %v2019_v52 = vadd.f32 %v2005_v15, %v1970_v36  ;;  %v2020_v25 = vadd.f32 %v2009_v17, %v1971_v39  ;;  %v2029_v27 = vadd.f32 %v2431_v24, %v2018_v23 }
 0x425   : > { %v2134_v62 = vadd.f32 %v2126_v59, %v2085_v37  ;;  %v2143_v63 = vadd.f32 %v2432_v18, %v2132_v60  ;;  %v2144_v0 = vadd.f32 %v2432_v18, %v2133_v61  ;;  %v2150_v2 = vmul.f32 0.5, %v2142_v20 }
 0x426   : > { %v2021_v26 = vadd.f32 %v2013_v22, %v1972_v42  ;;  %v2030_v29 = vadd.f32 %v2431_v24, %v2019_v52  ;;  %v2031_v32 = vadd.f32 %v2431_v24, %v2020_v25  ;;  %v2146_v33 = vmax.f32 %v2029_v27, 0.0 }
 0x427   : > { %v2145_v5 = vadd.f32 %v2432_v18, %v2134_v62  ;;  %v2151_v6 = vmul.f32 0.5, %v2143_v63  ;;  %v2152_v10 = vmul.f32 0.5, %v2144_v0  ;;  %2914 = vtanh.f32 %v2150_v2  ;;  %v2924_v18 = vld [vmem:[%s3389_s20 + $0x10] sm:$0xff] }
 0x428   : > { %v2032_v57 = vadd.f32 %v2431_v24, %v2021_v26  ;;  %v2147_v55 = vmax.f32 %v2030_v29, 0.0  ;;  %v2148_v40 = vmax.f32 %v2031_v32, 0.0 }
 0x429   : > { %v2153_v11 = vmul.f32 0.5, %v2145_v5  ;;  %2916 = vtanh.f32 %v2151_v6 }
 0x42a   : > { %2918 = vtanh.f32 %v2152_v10  ;;  %v2149_v41 = vmax.f32 %v2032_v57, 0.0 }
 0x42b   : > { %2920 = vtanh.f32 %v2153_v11 }
 0x434   : > { %v2915_v28 = vpop.eup %2914 }
 0x435   : > { %v2158_v30 = vadd.f32 1.0, %v2915_v28 }
 0x436   : > { %v2917_v31 = vpop.eup %2916 }
 0x437   : > { %v2919_v58 = vpop.eup %2918  ;;  %v2159_v9 = vadd.f32 1.0, %v2917_v31  ;;  %v2162_v34 = vmul.f32 0.5, %v2158_v30 }
 0x438   : > { %v2921_v37 = vpop.eup %2920  ;;  %v2160_v35 = vadd.f32 1.0, %v2919_v58 }
 0x439   : > { %v2161_v36 = vadd.f32 1.0, %v2921_v37  ;;  %v2163_v38 = vmul.f32 0.5, %v2159_v9  ;;  %v2166_v39 = vmul.f32 %v2162_v34, %v2146_v33  ;;  %v2170_v42 = vsub.f32 1.0, %v2162_v34 }
 0x43a   : > { %v2164_v43 = vmul.f32 0.5, %v2160_v35 }
 0x43b   : > { %v2165_v44 = vmul.f32 0.5, %v2161_v36  ;;  %v2167_v45 = vmul.f32 %v2163_v38, %v2147_v55  ;;  %v2171_v21 = vsub.f32 1.0, %v2163_v38  ;;  %v2174_v48 = vmul.f32 %v2922_v46, %v2170_v42 }
 0x43c   : > { %v2168_v49 = vmul.f32 %v2164_v43, %v2148_v40  ;;  %v2172_v50 = vsub.f32 1.0, %v2164_v43 }
 0x43d   : > { %v2169_v1 = vmul.f32 %v2165_v44, %v2149_v41  ;;  %v2173_v51 = vsub.f32 1.0, %v2165_v44  ;;  %v2175_v7 = vmul.f32 %v2923_v47, %v2171_v21  ;;  %v2178_v8 = vadd.f32 %v2174_v48, %v2166_v39 }
 0x43e   : > { %v2176_v16 = vmul.f32 %v2924_v18, %v2172_v50 }
 0x43f   : > { %v2177_v54 = vmul.f32 %v2925_v53, %v2173_v51  ;;  %v2179_v19 = vadd.f32 %v2175_v7, %v2167_v45  ;;  %2182 = vst [vmem:[%s626_s22] sm:$0xff] %v2178_v8 }
 0x440   : > { %v2180_v56 = vadd.f32 %v2176_v16, %v2168_v49 }
 0x441   : > { %v2181_v59 = vadd.f32 %v2177_v54, %v2169_v1  ;;  %2183 = vst [vmem:[%s626_s22 + $0x8] sm:$0xff] %v2179_v19 }
 0x442   : > { %2184 = vst [vmem:[%s626_s22 + $0x10] sm:$0xff] %v2180_v56 }
 0x443   : > { %2185 = vst [vmem:[%s626_s22 + $0x18] sm:$0xff] %v2181_v59 }
 0x444 PF: > { %s30_s21 = sadd.s32 1, %s3130_s21  }
 0x445   : > { %p27_p6 = scmp.ge.s32.totalorder %s30_s21, 4  }
 0x447   :  { %29 = sbr.rel (!%p27_p6) target bundleno = 7 (0x7), region = 143 }
 0x44c   :  { %2210 = vsyncpa [#allocation3], 1 }
 0x44d   :  { %2212 = vsyncpa [#allocation3 + $0x1], 1 }
 0x44e   :  { %2213 = vsyncpa [#allocation5], 1 }
 0x44f   :  { %2214 = vsyncpa [#allocation8], 1 }
 0x450   :  { %2215 = vsyncpa [#allocation11], 1 }

// kernel: nn4snli_forward.8
= control target key start
LH: loop header
LB: loop body
LE: loop exit
PB: predicated region body
PF: predicated region fallthrough
CT: control target
= control target key end

     0   :  { %s3535_s0 = inlined_call_operand.vmem [shape: f32[4,16,128], index: 0, kind: input, shape index: {}]   ;;  %s3536_s1 = inlined_call_operand.vmem [shape: bf16[128,128], index: 1, kind: input, shape index: {}]   ;;  %s3537_s2 = inlined_call_operand.vmem [shape: f32[1,128], index: 2, kind: input, shape index: {}]   ;;  %s3538_s3 = inlined_call_operand.vmem [shape: bf16[128,128], index: 3, kind: input, shape index: {}]   ;;  %s3539_s4 = inlined_call_operand.vmem [shape: f32[1,128], index: 4, kind: input, shape index: {}]   ;;  %s3540_s5 = inlined_call_operand.vmem [shape: bf16[128,128], index: 5, kind: input, shape index: {}]   ;;  %s3541_s6 = inlined_call_operand.vmem [shape: bf16[128,128], index: 6, kind: input, shape index: {}]   ;;  %s3542_s7 = inlined_call_operand.hbm [shape: f32[1,128], index: 7, kind: input, shape index: {}]   ;;  %s3543_s8 = inlined_call_operand.vmem [shape: bf16[128,128], index: 8, kind: input, shape index: {}]   ;;  %s3544_s9 = inlined_call_operand.vmem [shape: bf16[128,128], index: 9, kind: input, shape index: {}]   ;;  %s3545_s10 = inlined_call_operand.vmem [shape: bf16[128,128], index: 10, kind: input, shape index: {}]   ;;  %s3546_s11 = inlined_call_operand.hbm [shape: f32[1,128], index: 11, kind: input, shape index: {}]   ;;  %s3547_s12 = inlined_call_operand.vmem [shape: bf16[128,128], index: 12, kind: input, shape index: {}]   ;;  %s3548_s13 = inlined_call_operand.vmem [shape: bf16[128,128], index: 13, kind: input, shape index: {}]   ;;  %s3549_s14 = inlined_call_operand.vmem [shape: bf16[128,128], index: 14, kind: input, shape index: {}]   ;;  %s3550_s15 = inlined_call_operand.hbm [shape: f32[1,128], index: 15, kind: input, shape index: {}]   ;;  %s3551_s16 = inlined_call_operand.vmem [shape: f32[4,16,128], index: 16, kind: output, shape index: {}]  }
   0x1   :  { %3554 = sst [smem:[#allocation9_spill]] %s3535_s0 }
   0x2   :  { %21 = vsyncpa [#allocation3], 0 }
   0x3   :  { %22 = vsyncpa [#allocation5], 0  ;;  %s2962_s21 = smov 0  }
   0x4 LB: > { %s2213_s22 = sadd.s32 4294967295, %s2868_s21   ;;  %p2215_p0 = scmp.ge.s32.totalorder %s2868_s21, 1  ;;  %s2868_s21 = sphi %s2962_s21, %s28_s21  }
   0x5   : > { %p400_p1 = scmp.lt.s32.totalorder %s2868_s21, 3  ;;  %p2972_p2 = scmp.eq.s32.totalorder %s2213_s22, 0 }
   0x6   : > { %s2870_s25 = smov [#allocation4]   ;;  %s2871_s27 = smov [#allocation2]  }
   0x7   : > { %s3555_s23 = scalar_select %p2972_p2, 1, 0 }
   0x8   : > { %p2976_p3 = pnand %p2215_p0, %p400_p1  ;;  %s451_s26 = sshll.u32 %s2870_s25, 4  ;;  %s452_s26 = int_to_ptr.vmem [resolvable:$true] %s451_s26 }
   0x9   : > { %s431_s28 = sshll.u32 %s2871_s27, 4  ;;  %s2872_s29 = smov [#allocation6]   ;;  %s432_s28 = int_to_ptr.vmem [resolvable:$true] %s431_s28 }
   0xa   : > { %p2635_p4 = pneg %p2976_p3  ;;  %s471_s30 = sshll.u32 %s2872_s29, 4  ;;  %s2988_s30 = int_to_ptr.vmem [resolvable:$true] %s471_s30 }
   0xb   : > { %s2787_s17 = scalar_lea.vmem %s452_s26, 16  ;;  %s2794_s18 = scalar_lea.vmem %s452_s26, 32 }
   0xc   : > { %p2984_p5 = pnand %p2972_p2, %p2635_p4  ;;  %p2788_p7 = scmp.ne.s32.totalorder %s452_s26, %s2787_s17 }
   0xd   : > { %p2795_p10 = scmp.lt.s32.totalorder %s452_s26, %s452_s26  ;;  %p2796_p11 = scmp.lt.s32.totalorder %s2794_s18, %s2787_s17 }
   0xe   : > { %p2778_p6 = pneg %p2984_p5 }
   0xf   : > { %p2797_p12 = por %p2796_p11, %p2795_p10 }
  0x10   : > { %p2790_p8 = pnand %p2788_p7, %p2778_p6 }
  0x12   : > { %p2791_p9 = pneg %p2790_p8 }
  0x14   : > { %p2798_p13 = pnand %p2797_p12, %p2791_p9 }
  0x16   : > { %2801 = shalt.err (!%p2798_p13)
}
  0x17   : > { %2641 = dma.hbm_to_vmem [thread:$0]  (!%p2984_p5), %s3546_s11, 16, %s452_s26, [#allocation5]  }
  0x18   : > { %s2813_s25 = scalar_lea.vmem %s432_s28, 16  ;;  %s2820_s27 = scalar_lea.vmem %s432_s28, 32 }
  0x19   : > { %p2814_p0 = scmp.ne.s32.totalorder %s432_s28, %s2813_s25  ;;  %p2821_p7 = scmp.lt.s32.totalorder %s432_s28, %s432_s28 }
  0x1a   : > { %p2822_p8 = scmp.lt.s32.totalorder %s2820_s27, %s2813_s25 }
  0x1b   : > { %p2816_p1 = pnand %p2814_p0, %p2778_p6 }
  0x1c   : > { %p2823_p2 = por %p2822_p8, %p2821_p7 }
  0x1d   : > { %p2817_p4 = pneg %p2816_p1 }
  0x1f   : > { %p2824_p10 = pnand %p2823_p2, %p2817_p4 }
  0x21   : > { %2827 = shalt.err (!%p2824_p10)
}
  0x22   : > { %2638 = dma.hbm_to_vmem [thread:$0]  (!%p2984_p5), %s3542_s7, 16, %s432_s28, [#allocation3]  }
  0x23   : > { %s2839_s26 = scalar_lea.vmem %s2988_s30, 16  ;;  %s2846_s18 = scalar_lea.vmem %s2988_s30, 32 }
  0x24   : > { %p2840_p9 = scmp.ne.s32.totalorder %s2988_s30, %s2839_s26  ;;  %p2847_p2 = scmp.lt.s32.totalorder %s2988_s30, %s2988_s30 }
  0x25   : > { %p2848_p13 = scmp.lt.s32.totalorder %s2846_s18, %s2839_s26 }
  0x26   : > { %p2842_p11 = pnand %p2840_p9, %p2778_p6 }
  0x27   : > { %p2849_p0 = por %p2848_p13, %p2847_p2 }
  0x28   : > { %p2843_p12 = pneg %p2842_p11 }
  0x2a   : > { %p2850_p1 = pnand %p2849_p0, %p2843_p12 }
  0x2c   : > { %2853 = shalt.err (!%p2850_p1)
}
  0x2d   : > { %2644 = dma.hbm_to_vmem [thread:$0]  (!%p2984_p5), %s3550_s15, 16, %s2988_s30, [#allocation5]  }
  0x2e   : > { %494 = sbr.rel (%p2976_p3) target bundleno = 1034 (0x40a), region = 84  ;;  %p3558_p6 = scmp.ne.s32.totalorder (!%p2976_p3), %s3555_s23, 0 }
  0x33   : > { %2859 = dma.done.wait (%p3558_p6), [#allocation3], 16  }
  0x34   : > { %2861 = vsyncadd (%p3558_p6), [#allocation3], 4294967280 }
  0x35   : > { %2863 = dma.done.wait (%p3558_p6), [#allocation5], 32  }
  0x36   : > { %2865 = vsyncadd (%p3558_p6), [#allocation5], 4294967264  ;;  %s2224_s28 = sshll.u32 %s2213_s22, 1  ;;  %v573_v0 = vlaneseq  ;;  %v2666_v2 = vld [vmem:[%s3536_s1 + $0x38] sm:$0xff]   ;;  %v2667_v3 = vld [vmem:[%s3536_s1 + $0x30] sm:$0xff]   ;;  %s3561_s26 = sld [smem:[#allocation9_spill]] }
  0x37   : > { %p555_p5 = scmp.lt.s32.totalorder %s2224_s28, 3  ;;  %2423 = vmatprep.subr.bf16.mxu0 %v2666_v2  ;;  %v2668_v5 = vld [vmem:[%s3536_s1 + $0x28] sm:$0xff]   ;;  %v2669_v6 = vld [vmem:[%s3536_s1 + $0x20] sm:$0xff]   ;;  %v2674_v10 = vld [vmem:[%s3538_s3 + $0x38] sm:$0xff]   ;;  %v2873_v42 = vmov 0.0   ;;  %vm2874_vm3 = vmmov 0  }
  0x38   : > { %v3034_v1 = vshrl.u32 %v573_v0, 7  ;;  %2424 = vmatpush3.bf16.msra.mxu0 %v2666_v2  ;;  %v2675_v11 = vld [vmem:[%s3538_s3 + $0x30] sm:$0xff]   ;;  %v2670_v12 = vld [vmem:[%s3536_s1 + $0x18] sm:$0xff]   ;;  %2443 = vmatprep.subr.bf16.mxu1 %v2674_v10  ;;  %v2676_v14 = vld [vmem:[%s3538_s3 + $0x28] sm:$0xff]   ;;  %vm930_vm4 = vcmask 1041409   ;;  %vm994_vm5 = vcmask 1042434  }
  0x39   : > { %s3563_s28 = smov (!%p555_p5, %s2224_s28), 3  ;;  %2425 = vmatprep.subr.bf16.mxu0 %v2667_v3  ;;  %2444 = vmatpush3.bf16.msra.mxu1 %v2674_v10  ;;  %v2671_v13 = vld [vmem:[%s3536_s1 + $0x10] sm:$0xff]   ;;  %v2677_v15 = vld [vmem:[%s3538_s3 + $0x20] sm:$0xff]   ;;  %v2672_v16 = vld [vmem:[%s3536_s1 + $0x8] sm:$0xff]   ;;  %vm996_vm6 = vcmask 1043459  }
  0x3a   : > { %vm575_vm0 = vcmp.eq.s32.totalorder %v3034_v1, 0  ;;  %s2327_s22 = sshll.u32 %s3563_s28, 4  ;;  %2445 = vmatprep.subr.bf16.mxu1 %v2675_v11  ;;  %v2678_v17 = vld [vmem:[%s3538_s3 + $0x18] sm:$0xff]   ;;  %v2673_v18 = vld [vmem:[%s3536_s1] sm:$0xff]   ;;  %v2679_v22 = vld [vmem:[%s3538_s3 + $0x10] sm:$0xff]  }
  0x3b   : > { %vm3048_vm1 = vmneg %vm575_vm0  ;;  %v2680_v23 = vld [vmem:[%s3538_s3 + $0x8] sm:$0xff]   ;;  %v2681_v24 = vld [vmem:[%s3538_s3] sm:$0xff]   ;;  %s566_s25 = scalar_lea.vmem %s3551_s16, %s2327_s22 }
  0x3c   : > { %s3060_s18 = scalar_lea.vmem %s3561_s26, %s2327_s22  ;;  %2426 = vmatpush3.bf16.msra.mxu0 %v2667_v3  ;;  %vm2241_vm2 = vmpackc.low %vm3048_vm1, %vm3048_vm1  ;;  %v2230_v27 = vld [vmem:[%s3537_s2] ss:$0 sm:$0xff]  ;;  %v2682_v40 = vld [vmem:[%s3540_s5 + $0x38] sm:$0xff]  }
  0x3d   : > { %2427 = vmatprep.subr.bf16.mxu0 %v2668_v5  ;;  %v3069_v7 = vld [vmem:[%s3060_s18] sm:$0xff]  ;;  %v3072_v8 = vld [vmem:[%s3060_s18 + $0x8] sm:$0xff]  ;;  %2446 = vmatpush3.bf16.msra.mxu1 %v2675_v11  ;;  %v3112_v19 = vld [vmem:[%s3060_s18 + $0x10] sm:$0xff] }
  0x3e   : > { %v3076_v9 = vpack.c.bf16 %v3072_v8, %v3069_v7  ;;  %2447 = vmatprep.subr.bf16.mxu1 %v2676_v14  ;;  %v3115_v20 = vld [vmem:[%s3060_s18 + $0x18] sm:$0xff]  ;;  %v2684_v43 = vld [vmem:[%s3540_s5 + $0x30] sm:$0xff]   ;;  %v2686_v45 = vld [vmem:[%s3540_s5 + $0x28] sm:$0xff]  }
  0x3f   : > { %v3119_v21 = vpack.c.bf16 %v3115_v20, %v3112_v19  ;;  %v2683_v41 = vld [vmem:[%s3541_s6 + $0x38] sm:$0xff]   ;;  %v2685_v44 = vld [vmem:[%s3541_s6 + $0x30] sm:$0xff]   ;;  %v2687_v46 = vld [vmem:[%s3541_s6 + $0x28] sm:$0xff]  }
  0x40   : > { %2428 = vmatpush3.bf16.msra.mxu0 %v2668_v5  ;;  %2439 = vmatprep.mubr.msk.bf16.mxu0 %vm2241_vm2, %v3076_v9  ;;  %v2688_v47 = vld [vmem:[%s3540_s5 + $0x20] sm:$0xff]   ;;  %v2690_v49 = vld [vmem:[%s3540_s5 + $0x18] sm:$0xff]   ;;  %v2692_v51 = vld [vmem:[%s3540_s5 + $0x10] sm:$0xff]  }
  0x41   : > { %2429 = vmatprep.subr.bf16.mxu0 %v2669_v6  ;;  %2448 = vmatpush3.bf16.msra.mxu1 %v2676_v14  ;;  %v2689_v48 = vld [vmem:[%s3541_s6 + $0x20] sm:$0xff]   ;;  %v2691_v50 = vld [vmem:[%s3541_s6 + $0x18] sm:$0xff]   ;;  %v2693_v52 = vld [vmem:[%s3541_s6 + $0x10] sm:$0xff]  }
  0x42   : > { %2449 = vmatprep.subr.bf16.mxu1 %v2677_v15  ;;  %v2694_v53 = vld [vmem:[%s3540_s5 + $0x8] sm:$0xff]   ;;  %v2696_v55 = vld [vmem:[%s3540_s5] sm:$0xff]   ;;  %v3210_v57 = vld [vmem:[%s3547_s12 + $0x38] sm:$0xff]  }
  0x43   : > { %v2695_v54 = vld [vmem:[%s3541_s6 + $0x8] sm:$0xff]   ;;  %v2697_v56 = vld [vmem:[%s3541_s6] sm:$0xff]   ;;  %v3216_v58 = vld [vmem:[%s3543_s8 + $0x38] sm:$0xff]  }
  0x44   : > { %2430 = vmatpush3.bf16.msra.mxu0 %v2669_v6  ;;  %v2249_v59 = vld [vmem:[%s3539_s4] ss:$0 sm:$0xff] }
  0x45   : > { %2431 = vmatprep.subr.bf16.mxu0 %v2670_v12  ;;  %2450 = vmatpush3.bf16.msra.mxu1 %v2677_v15 }
  0x46   : > { %2451 = vmatprep.subr.bf16.mxu1 %v2678_v17 }
  0x48   : > { %2432 = vmatpush3.bf16.msra.mxu0 %v2670_v12 }
  0x49   : > { %2433 = vmatprep.subr.bf16.mxu0 %v2671_v13  ;;  %2452 = vmatpush3.bf16.msra.mxu1 %v2678_v17 }
  0x4a   : > { %2453 = vmatprep.subr.bf16.mxu1 %v2679_v22 }
  0x4c   : > { %2434 = vmatpush3.bf16.msra.mxu0 %v2671_v13 }
  0x4d   : > { %2435 = vmatprep.subr.bf16.mxu0 %v2672_v16  ;;  %2454 = vmatpush3.bf16.msra.mxu1 %v2679_v22 }
  0x4e   : > { %2455 = vmatprep.subr.bf16.mxu1 %v2680_v23 }
  0x50   : > { %2436 = vmatpush3.bf16.msra.mxu0 %v2672_v16 }
  0x51   : > { %2437 = vmatprep.subr.bf16.mxu0 %v2673_v18  ;;  %2456 = vmatpush3.bf16.msra.mxu1 %v2680_v23 }
  0x52   : > { %2457 = vmatprep.subr.bf16.mxu1 %v2681_v24 }
  0x54   : > { %2438 = vmatpush3.bf16.msra.mxu0 %v2673_v18 }
  0x55   : > { %2458 = vmatpush3.bf16.msra.mxu1 %v2681_v24  ;;  %2463 = vmatprep.subr.bf16.mxu0 %v2873_v42 }
  0x56   : > { %2483 = vmatprep.subr.bf16.mxu1 %v2873_v42 }
  0x57   : > { %2440 = vmatmul.mubr.msk.bf16.vlgmr.msra.gmra.mxu0 %vm2241_vm2, %v3119_v21 }
  0x58   : > { %2464 = vmatpush3.bf16.msra.mxu0 %v2683_v41  ;;  %2479 = vmatprep.mubr.msk.bf16.mxu0 %vm2874_vm3, %v2873_v42 }
  0x59   : > { %2465 = vmatprep.subr.bf16.mxu0 %v2873_v42 }
  0x5c   : > { %2466 = vmatpush3.bf16.msra.mxu0 %v2685_v44 }
  0x5d   : > { %2467 = vmatprep.subr.bf16.mxu0 %v2873_v42 }
  0x60   : > { %2468 = vmatpush3.bf16.msra.mxu0 %v2687_v46 }
  0x61   : > { %2469 = vmatprep.subr.bf16.mxu0 %v2873_v42 }
  0x64   : > { %2470 = vmatpush3.bf16.msra.mxu0 %v2689_v48 }
  0x65   : > { %2471 = vmatprep.subr.bf16.mxu0 %v2873_v42 }
  0x68   : > { %2472 = vmatpush3.bf16.msra.mxu0 %v2691_v50 }
  0x69   : > { %2473 = vmatprep.subr.bf16.mxu0 %v2873_v42 }
  0x6c   : > { %2474 = vmatpush3.bf16.msra.mxu0 %v2693_v52 }
  0x6d   : > { %2475 = vmatprep.subr.bf16.mxu0 %v2873_v42 }
  0x70   : > { %2476 = vmatpush3.bf16.msra.mxu0 %v2695_v54 }
  0x71   : > { %2477 = vmatprep.subr.bf16.mxu0 %v2873_v42 }
  0x74   : > { %2478 = vmatpush3.bf16.msra.mxu0 %v2697_v56 }
  0x75   : > { %2503 = vmatprep.subr.bf16.mxu0 %v3216_v58 }
 0x117   : > { %v2441_v25 = vpop.f32.mrf.mxu0 }
 0x118   : > { %v698_v31 = vadd.f32 %v2441_v25, %v2230_v27 }
 0x119   : > { %v689_v26 = vpop.f32.mrf.mxu0 }
 0x11a   : > { %v690_v29 = vadd.f32 %v2230_v27, %v689_v26  ;;  %v706_v37 = vmax.f32 %v698_v31, 0.0 }
 0x11b   : > { %v2442_v28 = vpop.f32.mrf.mxu0 }
 0x11c   : > { %v701_v30 = vadd.f32 %v2442_v28, %v2230_v27  ;;  %v704_v35 = vmax.f32 %v690_v29, 0.0 }
 0x11d   : > { %v692_v32 = vpop.f32.mrf.mxu0 }
 0x11e   : > { %v693_v33 = vadd.f32 %v2230_v27, %v692_v32  ;;  %v707_v34 = vmax.f32 %v701_v30, 0.0 }
 0x120   : > { %v705_v36 = vmax.f32 %v693_v33, 0.0  ;;  %v709_v39 = vpack.c.bf16 %v707_v34, %v706_v37 }
 0x122   : > { %v708_v38 = vpack.c.bf16 %v705_v36, %v704_v35 }
 0x124   : > { %2459 = vmatprep.mubr.bf16.mxu1 %v708_v38 }
 0x125   : > { %2460 = vmatmul.mubr.bf16.vlgmr.msra.gmra.mxu1 %v709_v39 }
 0x126   : > { %2484 = vmatpush3.bf16.msra.mxu1 %v2682_v40  ;;  %2499 = vmatprep.mubr.msk.bf16.mxu1 %vm2874_vm3, %v2873_v42 }
 0x127   : > { %2485 = vmatprep.subr.bf16.mxu1 %v2873_v42 }
 0x12a   : > { %2486 = vmatpush3.bf16.msra.mxu1 %v2684_v43 }
 0x12b   : > { %2487 = vmatprep.subr.bf16.mxu1 %v2873_v42 }
 0x12e   : > { %2488 = vmatpush3.bf16.msra.mxu1 %v2686_v45 }
 0x12f   : > { %2489 = vmatprep.subr.bf16.mxu1 %v2873_v42 }
 0x132   : > { %2490 = vmatpush3.bf16.msra.mxu1 %v2688_v47 }
 0x133   : > { %2491 = vmatprep.subr.bf16.mxu1 %v2873_v42 }
 0x136   : > { %2492 = vmatpush3.bf16.msra.mxu1 %v2690_v49 }
 0x137   : > { %2493 = vmatprep.subr.bf16.mxu1 %v2873_v42 }
 0x13a   : > { %2494 = vmatpush3.bf16.msra.mxu1 %v2692_v51 }
 0x13b   : > { %2495 = vmatprep.subr.bf16.mxu1 %v2873_v42 }
 0x13e   : > { %2496 = vmatpush3.bf16.msra.mxu1 %v2694_v53 }
 0x13f   : > { %2497 = vmatprep.subr.bf16.mxu1 %v2873_v42 }
 0x142   : > { %2498 = vmatpush3.bf16.msra.mxu1 %v2696_v55 }
 0x143   : > { %2523 = vmatprep.subr.bf16.mxu1 %v3210_v57 }
 0x1e5   : > { %v2461_v60 = vpop.f32.mrf.mxu1 }
 0x1e6   : > { %v824_v61 = vadd.f32 %v2461_v60, %v2249_v59 }
 0x1e7   : > { %v815_v62 = vpop.f32.mrf.mxu1 }
 0x1e8   : > { %v842_v63 = vrot.slane %v824_v61, 4  ;;  %v816_v0 = vadd.f32 %v2249_v59, %v815_v62 }
 0x1e9   : > { %v2462_v2 = vpop.f32.mrf.mxu1 }
 0x1ea   : > { %v843_v3 = vmax.f32 %v824_v61, %v842_v63  ;;  %v830_v4 = vrot.slane %v816_v0, 4  ;;  %v827_v5 = vadd.f32 %v2462_v2, %v2249_v59 }
 0x1eb   : > { %v818_v6 = vpop.f32.mrf.mxu1 }
 0x1ec   : > { %v844_v10 = vrot.slane %v843_v3, 2  ;;  %v831_v11 = vmax.f32 %v816_v0, %v830_v4  ;;  %v848_v12 = vrot.slane %v827_v5, 4  ;;  %v819_v13 = vadd.f32 %v2249_v59, %v818_v6 }
 0x1ee   : > { %v845_v14 = vmax.f32 %v843_v3, %v844_v10  ;;  %v832_v15 = vrot.slane %v831_v11, 2  ;;  %v849_v16 = vmax.f32 %v827_v5, %v848_v12  ;;  %v836_v17 = vrot.slane %v819_v13, 4 }
 0x1f0   : > { %v846_v18 = vrot.slane %v845_v14, 1  ;;  %v833_v22 = vmax.f32 %v831_v11, %v832_v15  ;;  %v850_v23 = vrot.slane %v849_v16, 2  ;;  %v837_v24 = vmax.f32 %v819_v13, %v836_v17 }
 0x1f1   : > { %v578_v15 = vsel %vm575_vm0, 0.0, %v3112_v19 }
 0x1f2   : > { %v847_v25 = vmax.f32 %v845_v14, %v846_v18  ;;  %v834_v26 = vrot.slane %v833_v22, 1  ;;  %v851_v27 = vmax.f32 %v849_v16, %v850_v23  ;;  %v838_v28 = vrot.slane %v837_v24, 2 }
 0x1f3   : > { %v576_v18 = vsel %vm575_vm0, 0.0, %v3069_v7 }
 0x1f4   : > { %v856_v29 = vsub.f32 %v824_v61, %v847_v25  ;;  %v835_v30 = vmax.f32 %v833_v22, %v834_v26  ;;  %v852_v31 = vrot.slane %v851_v27, 1  ;;  %v839_v32 = vmax.f32 %v837_v24, %v838_v28 }
 0x1f5   : > { %v579_v25 = vsel %vm575_vm0, 0.0, %v3115_v20 }
 0x1f6   : > { %v862_v33 = vmul.f32 1.442695, %v856_v29  ;;  %v854_v34 = vsub.f32 %v816_v0, %v835_v30  ;;  %v853_v35 = vmax.f32 %v851_v27, %v852_v31  ;;  %v840_v36 = vrot.slane %v839_v32, 1 }
 0x1f7   : > { %v577_v30 = vsel %vm575_vm0, 0.0, %v3072_v8 }
 0x1f8   : > { %2746 = vpow2.f32 %v862_v33  ;;  %v858_v37 = vmul.f32 1.442695, %v854_v34  ;;  %v857_v38 = vsub.f32 %v827_v5, %v853_v35  ;;  %v841_v39 = vmax.f32 %v839_v32, %v840_v36 }
 0x1fa   : > { %2748 = vpow2.f32 %v858_v37  ;;  %v864_v40 = vmul.f32 1.442695, %v857_v38  ;;  %v855_v41 = vsub.f32 %v819_v13, %v841_v39 }
 0x1fc   : > { %2750 = vpow2.f32 %v864_v40  ;;  %v860_v43 = vmul.f32 1.442695, %v855_v41 }
 0x1fe   : > { %2752 = vpow2.f32 %v860_v43 }
 0x205   : > { %v2747_v44 = vpop.eup %2746 }
 0x206   : > { %v878_v45 = vrot.slane %v2747_v44, 4 }
 0x207   : > { %v2749_v46 = vpop.eup %2748 }
 0x208   : > { %v879_v47 = vadd.f32 %v2747_v44, %v878_v45  ;;  %v866_v48 = vrot.slane %v2749_v46, 4 }
 0x209   : > { %v2751_v49 = vpop.eup %2750 }
 0x20a   : > { %v880_v50 = vrot.slane %v879_v47, 2  ;;  %v867_v51 = vadd.f32 %v2749_v46, %v866_v48  ;;  %v884_v52 = vrot.slane %v2751_v49, 4 }
 0x20b   : > { %v2753_v53 = vpop.eup %2752 }
 0x20c   : > { %v881_v54 = vadd.f32 %v880_v50, %v879_v47  ;;  %v868_v55 = vrot.slane %v867_v51, 2  ;;  %v885_v56 = vadd.f32 %v2751_v49, %v884_v52  ;;  %v872_v59 = vrot.slane %v2753_v53, 4 }
 0x20e   : > { %v882_v60 = vrot.slane %v881_v54, 1  ;;  %v869_v61 = vadd.f32 %v868_v55, %v867_v51  ;;  %v886_v62 = vrot.slane %v885_v56, 2  ;;  %v873_v63 = vadd.f32 %v2753_v53, %v872_v59 }
 0x20f   : > { %v2875_v51 = vmov 1983009808  }
 0x210   : > { %v870_v0 = vrot.slane %v869_v61, 1  ;;  %v887_v2 = vadd.f32 %v886_v62, %v885_v56  ;;  %v874_v3 = vrot.slane %v873_v63, 2  ;;  %v883_v4 = vadd.f32 %v882_v60, %v881_v54 }
 0x211   : > { %v941_v52 = vunpack.c.l.s4 %v2875_v51  ;;  %v1199_v51 = vpack.c.bf16 %v3115_v20, %v3115_v20 }
 0x212   : > { %v888_v5 = vrot.slane %v887_v2, 1  ;;  %v875_v6 = vadd.f32 %v874_v3, %v873_v63  ;;  %v871_v10 = vadd.f32 %v870_v0, %v869_v61  ;;  %2754 = vrcp.f32 %v883_v4 }
 0x213   : > { %v942_v61 = vunpack.c.0.s8 %v941_v52  ;;  %v2726_v52 = vld [vmem:[%s3544_s9 + $0x18] sm:$0xff]  }
 0x214   : > { %v876_v11 = vrot.slane %v875_v6, 1  ;;  %v889_v12 = vadd.f32 %v888_v5, %v887_v2  ;;  %2756 = vrcp.f32 %v871_v10 }
 0x215   : > { %v945_v4 = vsub.s32 %v942_v61, %v3034_v1 }
 0x216   : > { %v877_v13 = vadd.f32 %v876_v11, %v875_v6  ;;  %2758 = vrcp.f32 %v889_v12 }
 0x218   : > { %2760 = vrcp.f32 %v877_v13 }
 0x21f   : > { %v2755_v14 = vpop.eup %2754 }
 0x220   : > { %v896_v16 = vmul.f32 %v2755_v14, %v2747_v44 }
 0x221   : > { %v2757_v17 = vpop.eup %2756 }
 0x222   : > { %v894_v22 = vmul.f32 %v2757_v17, %v2749_v46  ;;  %v900_v23 = vmul.f32 %v896_v16, %v578_v15 }
 0x223   : > { %v2759_v24 = vpop.eup %2758 }
 0x224   : > { %v897_v26 = vmul.f32 %v2759_v24, %v2751_v49  ;;  %v898_v27 = vmul.f32 %v894_v22, %v576_v18  ;;  %v914_v28 = vrot.slane %v900_v23, 4 }
 0x225   : > { %v2761_v29 = vpop.eup %2760 }
 0x226   : > { %v895_v31 = vmul.f32 %v2761_v29, %v2753_v53  ;;  %v901_v32 = vmul.f32 %v897_v26, %v579_v25  ;;  %v902_v33 = vrot.slane %v898_v27, 4  ;;  %v915_v34 = vadd.f32 %v914_v28, %v900_v23  ;;  %v2705_v29 = vld [vmem:[%s3543_s8 + $0x30] sm:$0xff]  }
 0x228   : > { %v899_v35 = vmul.f32 %v895_v31, %v577_v30  ;;  %v903_v36 = vadd.f32 %v902_v33, %v898_v27  ;;  %v916_v37 = vrot.slane %v915_v34, 2  ;;  %v920_v38 = vrot.slane %v901_v32, 4  ;;  %v2699_v27 = vld [vmem:[%s3547_s12 + $0x30] sm:$0xff]   ;;  %v2700_v30 = vld [vmem:[%s3547_s12 + $0x28] sm:$0xff]  }
 0x229   : > { %v2707_v31 = vld [vmem:[%s3543_s8 + $0x28] sm:$0xff]   ;;  %v2704_v33 = vld [vmem:[%s3547_s12 + $0x10] sm:$0xff]  }
 0x22a   : > { %v904_v39 = vrot.slane %v903_v36, 2  ;;  %v908_v40 = vrot.slane %v899_v35, 4  ;;  %v917_v41 = vadd.f32 %v916_v37, %v915_v34  ;;  %v921_v43 = vadd.f32 %v920_v38, %v901_v32  ;;  %v2702_v32 = vld [vmem:[%s3547_s12 + $0x18] sm:$0xff]   ;;  %v2713_v34 = vld [vmem:[%s3543_s8 + $0x10] sm:$0xff]   ;;  %v2708_v37 = vld [vmem:[%s3547_s12] sm:$0xff]  }
 0x22b   : > { %v2717_v38 = vld [vmem:[%s3543_s8] sm:$0xff]  }
 0x22c   : > { %v905_v44 = vadd.f32 %v904_v39, %v903_v36  ;;  %v909_v45 = vadd.f32 %v908_v40, %v899_v35  ;;  %v922_v46 = vrot.slane %v921_v43, 2  ;;  %v918_v47 = vrot.slane %v917_v41, 1  ;;  %v2706_v35 = vld [vmem:[%s3547_s12 + $0x8] sm:$0xff]   ;;  %v2710_v39 = vld [vmem:[%s3548_s13 + $0x38] sm:$0xff]  }
 0x22d   : > { %v2715_v36 = vld [vmem:[%s3543_s8 + $0x8] sm:$0xff]   ;;  %v2719_v40 = vld [vmem:[%s3544_s9 + $0x38] sm:$0xff]  }
 0x22e   : > { %v906_v48 = vrot.slane %v905_v44, 1  ;;  %v910_v49 = vrot.slane %v909_v45, 2  ;;  %v923_v50 = vadd.f32 %v922_v46, %v921_v43  ;;  %v919_v56 = vadd.f32 %v918_v47, %v917_v41  ;;  %v2712_v41 = vld [vmem:[%s3548_s13 + $0x30] sm:$0xff]   ;;  %v2716_v46 = vld [vmem:[%s3548_s13 + $0x20] sm:$0xff]  }
 0x22f   : > { %v2721_v43 = vld [vmem:[%s3544_s9 + $0x30] sm:$0xff]   ;;  %v1198_v47 = vpack.c.bf16 %v3112_v19, %v3112_v19 }
 0x230   : > { %v907_v53 = vadd.f32 %v906_v48, %v905_v44  ;;  %v911_v54 = vadd.f32 %v910_v49, %v909_v45  ;;  %v924_v55 = vrot.slane %v923_v50, 1  ;;  %v967_v2 = vpack.c.bf16 %v919_v56, %v919_v56  ;;  %v2723_v44 = vld [vmem:[%s3544_s9 + $0x28] sm:$0xff]   ;;  %v2725_v48 = vld [vmem:[%s3544_s9 + $0x20] sm:$0xff]  }
 0x231   : > { %v1197_v45 = vpack.c.bf16 %v3072_v8, %v3072_v8  ;;  %v1196_v8 = vpack.c.bf16 %v3069_v7, %v3069_v7  ;;  %v1448_v19 = vunpack.c.l.b16 %v1198_v47 }
 0x232   : > { %v912_v59 = vrot.slane %v911_v54, 1  ;;  %v925_v60 = vadd.f32 %v924_v55, %v923_v50  ;;  %v965_v0 = vpack.c.bf16 %v907_v53, %v907_v53  ;;  %v991_v17 = vunpack.c.l.b16 %v967_v2  ;;  %v2718_v50 = vld [vmem:[%s3548_s13 + $0x18] sm:$0xff]  }
 0x233   : > { %v1447_v49 = vunpack.c.l.b16 %v1197_v45  ;;  %v1446_v7 = vunpack.c.l.b16 %v1196_v8  ;;  %v1449_v55 = vunpack.c.l.b16 %v1199_v51  ;;  %v1452_v20 = vrot.slane %v1448_v19, 6 }
 0x234   : > { %v913_v62 = vadd.f32 %v912_v59, %v911_v54  ;;  %v932_v63 = vsel %vm930_vm4, %v925_v60, %v919_v56  ;;  %v968_v6 = vpack.c.bf16 %v925_v60, %v925_v60  ;;  %v989_v14 = vunpack.c.l.b16 %v965_v0  ;;  %v2720_v54 = vld [vmem:[%s3548_s13 + $0x10] sm:$0xff]   ;;  %v2724_v0 = vld [vmem:[%s3548_s13] sm:$0xff]  }
 0x235   : > { %v936_v11 = vsel %vm575_vm0, 0.0, %v932_v63  ;;  %v1454_v61 = vrot.slane %v1449_v55, 5  ;;  %v2728_v63 = vld [vmem:[%s3544_s9 + $0x8] sm:$0xff]  }
 0x236   : > { %v931_v3 = vsel %vm930_vm4, %v913_v62, %v907_v53  ;;  %v966_v5 = vpack.c.bf16 %v913_v62, %v913_v62  ;;  %v992_v22 = vunpack.c.l.b16 %v968_v6  ;;  %v1450_v53 = vrot.slane %v1447_v49, 7  ;;  %v2731_v6 = vld [vmem:[%s3549_s14 + $0x38] sm:$0xff]  }
 0x237   : > { %v935_v10 = vsel %vm575_vm0, 0.0, %v931_v3  ;;  %v1190_v12 = vsel %vm994_vm5, %v919_v56, %v931_v3  ;;  %v2727_v56 = vld [vmem:[%s3544_s9 + $0x10] sm:$0xff]   ;;  %v2729_v3 = vld [vmem:[%s3544_s9] sm:$0xff]  }
 0x238   : > { %v939_v13 = vcombine.low %v935_v10, %v936_v11  ;;  %v990_v15 = vunpack.c.l.b16 %v966_v5  ;;  %v3243_v16 = vsel %vm996_vm6, %v925_v60, %v1190_v12  ;;  %v1451_v59 = vsel %vm930_vm4, %v1450_v53, %v1446_v7  ;;  %v2722_v60 = vld [vmem:[%s3548_s13 + $0x8] sm:$0xff]   ;;  %v2730_v5 = vld [vmem:[%s3545_s10 + $0x38] sm:$0xff]   ;;  %v2732_v10 = vld [vmem:[%s3545_s10 + $0x30] sm:$0xff]  }
 0x239   : > { %v1453_v62 = vsel %vm994_vm5, %v1452_v20, %v1451_v59  ;;  %v2733_v11 = vld [vmem:[%s3549_s14 + $0x30] sm:$0xff]   ;;  %v2734_v12 = vld [vmem:[%s3545_s10 + $0x28] sm:$0xff]   ;;  %v3469_v53 = vsub.s32 0, %v3034_v1 }
 0x23a   : > { %v3245_v18 = vrot.slane %v939_v13, %v945_v4  ;;  %v993_v23 = vsel %vm930_vm4, %v990_v15, %v989_v14  ;;  %v1455_v2 = vsel %vm996_vm6, %v1454_v61, %v1453_v62  ;;  %v2735_v13 = vld [vmem:[%s3549_s14 + $0x28] sm:$0xff]   ;;  %v2736_v14 = vld [vmem:[%s3545_s10 + $0x20] sm:$0xff]  }
 0x23b   : > { %v995_v24 = vsel %vm994_vm5, %v991_v17, %v993_v23  ;;  %v1456_v4 = vpack.c.b16 %v1455_v2, %v1455_v2  ;;  %v2737_v15 = vld [vmem:[%s3549_s14 + $0x20] sm:$0xff]   ;;  %v2738_v17 = vld [vmem:[%s3545_s10 + $0x18] sm:$0xff]   ;;  %v2740_v23 = vld [vmem:[%s3545_s10 + $0x10] sm:$0xff]  }
 0x23c   : > { %v948_v25 = vpack.c.bf16 %v3245_v18, %v3245_v18  ;;  %v997_v26 = vsel %vm996_vm6, %v992_v22, %v995_v24  ;;  %v2739_v22 = vld [vmem:[%s3549_s14 + $0x18] sm:$0xff]   ;;  %v2741_v24 = vld [vmem:[%s3549_s14 + $0x10] sm:$0xff]  }
 0x23d   : > { %v998_v28 = vpack.c.b16 %v997_v26, %v997_v26  ;;  %v2743_v26 = vld [vmem:[%s3549_s14 + $0x8] sm:$0xff]  }
 0x23e   : > { %2500 = vmatmul.mubr.bf16.vlgmr.msra.gmra.mxu1 %v948_v25  ;;  %v2742_v25 = vld [vmem:[%s3545_s10 + $0x8] sm:$0xff]  }
 0x23f   : > { %2480 = vmatmul.mubr.bf16.vlgmr.msra.gmra.mxu0 %v998_v28  ;;  %2524 = vmatpush3.bf16.msra.mxu1 %v3210_v57  ;;  %v2701_v57 = vld [vmem:[%s3547_s12 + $0x20] sm:$0xff]  }
 0x240   : > { %2525 = vmatprep.subr.bf16.mxu1 %v2699_v27  ;;  %2504 = vmatpush3.bf16.msra.mxu0 %v3216_v58  ;;  %v2709_v58 = vld [vmem:[%s3543_s8 + $0x20] sm:$0xff]  }
 0x241   : > { %2505 = vmatprep.subr.bf16.mxu0 %v2705_v29  ;;  %2539 = vmatprep.mubr.bf16.mxu1 %v3076_v9  ;;  %v2745_v28 = vld [vmem:[%s3549_s14] sm:$0xff]  }
 0x242   : > { %2519 = vmatprep.mubr.bf16.mxu0 %v3076_v9  ;;  %v2711_v9 = vld [vmem:[%s3543_s8 + $0x18] sm:$0xff]  }
 0x243   : > { %2526 = vmatpush3.bf16.msra.mxu1 %v2699_v27  ;;  %v2744_v27 = vld [vmem:[%s3545_s10] sm:$0xff]  }
 0x244   : > { %2527 = vmatprep.subr.bf16.mxu1 %v2700_v30  ;;  %2506 = vmatpush3.bf16.msra.mxu0 %v2705_v29 }
 0x245   : > { %2507 = vmatprep.subr.bf16.mxu0 %v2707_v31 }
 0x247   : > { %2528 = vmatpush3.bf16.msra.mxu1 %v2700_v30 }
 0x248   : > { %2529 = vmatprep.subr.bf16.mxu1 %v2701_v57  ;;  %2508 = vmatpush3.bf16.msra.mxu0 %v2707_v31  ;;  %v2274_v31 = vld [vmem:[#allocation2] ss:$0 sm:$0xff] }
 0x249   : > { %2509 = vmatprep.subr.bf16.mxu0 %v2709_v58 }
 0x24b   : > { %2530 = vmatpush3.bf16.msra.mxu1 %v2701_v57 }
 0x24c   : > { %2531 = vmatprep.subr.bf16.mxu1 %v2702_v32  ;;  %2510 = vmatpush3.bf16.msra.mxu0 %v2709_v58 }
 0x24d   : > { %2511 = vmatprep.subr.bf16.mxu0 %v2711_v9 }
 0x24f   : > { %2532 = vmatpush3.bf16.msra.mxu1 %v2702_v32 }
 0x250   : > { %2533 = vmatprep.subr.bf16.mxu1 %v2704_v33  ;;  %2512 = vmatpush3.bf16.msra.mxu0 %v2711_v9 }
 0x251   : > { %2513 = vmatprep.subr.bf16.mxu0 %v2713_v34 }
 0x253   : > { %2534 = vmatpush3.bf16.msra.mxu1 %v2704_v33 }
 0x254   : > { %2535 = vmatprep.subr.bf16.mxu1 %v2706_v35  ;;  %2514 = vmatpush3.bf16.msra.mxu0 %v2713_v34 }
 0x255   : > { %2515 = vmatprep.subr.bf16.mxu0 %v2715_v36 }
 0x257   : > { %2536 = vmatpush3.bf16.msra.mxu1 %v2706_v35 }
 0x258   : > { %2537 = vmatprep.subr.bf16.mxu1 %v2708_v37  ;;  %2516 = vmatpush3.bf16.msra.mxu0 %v2715_v36 }
 0x259   : > { %2517 = vmatprep.subr.bf16.mxu0 %v2717_v38 }
 0x25b   : > { %2538 = vmatpush3.bf16.msra.mxu1 %v2708_v37 }
 0x25c   : > { %2563 = vmatprep.subr.bf16.mxu1 %v2873_v42  ;;  %2518 = vmatpush3.bf16.msra.mxu0 %v2717_v38 }
 0x25d   : > { %2543 = vmatprep.subr.bf16.mxu0 %v2873_v42 }
 0x25e   : > { %2540 = vmatmul.mubr.bf16.vlgmr.msra.gmra.mxu1 %v3119_v21 }
 0x25f   : > { %2564 = vmatpush3.bf16.msra.mxu1 %v2710_v39  ;;  %2520 = vmatmul.mubr.bf16.vlgmr.msra.gmra.mxu0 %v3119_v21  ;;  %v2714_v21 = vld [vmem:[%s3548_s13 + $0x28] sm:$0xff]  }
 0x260   : > { %2565 = vmatprep.subr.bf16.mxu1 %v2873_v42  ;;  %2544 = vmatpush3.bf16.msra.mxu0 %v2719_v40 }
 0x261   : > { %2545 = vmatprep.subr.bf16.mxu0 %v2873_v42  ;;  %2579 = vmatprep.mubr.msk.bf16.mxu1 %vm2874_vm3, %v2873_v42 }
 0x262   : > { %2559 = vmatprep.mubr.msk.bf16.mxu0 %vm2874_vm3, %v2873_v42 }
 0x263   : > { %2566 = vmatpush3.bf16.msra.mxu1 %v2712_v41 }
 0x264   : > { %2567 = vmatprep.subr.bf16.mxu1 %v2873_v42  ;;  %2546 = vmatpush3.bf16.msra.mxu0 %v2721_v43 }
 0x265   : > { %2547 = vmatprep.subr.bf16.mxu0 %v2873_v42 }
 0x267   : > { %2568 = vmatpush3.bf16.msra.mxu1 %v2714_v21 }
 0x268   : > { %2569 = vmatprep.subr.bf16.mxu1 %v2873_v42  ;;  %2548 = vmatpush3.bf16.msra.mxu0 %v2723_v44 }
 0x269   : > { %2549 = vmatprep.subr.bf16.mxu0 %v2873_v42 }
 0x26b   : > { %2570 = vmatpush3.bf16.msra.mxu1 %v2716_v46 }
 0x26c   : > { %2571 = vmatprep.subr.bf16.mxu1 %v2873_v42  ;;  %2550 = vmatpush3.bf16.msra.mxu0 %v2725_v48  ;;  %v2876_v48 = vmov 1966171168  }
 0x26d   : > { %2551 = vmatprep.subr.bf16.mxu0 %v2873_v42  ;;  %v1860_v8 = vunpack.c.l.s4 %v2876_v48 }
 0x26f   : > { %2572 = vmatpush3.bf16.msra.mxu1 %v2718_v50  ;;  %v1861_v51 = vunpack.c.0.s8 %v1860_v8 }
 0x270   : > { %2573 = vmatprep.subr.bf16.mxu1 %v2873_v42  ;;  %2552 = vmatpush3.bf16.msra.mxu0 %v2726_v52 }
 0x271   : > { %2553 = vmatprep.subr.bf16.mxu0 %v2873_v42  ;;  %v3464_v19 = vsub.s32 %v1861_v51, %v3034_v1 }
 0x273   : > { %2574 = vmatpush3.bf16.msra.mxu1 %v2720_v54 }
 0x274   : > { %2575 = vmatprep.subr.bf16.mxu1 %v2873_v42  ;;  %2554 = vmatpush3.bf16.msra.mxu0 %v2727_v56 }
 0x275   : > { %2555 = vmatprep.subr.bf16.mxu0 %v2873_v42 }
 0x277   : > { %2576 = vmatpush3.bf16.msra.mxu1 %v2722_v60 }
 0x278   : > { %2577 = vmatprep.subr.bf16.mxu1 %v2873_v42  ;;  %2556 = vmatpush3.bf16.msra.mxu0 %v2728_v63 }
 0x279   : > { %2557 = vmatprep.subr.bf16.mxu0 %v2873_v42 }
 0x27b   : > { %2578 = vmatpush3.bf16.msra.mxu1 %v2724_v0 }
 0x27c   : > { %2558 = vmatpush3.bf16.msra.mxu0 %v2729_v3  ;;  %2603 = vmatprep.subr.bf16.mxu1 %v2873_v42 }
 0x27d   : > { %2583 = vmatprep.subr.bf16.mxu0 %v2873_v42 }
 0x27e   : > { %2580 = vmatmul.mubr.bf16.vlgmr.msra.gmra.mxu1 %v1456_v4 }
 0x27f   : > { %2560 = vmatmul.mubr.bf16.vlgmr.msra.gmra.mxu0 %v1456_v4  ;;  %2619 = vmatprep.mubr.msk.bf16.mxu1 %vm2874_vm3, %v2873_v42 }
 0x280   : > { %2599 = vmatprep.mubr.msk.bf16.mxu0 %vm2874_vm3, %v2873_v42  ;;  %2584 = vmatpush3.bf16.msra.mxu0 %v2730_v5 }
 0x281   : > { %2604 = vmatpush3.bf16.msra.mxu1 %v2731_v6  ;;  %2585 = vmatprep.subr.bf16.mxu0 %v2873_v42 }
 0x282   : > { %2605 = vmatprep.subr.bf16.mxu1 %v2873_v42 }
 0x284   : > { %2586 = vmatpush3.bf16.msra.mxu0 %v2732_v10 }
 0x285   : > { %2606 = vmatpush3.bf16.msra.mxu1 %v2733_v11  ;;  %2587 = vmatprep.subr.bf16.mxu0 %v2873_v42 }
 0x286   : > { %2607 = vmatprep.subr.bf16.mxu1 %v2873_v42 }
 0x288   : > { %2588 = vmatpush3.bf16.msra.mxu0 %v2734_v12 }
 0x289   : > { %2608 = vmatpush3.bf16.msra.mxu1 %v2735_v13  ;;  %2589 = vmatprep.subr.bf16.mxu0 %v2873_v42 }
 0x28a   : > { %2609 = vmatprep.subr.bf16.mxu1 %v2873_v42 }
 0x28c   : > { %2590 = vmatpush3.bf16.msra.mxu0 %v2736_v14 }
 0x28d   : > { %2610 = vmatpush3.bf16.msra.mxu1 %v2737_v15  ;;  %2591 = vmatprep.subr.bf16.mxu0 %v2873_v42 }
 0x28e   : > { %2611 = vmatprep.subr.bf16.mxu1 %v2873_v42 }
 0x290   : > { %2592 = vmatpush3.bf16.msra.mxu0 %v2738_v17 }
 0x291   : > { %2612 = vmatpush3.bf16.msra.mxu1 %v2739_v22  ;;  %2593 = vmatprep.subr.bf16.mxu0 %v2873_v42 }
 0x292   : > { %2613 = vmatprep.subr.bf16.mxu1 %v2873_v42 }
 0x294   : > { %2594 = vmatpush3.bf16.msra.mxu0 %v2740_v23 }
 0x295   : > { %2614 = vmatpush3.bf16.msra.mxu1 %v2741_v24  ;;  %2595 = vmatprep.subr.bf16.mxu0 %v2873_v42 }
 0x296   : > { %2615 = vmatprep.subr.bf16.mxu1 %v2873_v42 }
 0x298   : > { %2596 = vmatpush3.bf16.msra.mxu0 %v2742_v25 }
 0x299   : > { %2616 = vmatpush3.bf16.msra.mxu1 %v2743_v26  ;;  %2597 = vmatprep.subr.bf16.mxu0 %v2873_v42 }
 0x29a   : > { %2617 = vmatprep.subr.bf16.mxu1 %v2873_v42 }
 0x29c   : > { %2598 = vmatpush3.bf16.msra.mxu0 %v2744_v27 }
 0x29d   : > { %2618 = vmatpush3.bf16.msra.mxu1 %v2745_v28 }
 0x2fe   : > { %v1170_v29 = vpop.f32.mrf.mxu1 }
 0x2ff   : > { %v1082_v30 = vpop.f32.mrf.mxu0 }
 0x300   : > { %v1171_v57 = vadd.f32 %v1170_v29, %v1082_v30  ;;  %v2501_v58 = vpop.f32.mrf.mxu1 }
 0x301   : > { %v2481_v32 = vpop.f32.mrf.mxu0 }
 0x302   : > { %v1183_v9 = vadd.f32 %v2274_v31, %v1171_v57  ;;  %v1173_v33 = vpop.f32.mrf.mxu1 }
 0x303   : > { %v1085_v34 = vpop.f32.mrf.mxu0 }
 0x304   : > { %v1184_v35 = vmul.f32 0.5, %v1183_v9  ;;  %v2502_v36 = vpop.f32.mrf.mxu1 }
 0x305   : > { %v2482_v37 = vpop.f32.mrf.mxu0 }
 0x306   : > { %2762 = vtanh.f32 %v1184_v35 }
 0x313   : > { %v2763_v38 = vpop.eup %2762 }
 0x314   : > { %v1186_v39 = vadd.f32 1.0, %v2763_v38 }
 0x316   : > { %v1187_v40 = vmul.f32 0.5, %v1186_v39 }
 0x318   : > { %v1189_v41 = vsub.f32 1.0, %v1187_v40  ;;  %v1188_v42 = vmul.f32 %v1187_v40, %v3245_v18 }
 0x31a   : > { %v1193_v43 = vmul.f32 %v3243_v16, %v1189_v41 }
 0x31c   : > { %v1194_v21 = vadd.f32 %v1193_v43, %v1188_v42 }
 0x31e   : > { %v1195_v44 = vpack.c.bf16 %v1194_v21, %v1194_v21  ;;  %v3449_v45 = vpop.f32.mrf.mxu1 }
 0x31f   : > { %v3451_v46 = vpop.f32.mrf.mxu0 }
 0x320   : > { %2600 = vmatmul.mubr.bf16.vlgmr.msra.gmra.mxu0 %v1195_v44  ;;  %2620 = vmatmul.mubr.bf16.vlgmr.msra.gmra.mxu1 %v1195_v44  ;;  %v3453_v47 = vpop.f32.mrf.mxu1 }
 0x321   : > { %v3455_v49 = vpop.f32.mrf.mxu0 }
 0x322   : > { %v3457_v50 = vpop.f32.mrf.mxu1 }
 0x323   : > { %v3459_v18 = vpop.f32.mrf.mxu0 }
 0x324   : > { %v3461_v16 = vpop.f32.mrf.mxu1 }
 0x325   : > { %v3466_v52 = vpop.f32.mrf.mxu0 }
 0x33e   : > { %v1644_v7 = vpop.f32.mrf.mxu1 }
 0x33f   : > { %v1978_v54 = vrot.slane %v1644_v7, %v3464_v19  ;;  %v1540_v55 = vpop.f32.mrf.mxu0 }
 0x340   : > { %v1865_v20 = vrot.slane %v1540_v55, %v3464_v19  ;;  %v2581_v56 = vpop.f32.mrf.mxu1 }
 0x341   : > { %v1979_v59 = vcombine.high %v1978_v54, %v1978_v54  ;;  %v1986_v60 = vrot.slane %v1978_v54, %v3464_v19  ;;  %v2561_v61 = vpop.f32.mrf.mxu0 }
 0x342   : > { %v1866_v62 = vcombine.high %v1865_v20, %v1865_v20  ;;  %v1873_v63 = vrot.slane %v1865_v20, %v3464_v19  ;;  %v1647_v0 = vpop.f32.mrf.mxu1 }
 0x343   : > { %v1993_v2 = vrot.slane %v1979_v59, %v3464_v19  ;;  %v1994_v3 = vcombine.high %v1986_v60, %v1986_v60  ;;  %v1999_v4 = vrot.slane %v1986_v60, %v3469_v53  ;;  %v1543_v5 = vpop.f32.mrf.mxu0 }
 0x344   : > { %v1880_v6 = vrot.slane %v1866_v62, %v3464_v19  ;;  %v1881_v10 = vcombine.high %v1873_v63, %v1873_v63  ;;  %v1886_v11 = vrot.slane %v1873_v63, %v3469_v53  ;;  %v2582_v12 = vpop.f32.mrf.mxu1 }
 0x345   : > { %v1995_v13 = vcombine.high %v1993_v2, %v1993_v2  ;;  %v2003_v14 = vrot.slane %v1993_v2, %v3469_v53  ;;  %v2007_v15 = vrot.slane %v1994_v3, %v3469_v53  ;;  %v2016_v17 = vsel %vm575_vm0, %v1999_v4, 0.0  ;;  %v2562_v22 = vpop.f32.mrf.mxu0 }
 0x346   : > { %v2020_v23 = vsub.f32 %v3453_v47, %v2016_v17  ;;  %v1882_v24 = vcombine.high %v1880_v6, %v1880_v6  ;;  %v1890_v25 = vrot.slane %v1880_v6, %v3469_v53  ;;  %v1894_v26 = vrot.slane %v1881_v10, %v3469_v53 }
 0x347   : > { %v2011_v27 = vrot.slane %v1995_v13, %v3469_v53  ;;  %v2017_v28 = vsel %vm575_vm0, %v2003_v14, 0.0  ;;  %v2018_v29 = vsel %vm575_vm0, %v2007_v15, 0.0  ;;  %v1903_v30 = vsel %vm575_vm0, %v1886_v11, 0.0 }
 0x348   : > { %v2021_v31 = vsub.f32 %v3461_v16, %v2017_v28  ;;  %v2022_v57 = vsub.f32 %v3449_v45, %v2018_v29  ;;  %v1898_v58 = vrot.slane %v1882_v24, %v3469_v53  ;;  %v1904_v32 = vsel %vm575_vm0, %v1890_v25, 0.0 }
 0x349   : > { %v2019_v9 = vsel %vm575_vm0, %v2011_v27, 0.0  ;;  %v1905_v33 = vsel %vm575_vm0, %v1894_v26, 0.0  ;;  %v1907_v34 = vsub.f32 %v3455_v49, %v1903_v30  ;;  %v1908_v35 = vsub.f32 %v3466_v52, %v1904_v32 }
 0x34a   : > { %v2023_v36 = vsub.f32 %v3457_v50, %v2019_v9  ;;  %v1906_v37 = vsel %vm575_vm0, %v1898_v58, 0.0  ;;  %v1909_v38 = vsub.f32 %v3451_v46, %v1905_v33 }
 0x34b   : > { %v1910_v39 = vsub.f32 %v3459_v18, %v1906_v37  ;;  %v2324_v18 = vld [vmem:[#allocation6] ss:$0 sm:$0xff] }
 0x3e0   : > { %v1748_v40 = vpop.f32.mrf.mxu0  ;;  %v1852_v41 = vpop.f32.mrf.mxu1 }
 0x3e1   : > { %v2031_v42 = vrot.slane %v1852_v41, %v3464_v19  ;;  %v1918_v8 = vrot.slane %v1748_v40, %v3464_v19 }
 0x3e2   : > { %v2601_v43 = vpop.f32.mrf.mxu0  ;;  %v2621_v21 = vpop.f32.mrf.mxu1 }
 0x3e3   : > { %v2032_v44 = vcombine.high %v2031_v42, %v2031_v42  ;;  %v2039_v45 = vrot.slane %v2031_v42, %v3464_v19  ;;  %v1919_v55 = vcombine.high %v1918_v8, %v1918_v8  ;;  %v1926_v2 = vrot.slane %v1918_v8, %v3464_v19 }
 0x3e4   : > { %v1751_v47 = vpop.f32.mrf.mxu0  ;;  %v1855_v48 = vpop.f32.mrf.mxu1 }
 0x3e5   : > { %v2046_v1 = vrot.slane %v2032_v44, %v3464_v19  ;;  %v2047_v49 = vcombine.high %v2039_v45, %v2039_v45  ;;  %v2052_v46 = vrot.slane %v2039_v45, %v3469_v53  ;;  %v1933_v3 = vrot.slane %v1919_v55, %v3464_v19  ;;  %v2772_v45 = vld [vmem:[%s3060_s18] sm:$0xff] }
 0x3e6   : > { %v2602_v50 = vpop.f32.mrf.mxu0  ;;  %v2622_v51 = vpop.f32.mrf.mxu1  ;;  %v1934_v11 = vcombine.high %v1926_v2, %v1926_v2  ;;  %v1939_v13 = vrot.slane %v1926_v2, %v3469_v53 }
 0x3e7   : > { %v2048_v16 = vcombine.high %v2046_v1, %v2046_v1  ;;  %v2056_v52 = vrot.slane %v2046_v1, %v3469_v53  ;;  %v2060_v7 = vrot.slane %v2047_v49, %v3469_v53  ;;  %v2069_v54 = vadd.f32 %v2052_v46, %v2020_v23  ;;  %v2323_v23 = vld [vmem:[#allocation4] ss:$0 sm:$0xff]  ;;  %v2773_v46 = vld [vmem:[%s3060_s18 + $0x8] sm:$0xff] }
 0x3e8   : > { %v1935_v12 = vcombine.high %v1933_v3, %v1933_v3  ;;  %v1943_v14 = vrot.slane %v1933_v3, %v3469_v53  ;;  %v1947_v15 = vrot.slane %v1934_v11, %v3469_v53  ;;  %v1956_v22 = vadd.f32 %v1939_v13, %v1907_v34 }
 0x3e9   : > { %v2064_v20 = vrot.slane %v2048_v16, %v3469_v53  ;;  %v2070_v56 = vadd.f32 %v2056_v52, %v2021_v31  ;;  %v2071_v59 = vadd.f32 %v2060_v7, %v2022_v57  ;;  %v2080_v60 = vadd.f32 %v2324_v18, %v2069_v54  ;;  %v2775_v52 = vld [vmem:[%s3060_s18 + $0x18] sm:$0xff] }
 0x3ea   : > { %v1951_v17 = vrot.slane %v1935_v12, %v3469_v53  ;;  %v1957_v19 = vadd.f32 %v1943_v14, %v1908_v35  ;;  %v1958_v24 = vadd.f32 %v1947_v15, %v1909_v38  ;;  %v1967_v26 = vadd.f32 %v2323_v23, %v1956_v22 }
 0x3eb   : > { %v2072_v61 = vadd.f32 %v2064_v20, %v2023_v36  ;;  %v2081_v62 = vadd.f32 %v2324_v18, %v2070_v56  ;;  %v2082_v63 = vadd.f32 %v2324_v18, %v2071_v59  ;;  %v2088_v0 = vmul.f32 0.5, %v2080_v60 }
 0x3ec   : > { %v1959_v25 = vadd.f32 %v1951_v17, %v1910_v39  ;;  %v1968_v28 = vadd.f32 %v2323_v23, %v1957_v19  ;;  %v1969_v31 = vadd.f32 %v2323_v23, %v1958_v24  ;;  %v2084_v32 = vmax.f32 %v1967_v26, 0.0 }
 0x3ed   : > { %v2083_v4 = vadd.f32 %v2324_v18, %v2072_v61  ;;  %v2089_v5 = vmul.f32 0.5, %v2081_v62  ;;  %v2090_v6 = vmul.f32 0.5, %v2082_v63  ;;  %2764 = vtanh.f32 %v2088_v0  ;;  %v2774_v18 = vld [vmem:[%s3060_s18 + $0x10] sm:$0xff] }
 0x3ee   : > { %v1970_v57 = vadd.f32 %v2323_v23, %v1959_v25  ;;  %v2085_v53 = vmax.f32 %v1968_v28, 0.0  ;;  %v2086_v40 = vmax.f32 %v1969_v31, 0.0 }
 0x3ef   : > { %v2091_v10 = vmul.f32 0.5, %v2083_v4  ;;  %2766 = vtanh.f32 %v2089_v5 }
 0x3f0   : > { %2768 = vtanh.f32 %v2090_v6  ;;  %v2087_v41 = vmax.f32 %v1970_v57, 0.0 }
 0x3f1   : > { %2770 = vtanh.f32 %v2091_v10 }
 0x3fa   : > { %v2765_v27 = vpop.eup %2764 }
 0x3fb   : > { %v2096_v29 = vadd.f32 1.0, %v2765_v27 }
 0x3fc   : > { %v2767_v30 = vpop.eup %2766 }
 0x3fd   : > { %v2769_v58 = vpop.eup %2768  ;;  %v2097_v9 = vadd.f32 1.0, %v2767_v30  ;;  %v2100_v33 = vmul.f32 0.5, %v2096_v29 }
 0x3fe   : > { %v2771_v36 = vpop.eup %2770  ;;  %v2098_v34 = vadd.f32 1.0, %v2769_v58 }
 0x3ff   : > { %v2099_v35 = vadd.f32 1.0, %v2771_v36  ;;  %v2101_v37 = vmul.f32 0.5, %v2097_v9  ;;  %v2104_v38 = vmul.f32 %v2100_v33, %v2084_v32  ;;  %v2108_v39 = vsub.f32 1.0, %v2100_v33 }
 0x400   : > { %v2102_v42 = vmul.f32 0.5, %v2098_v34 }
 0x401   : > { %v2103_v43 = vmul.f32 0.5, %v2099_v35  ;;  %v2105_v21 = vmul.f32 %v2101_v37, %v2085_v53  ;;  %v2109_v44 = vsub.f32 1.0, %v2101_v37  ;;  %v2112_v47 = vmul.f32 %v2772_v45, %v2108_v39 }
 0x402   : > { %v2106_v48 = vmul.f32 %v2102_v42, %v2086_v40  ;;  %v2110_v8 = vsub.f32 1.0, %v2102_v42 }
 0x403   : > { %v2107_v1 = vmul.f32 %v2103_v43, %v2087_v41  ;;  %v2111_v49 = vsub.f32 1.0, %v2103_v43  ;;  %v2113_v50 = vmul.f32 %v2773_v46, %v2109_v44  ;;  %v2116_v51 = vadd.f32 %v2112_v47, %v2104_v38 }
 0x404   : > { %v2114_v16 = vmul.f32 %v2774_v18, %v2110_v8 }
 0x405   : > { %v2115_v7 = vmul.f32 %v2775_v52, %v2111_v49  ;;  %v2117_v54 = vadd.f32 %v2113_v50, %v2105_v21  ;;  %2120 = vst [vmem:[%s566_s25] sm:$0xff] %v2116_v51 }
 0x406   : > { %v2118_v55 = vadd.f32 %v2114_v16, %v2106_v48 }
 0x407   : > { %v2119_v20 = vadd.f32 %v2115_v7, %v2107_v1  ;;  %2121 = vst [vmem:[%s566_s25 + $0x8] sm:$0xff] %v2117_v54 }
 0x408   : > { %2122 = vst [vmem:[%s566_s25 + $0x10] sm:$0xff] %v2118_v55 }
 0x409   : > { %2123 = vst [vmem:[%s566_s25 + $0x18] sm:$0xff] %v2119_v20 }
 0x40a PF: > { %s28_s21 = sadd.s32 1, %s2868_s21  }
 0x40b   : > { %p25_p3 = scmp.ge.s32.totalorder %s28_s21, 4  }
 0x40d   :  { %27 = sbr.rel (!%p25_p3) target bundleno = 4 (0x4), region = 127 }
 0x412   :  { %2148 = vsyncpa [#allocation3], 1 }
 0x413   :  { %2150 = vsyncpa [#allocation3 + $0x1], 1 }
 0x414   :  { %2151 = vsyncpa [#allocation5], 1 }

// kernel: nn4snli_forward.11
= control target key start
LH: loop header
LB: loop body
LE: loop exit
PB: predicated region body
PF: predicated region fallthrough
CT: control target
= control target key end

     0   :  { %v407_v0 = vmov 0.0   ;;  %vm408_vm0 = vmmov 0   ;;  %s516_s1 = inlined_call_operand.vmem [shape: bf16[384,128], index: 1, kind: input, shape index: {}]   ;;  %s517_s0 = inlined_call_operand.vmem [shape: f32[8,384], index: 0, kind: input, shape index: {}]   ;;  %s518_s2 = inlined_call_operand.vmem [shape: f32[1,128], index: 2, kind: input, shape index: {}]   ;;  %s519_s3 = inlined_call_operand.vmem [shape: f32[8,128], index: 3, kind: output, shape index: {}]  }
   0x1   :  { %361 = vmatprep.subr.bf16.mxu1 %v407_v0  ;;  %v383_v1 = vld [vmem:[%s516_s1 + $0x78] sm:$0xff]   ;;  %377 = vmatprep.mubr.msk.bf16.mxu1 %vm408_vm0, %v407_v0  ;;  %v386_v4 = vld [vmem:[%s516_s1 + $0x70] sm:$0xff]   ;;  %v389_v7 = vld [vmem:[%s516_s1 + $0x68] sm:$0xff]  }
   0x2   :  { %v384_v2 = vld [vmem:[%s516_s1 + $0xb8] sm:$0xff]   ;;  %330 = vmatprep.subr.bf16.mxu0 %v383_v1  ;;  %v387_v5 = vld [vmem:[%s516_s1 + $0xb0] sm:$0xff]   ;;  %v390_v8 = vld [vmem:[%s516_s1 + $0xa8] sm:$0xff]  }
   0x3   :  { %v385_v3 = vld [vmem:[%s516_s1 + $0x38] sm:$0xff]   ;;  %362 = vmatpush3.bf16.msra.mxu1 %v384_v2  ;;  %v388_v6 = vld [vmem:[%s516_s1 + $0x30] sm:$0xff]   ;;  %v391_v9 = vld [vmem:[%s516_s1 + $0x28] sm:$0xff]  }
   0x4   :  { %331 = vmatpush3.bf16.msra.mxu0 %v385_v3  ;;  %363 = vmatprep.subr.bf16.mxu1 %v407_v0  ;;  %v392_v10 = vld [vmem:[%s516_s1 + $0x60] sm:$0xff]   ;;  %v395_v13 = vld [vmem:[%s516_s1 + $0x58] sm:$0xff]   ;;  %v398_v16 = vld [vmem:[%s516_s1 + $0x50] sm:$0xff]  }
   0x5   :  { %332 = vmatprep.subr.bf16.mxu0 %v386_v4  ;;  %v393_v11 = vld [vmem:[%s516_s1 + $0xa0] sm:$0xff]   ;;  %v396_v14 = vld [vmem:[%s516_s1 + $0x98] sm:$0xff]   ;;  %v399_v17 = vld [vmem:[%s516_s1 + $0x90] sm:$0xff]  }
   0x6   :  { %v394_v12 = vld [vmem:[%s516_s1 + $0x20] sm:$0xff]   ;;  %v397_v15 = vld [vmem:[%s516_s1 + $0x18] sm:$0xff]   ;;  %v400_v18 = vld [vmem:[%s516_s1 + $0x10] sm:$0xff]  }
   0x7   :  { %364 = vmatpush3.bf16.msra.mxu1 %v387_v5  ;;  %v401_v19 = vld [vmem:[%s516_s1 + $0x48] sm:$0xff]   ;;  %v404_v23 = vld [vmem:[%s516_s1 + $0x40] sm:$0xff]   ;;  %v17_v26 = vld [vmem:[%s517_s0 + $0x10] sm:$0xff] }
   0x8   :  { %333 = vmatpush3.bf16.msra.mxu0 %v388_v6  ;;  %365 = vmatprep.subr.bf16.mxu1 %v407_v0  ;;  %v402_v20 = vld [vmem:[%s516_s1 + $0x88] sm:$0xff]   ;;  %v405_v25 = vld [vmem:[%s516_s1 + $0x80] sm:$0xff]   ;;  %v20_v29 = vpack.c.bf16 %v17_v26, %v17_v26 }
   0x9   :  { %334 = vmatprep.subr.bf16.mxu0 %v389_v7  ;;  %v403_v21 = vld [vmem:[%s516_s1 + $0x8] sm:$0xff]   ;;  %v406_v27 = vld [vmem:[%s516_s1] sm:$0xff]  }
   0xa   :  { %v16_v22 = vld [vmem:[%s517_s0 + $0x8] sm:$0xff]  ;;  %v15_v28 = vld [vmem:[%s517_s0] sm:$0xff] }
   0xb   :  { %366 = vmatpush3.bf16.msra.mxu1 %v390_v8  ;;  %v19_v24 = vpack.c.bf16 %v16_v22, %v16_v22  ;;  %v18_v30 = vpack.c.bf16 %v15_v28, %v15_v28  ;;  %v305_v34 = vld [vmem:[%s518_s2] ss:$0 sm:$0xff] }
   0xc   :  { %335 = vmatpush3.bf16.msra.mxu0 %v391_v9  ;;  %367 = vmatprep.subr.bf16.mxu1 %v407_v0 }
   0xd   :  { %336 = vmatprep.subr.bf16.mxu0 %v392_v10  ;;  %252 = vmatprep.mubr.bf16.mxu0 %v19_v24 }
   0xf   :  { %368 = vmatpush3.bf16.msra.mxu1 %v393_v11 }
  0x10   :  { %337 = vmatpush3.bf16.msra.mxu0 %v394_v12  ;;  %369 = vmatprep.subr.bf16.mxu1 %v407_v0 }
  0x11   :  { %338 = vmatprep.subr.bf16.mxu0 %v395_v13 }
  0x13   :  { %370 = vmatpush3.bf16.msra.mxu1 %v396_v14 }
  0x14   :  { %339 = vmatpush3.bf16.msra.mxu0 %v397_v15  ;;  %371 = vmatprep.subr.bf16.mxu1 %v407_v0 }
  0x15   :  { %340 = vmatprep.subr.bf16.mxu0 %v398_v16 }
  0x17   :  { %372 = vmatpush3.bf16.msra.mxu1 %v399_v17 }
  0x18   :  { %341 = vmatpush3.bf16.msra.mxu0 %v400_v18  ;;  %373 = vmatprep.subr.bf16.mxu1 %v407_v0 }
  0x19   :  { %342 = vmatprep.subr.bf16.mxu0 %v401_v19 }
  0x1b   :  { %374 = vmatpush3.bf16.msra.mxu1 %v402_v20 }
  0x1c   :  { %343 = vmatpush3.bf16.msra.mxu0 %v403_v21  ;;  %375 = vmatprep.subr.bf16.mxu1 %v407_v0 }
  0x1d   :  { %344 = vmatprep.subr.bf16.mxu0 %v404_v23 }
  0x1f   :  { %376 = vmatpush3.bf16.msra.mxu1 %v405_v25 }
  0x20   :  { %345 = vmatpush3.bf16.msra.mxu0 %v406_v27 }
  0x22   :  { %378 = vmatmul.mubr.bf16.vlgmr.msra.gmra.mxu1 %v20_v29 }
  0x23   :  { %253 = vmatmul.mubr.bf16.vlgmr.msra.gmra.mxu0 %v18_v30 }
  0xe2   :  { %v294_v31 = vpop.f32.mrf.mxu1 }
  0xe3   :  { %v346_v32 = vpop.f32.mrf.mxu0 }
  0xe4   :  { %v379_v33 = vpop.f32.mrf.mxu1 }
  0xe5   :  { %v347_v35 = vpop.f32.mrf.mxu0 }
  0xe6   :  { %v348_v36 = vadd.f32 %v347_v35, %v346_v32  ;;  %v297_v37 = vpop.f32.mrf.mxu1 }
  0xe7   :  { %v349_v38 = vpop.f32.mrf.mxu0 }
  0xe8   :  { %v255_v39 = vadd.f32 %v348_v36, %v305_v34  ;;  %v380_v40 = vpop.f32.mrf.mxu1 }
  0xe9   :  { %v350_v41 = vpop.f32.mrf.mxu0 }
  0xea   :  { %v295_v42 = vadd.f32 %v294_v31, %v255_v39 }
  0xec   :  { %300 = vst [vmem:[%s519_s3] sm:$0xff] %v295_v42 }

// kernel: nn4snli_forward.10
= control target key start
LH: loop header
LB: loop body
LE: loop exit
PB: predicated region body
PF: predicated region fallthrough
CT: control target
= control target key end

     0   :  { %s2862_s1 = inlined_call_operand.vmem [shape: bf16[1024,384], index: 1, kind: input, shape index: {}]   ;;  %s2863_s0 = inlined_call_operand.vmem [shape: f32[8,1024], index: 0, kind: input, shape index: {}]   ;;  %s2864_s2 = inlined_call_operand.vmem [shape: f32[1,384], index: 2, kind: input, shape index: {}]   ;;  %s2865_s3 = inlined_call_operand.vmem [shape: f32[8,384], index: 3, kind: output, shape index: {}]  }
   0x1   :  { %v1942_v0 = vld [vmem:[%s2862_s1 + $0xac] ss:$12 sps:$4 sm:$0xff]   ;;  %v1946_v2 = vld [vmem:[%s2862_s1 + $0xa8] ss:$12 sps:$4 sm:$0xff]   ;;  %v1952_v6 = vld [vmem:[%s2862_s1 + $0x90] ss:$12 sps:$4 sm:$0xff]  }
   0x2   :  { %v1944_v1 = vld [vmem:[%s2862_s1 + $0x22c] ss:$12 sps:$4 sm:$0xff]   ;;  %1328 = vmatprep.subr.bf16.mxu0 %v1942_v0  ;;  %v1947_v3 = vld [vmem:[%s2862_s1 + $0x228] ss:$12 sps:$4 sm:$0xff]   ;;  %v1953_v7 = vld [vmem:[%s2862_s1 + $0x210] ss:$12 sps:$4 sm:$0xff]  }
   0x3   :  { %1369 = vmatprep.subr.bf16.mxu1 %v1944_v1  ;;  %v1948_v4 = vld [vmem:[%s2862_s1 + $0x94] ss:$12 sps:$4 sm:$0xff]   ;;  %1329 = vmatpush1.bf16.msra.mxu0 %v1946_v2  ;;  %v1954_v8 = vld [vmem:[%s2862_s1 + $0x7c] ss:$12 sps:$4 sm:$0xff]   ;;  %v1958_v10 = vld [vmem:[%s2862_s1 + $0x78] ss:$12 sps:$4 sm:$0xff]  }
   0x4   :  { %1370 = vmatpush1.bf16.msra.mxu1 %v1947_v3  ;;  %v1950_v5 = vld [vmem:[%s2862_s1 + $0x214] ss:$12 sps:$4 sm:$0xff]   ;;  %1330 = vmatprep.subr.bf16.mxu0 %v1948_v4  ;;  %v1956_v9 = vld [vmem:[%s2862_s1 + $0x1fc] ss:$12 sps:$4 sm:$0xff]   ;;  %v1959_v11 = vld [vmem:[%s2862_s1 + $0x1f8] ss:$12 sps:$4 sm:$0xff]  }
   0x5   :  { %1371 = vmatprep.subr.bf16.mxu1 %v1950_v5  ;;  %v1960_v12 = vld [vmem:[%s2862_s1 + $0x64] ss:$12 sps:$4 sm:$0xff]   ;;  %v1964_v14 = vld [vmem:[%s2862_s1 + $0x60] ss:$12 sps:$4 sm:$0xff]   ;;  %v1970_v18 = vld [vmem:[%s2862_s1 + $0x48] ss:$12 sps:$4 sm:$0xff]  }
   0x6   :  { %v1962_v13 = vld [vmem:[%s2862_s1 + $0x1e4] ss:$12 sps:$4 sm:$0xff]   ;;  %v1965_v15 = vld [vmem:[%s2862_s1 + $0x1e0] ss:$12 sps:$4 sm:$0xff]   ;;  %v1971_v19 = vld [vmem:[%s2862_s1 + $0x1c8] ss:$12 sps:$4 sm:$0xff]  }
   0x7   :  { %1331 = vmatpush1.bf16.msra.mxu0 %v1952_v6  ;;  %v1966_v16 = vld [vmem:[%s2862_s1 + $0x4c] ss:$12 sps:$4 sm:$0xff]   ;;  %v1972_v20 = vld [vmem:[%s2862_s1 + $0x34] ss:$12 sps:$4 sm:$0xff]   ;;  %v1976_v22 = vld [vmem:[%s2862_s1 + $0x30] ss:$12 sps:$4 sm:$0xff]  }
   0x8   :  { %1372 = vmatpush1.bf16.msra.mxu1 %v1953_v7  ;;  %1332 = vmatprep.subr.bf16.mxu0 %v1954_v8  ;;  %v1968_v17 = vld [vmem:[%s2862_s1 + $0x1cc] ss:$12 sps:$4 sm:$0xff]   ;;  %v1974_v21 = vld [vmem:[%s2862_s1 + $0x1b4] ss:$12 sps:$4 sm:$0xff]   ;;  %v1977_v23 = vld [vmem:[%s2862_s1 + $0x1b0] ss:$12 sps:$4 sm:$0xff]  }
   0x9   :  { %1373 = vmatprep.subr.bf16.mxu1 %v1956_v9  ;;  %v1978_v24 = vld [vmem:[%s2862_s1 + $0x1c] ss:$12 sps:$4 sm:$0xff]   ;;  %v1982_v26 = vld [vmem:[%s2862_s1 + $0x18] ss:$12 sps:$4 sm:$0xff]   ;;  %v1988_v30 = vld [vmem:[%s2862_s1] ss:$12 sps:$4 sm:$0xff]  }
   0xa   :  { %v1980_v25 = vld [vmem:[%s2862_s1 + $0x19c] ss:$12 sps:$4 sm:$0xff]   ;;  %v1983_v27 = vld [vmem:[%s2862_s1 + $0x198] ss:$12 sps:$4 sm:$0xff]   ;;  %v1989_v31 = vld [vmem:[%s2862_s1 + $0x180] ss:$12 sps:$4 sm:$0xff]  }
   0xb   :  { %1333 = vmatpush1.bf16.msra.mxu0 %v1958_v10  ;;  %v1984_v28 = vld [vmem:[%s2862_s1 + $0x4] ss:$12 sps:$4 sm:$0xff]   ;;  %v1990_v32 = vld [vmem:[%s2862_s1 + $0x16c] ss:$12 sps:$4 sm:$0xff]   ;;  %v1994_v34 = vld [vmem:[%s2862_s1 + $0x168] ss:$12 sps:$4 sm:$0xff]  }
   0xc   :  { %1374 = vmatpush1.bf16.msra.mxu1 %v1959_v11  ;;  %1334 = vmatprep.subr.bf16.mxu0 %v1960_v12  ;;  %v1986_v29 = vld [vmem:[%s2862_s1 + $0x184] ss:$12 sps:$4 sm:$0xff]   ;;  %v1992_v33 = vld [vmem:[%s2862_s1 + $0x2ec] ss:$12 sps:$4 sm:$0xff]   ;;  %v1995_v35 = vld [vmem:[%s2862_s1 + $0x2e8] ss:$12 sps:$4 sm:$0xff]  }
   0xd   :  { %1375 = vmatprep.subr.bf16.mxu1 %v1962_v13  ;;  %v1996_v36 = vld [vmem:[%s2862_s1 + $0x154] ss:$12 sps:$4 sm:$0xff]   ;;  %v2000_v38 = vld [vmem:[%s2862_s1 + $0x150] ss:$12 sps:$4 sm:$0xff]   ;;  %v2006_v42 = vld [vmem:[%s2862_s1 + $0x138] ss:$12 sps:$4 sm:$0xff]  }
   0xe   :  { %v1998_v37 = vld [vmem:[%s2862_s1 + $0x2d4] ss:$12 sps:$4 sm:$0xff]   ;;  %v2001_v39 = vld [vmem:[%s2862_s1 + $0x2d0] ss:$12 sps:$4 sm:$0xff]   ;;  %v2007_v43 = vld [vmem:[%s2862_s1 + $0x2b8] ss:$12 sps:$4 sm:$0xff]  }
   0xf   :  { %1335 = vmatpush1.bf16.msra.mxu0 %v1964_v14  ;;  %v2002_v40 = vld [vmem:[%s2862_s1 + $0x13c] ss:$12 sps:$4 sm:$0xff]   ;;  %v2008_v44 = vld [vmem:[%s2862_s1 + $0x124] ss:$12 sps:$4 sm:$0xff]   ;;  %v2012_v47 = vld [vmem:[%s2862_s1 + $0x120] ss:$12 sps:$4 sm:$0xff]  }
  0x10   :  { %1376 = vmatpush1.bf16.msra.mxu1 %v1965_v15  ;;  %1336 = vmatprep.subr.bf16.mxu0 %v1966_v16  ;;  %v2004_v41 = vld [vmem:[%s2862_s1 + $0x2bc] ss:$12 sps:$4 sm:$0xff]   ;;  %v2010_v45 = vld [vmem:[%s2862_s1 + $0x2a4] ss:$12 sps:$4 sm:$0xff]   ;;  %v2013_v48 = vld [vmem:[%s2862_s1 + $0x2a0] ss:$12 sps:$4 sm:$0xff]  }
  0x11   :  { %1377 = vmatprep.subr.bf16.mxu1 %v1968_v17  ;;  %v16_v46 = vld [vmem:[%s2863_s0 + $0x8] sm:$0xff]  ;;  %v18_v50 = vld [vmem:[%s2863_s0 + $0x18] sm:$0xff]  ;;  %v2020_v56 = vld [vmem:[%s2862_s1 + $0xf4] ss:$12 sps:$4 sm:$0xff]  }
  0x12   :  { %v2365_v49 = vpack.c.bf16 %v16_v46, %v16_v46  ;;  %v2014_v51 = vld [vmem:[%s2862_s1 + $0x10c] ss:$12 sps:$4 sm:$0xff]   ;;  %v2373_v52 = vpack.c.bf16 %v18_v50, %v18_v50  ;;  %v2018_v54 = vld [vmem:[%s2862_s1 + $0x108] ss:$12 sps:$4 sm:$0xff]   ;;  %v2024_v58 = vld [vmem:[%s2862_s1 + $0xf0] ss:$12 sps:$4 sm:$0xff]  }
  0x13   :  { %1337 = vmatpush1.bf16.msra.mxu0 %v1970_v18  ;;  %v2016_v53 = vld [vmem:[%s2862_s1 + $0x28c] ss:$12 sps:$4 sm:$0xff]   ;;  %v2019_v55 = vld [vmem:[%s2862_s1 + $0x288] ss:$12 sps:$4 sm:$0xff]   ;;  %v2025_v59 = vld [vmem:[%s2862_s1 + $0x270] ss:$12 sps:$4 sm:$0xff]  }
  0x14   :  { %1378 = vmatpush1.bf16.msra.mxu1 %v1971_v19  ;;  %1338 = vmatprep.subr.bf16.mxu0 %v1972_v20  ;;  %v2022_v57 = vld [vmem:[%s2862_s1 + $0x274] ss:$12 sps:$4 sm:$0xff]   ;;  %v2026_v60 = vld [vmem:[%s2862_s1 + $0xdc] ss:$12 sps:$4 sm:$0xff]   ;;  %v2030_v62 = vld [vmem:[%s2862_s1 + $0xd8] ss:$12 sps:$4 sm:$0xff]  }
  0x15   :  { %1379 = vmatprep.subr.bf16.mxu1 %v1974_v21  ;;  %1360 = vmatprep.mubr.bf16.mxu0 %v2365_v49  ;;  %v2028_v61 = vld [vmem:[%s2862_s1 + $0x25c] ss:$12 sps:$4 sm:$0xff]   ;;  %v2031_v63 = vld [vmem:[%s2862_s1 + $0x258] ss:$12 sps:$4 sm:$0xff]   ;;  %v2036_v2 = vld [vmem:[%s2862_s1 + $0xc0] ss:$12 sps:$4 sm:$0xff]  }
  0x16   :  { %1401 = vmatprep.mubr.bf16.mxu1 %v2373_v52  ;;  %v2032_v0 = vld [vmem:[%s2862_s1 + $0xc4] ss:$12 sps:$4 sm:$0xff]   ;;  %v2037_v3 = vld [vmem:[%s2862_s1 + $0x240] ss:$12 sps:$4 sm:$0xff]   ;;  %v2038_v10 = vld [vmem:[%s2862_s1 + $0x3a8] ss:$12 sps:$4 sm:$0xff]  }
  0x17   :  { %1339 = vmatpush1.bf16.msra.mxu0 %v1976_v22  ;;  %v2034_v1 = vld [vmem:[%s2862_s1 + $0x244] ss:$12 sps:$4 sm:$0xff]   ;;  %v2040_v6 = vld [vmem:[%s2862_s1 + $0x3ac] ss:$12 sps:$4 sm:$0xff]   ;;  %v2041_v11 = vld [vmem:[%s2862_s1 + $0x528] ss:$12 sps:$4 sm:$0xff]  }
  0x18   :  { %1380 = vmatpush1.bf16.msra.mxu1 %v1977_v23  ;;  %1340 = vmatprep.subr.bf16.mxu0 %v1978_v24  ;;  %v15_v4 = vld [vmem:[%s2863_s0] sm:$0xff]  ;;  %v17_v5 = vld [vmem:[%s2863_s0 + $0x10] sm:$0xff]  ;;  %v2043_v7 = vld [vmem:[%s2862_s1 + $0x52c] ss:$12 sps:$4 sm:$0xff]  }
  0x19   :  { %1381 = vmatprep.subr.bf16.mxu1 %v1980_v25  ;;  %v2434_v8 = vpack.c.bf16 %v15_v4, %v15_v4  ;;  %v2436_v9 = vpack.c.bf16 %v17_v5, %v17_v5  ;;  %v2046_v12 = vld [vmem:[%s2862_s1 + $0x394] ss:$12 sps:$4 sm:$0xff]   ;;  %v2044_v14 = vld [vmem:[%s2862_s1 + $0x390] ss:$12 sps:$4 sm:$0xff]   ;;  %v2050_v18 = vld [vmem:[%s2862_s1 + $0x378] ss:$12 sps:$4 sm:$0xff]  }
  0x1a   :  { %v2049_v13 = vld [vmem:[%s2862_s1 + $0x514] ss:$12 sps:$4 sm:$0xff]   ;;  %v2047_v15 = vld [vmem:[%s2862_s1 + $0x510] ss:$12 sps:$4 sm:$0xff]   ;;  %v2053_v19 = vld [vmem:[%s2862_s1 + $0x4f8] ss:$12 sps:$4 sm:$0xff]  }
  0x1b   :  { %1341 = vmatpush1.bf16.msra.mxu0 %v1982_v26  ;;  %v2052_v16 = vld [vmem:[%s2862_s1 + $0x37c] ss:$12 sps:$4 sm:$0xff]   ;;  %v2058_v20 = vld [vmem:[%s2862_s1 + $0x364] ss:$12 sps:$4 sm:$0xff]   ;;  %v2056_v22 = vld [vmem:[%s2862_s1 + $0x360] ss:$12 sps:$4 sm:$0xff]  }
  0x1c   :  { %1382 = vmatpush1.bf16.msra.mxu1 %v1983_v27  ;;  %1342 = vmatprep.subr.bf16.mxu0 %v1984_v28  ;;  %v2055_v17 = vld [vmem:[%s2862_s1 + $0x4fc] ss:$12 sps:$4 sm:$0xff]   ;;  %v2061_v21 = vld [vmem:[%s2862_s1 + $0x4e4] ss:$12 sps:$4 sm:$0xff]   ;;  %v2059_v23 = vld [vmem:[%s2862_s1 + $0x4e0] ss:$12 sps:$4 sm:$0xff]  }
  0x1d   :  { %1383 = vmatprep.subr.bf16.mxu1 %v1986_v29  ;;  %v2064_v24 = vld [vmem:[%s2862_s1 + $0x34c] ss:$12 sps:$4 sm:$0xff]   ;;  %v2062_v26 = vld [vmem:[%s2862_s1 + $0x348] ss:$12 sps:$4 sm:$0xff]   ;;  %v2116_v4 = vld [vmem:[%s2862_s1 + $0x3f0] ss:$12 sps:$4 sm:$0xff]  }
  0x1e   :  { %v2067_v25 = vld [vmem:[%s2862_s1 + $0x4cc] ss:$12 sps:$4 sm:$0xff]   ;;  %v2065_v27 = vld [vmem:[%s2862_s1 + $0x4c8] ss:$12 sps:$4 sm:$0xff]   ;;  %v2119_v5 = vld [vmem:[%s2862_s1 + $0x570] ss:$12 sps:$4 sm:$0xff]  }
  0x1f   :  { %1343 = vmatpush1.bf16.msra.mxu0 %v1988_v30  ;;  %v2070_v28 = vld [vmem:[%s2862_s1 + $0x334] ss:$12 sps:$4 sm:$0xff]   ;;  %v2068_v30 = vld [vmem:[%s2862_s1 + $0x330] ss:$12 sps:$4 sm:$0xff]  }
  0x20   :  { %1384 = vmatpush1.bf16.msra.mxu1 %v1989_v31  ;;  %1344 = vmatprep.subr.bf16.mxu0 %v1990_v32  ;;  %v2073_v29 = vld [vmem:[%s2862_s1 + $0x4b4] ss:$12 sps:$4 sm:$0xff]   ;;  %v2071_v31 = vld [vmem:[%s2862_s1 + $0x4b0] ss:$12 sps:$4 sm:$0xff]  }
  0x21   :  { %1385 = vmatprep.subr.bf16.mxu1 %v1992_v33  ;;  %v2076_v32 = vld [vmem:[%s2862_s1 + $0x31c] ss:$12 sps:$4 sm:$0xff]   ;;  %v2097_v50 = vld [vmem:[%s2862_s1 + $0x5d4] ss:$12 sps:$4 sm:$0xff]  }
  0x22   :  { %v2079_v33 = vld [vmem:[%s2862_s1 + $0x49c] ss:$12 sps:$4 sm:$0xff]  }
  0x23   :  { %1345 = vmatpush2.bf16.msra.mxu0 %v1994_v34  ;;  %v20_v34 = vld [vmem:[%s2863_s0 + $0x28] sm:$0xff] }
  0x24   :  { %1386 = vmatpush2.bf16.msra.mxu1 %v1995_v35  ;;  %1346 = vmatprep.subr.bf16.mxu0 %v1996_v36  ;;  %v2074_v35 = vld [vmem:[%s2862_s1 + $0x318] ss:$12 sps:$4 sm:$0xff]   ;;  %v2086_v46 = vld [vmem:[%s2862_s1 + $0x468] ss:$12 sps:$4 sm:$0xff]  }
  0x25   :  { %1387 = vmatprep.subr.bf16.mxu1 %v1998_v37  ;;  %v2077_v36 = vld [vmem:[%s2862_s1 + $0x498] ss:$12 sps:$4 sm:$0xff]   ;;  %v2521_v37 = vpack.c.bf16 %v20_v34, %v20_v34  ;;  %v2150_v34 = vld [vmem:[%s2862_s1 + $0x110] ss:$12 sps:$4 sm:$0xff]  }
  0x27   :  { %1347 = vmatpush2.bf16.msra.mxu0 %v2000_v38  ;;  %v22_v38 = vld [vmem:[%s2863_s0 + $0x38] sm:$0xff] }
  0x28   :  { %1388 = vmatpush2.bf16.msra.mxu1 %v2001_v39  ;;  %1348 = vmatprep.subr.bf16.mxu0 %v2002_v40  ;;  %v2082_v39 = vld [vmem:[%s2862_s1 + $0x304] ss:$12 sps:$4 sm:$0xff]   ;;  %v2529_v40 = vpack.c.bf16 %v22_v38, %v22_v38 }
  0x29   :  { %1389 = vmatprep.subr.bf16.mxu1 %v2004_v41  ;;  %v2085_v41 = vld [vmem:[%s2862_s1 + $0x484] ss:$12 sps:$4 sm:$0xff]  }
  0x2a   :  { %v2153_v38 = vld [vmem:[%s2862_s1 + $0x1d0] ss:$12 sps:$4 sm:$0xff]  }
  0x2b   :  { %1349 = vmatpush2.bf16.msra.mxu0 %v2006_v42  ;;  %v2080_v42 = vld [vmem:[%s2862_s1 + $0x300] ss:$12 sps:$4 sm:$0xff]  }
  0x2c   :  { %1390 = vmatpush2.bf16.msra.mxu1 %v2007_v43  ;;  %1350 = vmatprep.subr.bf16.mxu0 %v2008_v44  ;;  %v2083_v43 = vld [vmem:[%s2862_s1 + $0x480] ss:$12 sps:$4 sm:$0xff]  }
  0x2d   :  { %1391 = vmatprep.subr.bf16.mxu1 %v2010_v45  ;;  %v2088_v44 = vld [vmem:[%s2862_s1 + $0x46c] ss:$12 sps:$4 sm:$0xff]  }
  0x2e   :  { %v2091_v45 = vld [vmem:[%s2862_s1 + $0x5ec] ss:$12 sps:$4 sm:$0xff]  }
  0x2f   :  { %1351 = vmatpush2.bf16.msra.mxu0 %v2012_v47  ;;  %v2089_v47 = vld [vmem:[%s2862_s1 + $0x5e8] ss:$12 sps:$4 sm:$0xff]  }
  0x30   :  { %1392 = vmatpush2.bf16.msra.mxu1 %v2013_v48  ;;  %1352 = vmatprep.subr.bf16.mxu0 %v2014_v51  ;;  %v2094_v48 = vld [vmem:[%s2862_s1 + $0x454] ss:$12 sps:$4 sm:$0xff]   ;;  %v2092_v51 = vld [vmem:[%s2862_s1 + $0x450] ss:$12 sps:$4 sm:$0xff]  }
  0x31   :  { %1393 = vmatprep.subr.bf16.mxu1 %v2016_v53  ;;  %v2095_v53 = vld [vmem:[%s2862_s1 + $0x5d0] ss:$12 sps:$4 sm:$0xff]  }
  0x33   :  { %1353 = vmatpush2.bf16.msra.mxu0 %v2018_v54  ;;  %v2100_v54 = vld [vmem:[%s2862_s1 + $0x43c] ss:$12 sps:$4 sm:$0xff]  }
  0x34   :  { %1394 = vmatpush2.bf16.msra.mxu1 %v2019_v55  ;;  %1354 = vmatprep.subr.bf16.mxu0 %v2020_v56  ;;  %v2103_v55 = vld [vmem:[%s2862_s1 + $0x5bc] ss:$12 sps:$4 sm:$0xff]   ;;  %v2098_v56 = vld [vmem:[%s2862_s1 + $0x438] ss:$12 sps:$4 sm:$0xff]  }
  0x35   :  { %1395 = vmatprep.subr.bf16.mxu1 %v2022_v57  ;;  %v2101_v57 = vld [vmem:[%s2862_s1 + $0x5b8] ss:$12 sps:$4 sm:$0xff]  }
  0x37   :  { %1355 = vmatpush2.bf16.msra.mxu0 %v2024_v58  ;;  %v2106_v58 = vld [vmem:[%s2862_s1 + $0x424] ss:$12 sps:$4 sm:$0xff]  }
  0x38   :  { %1396 = vmatpush2.bf16.msra.mxu1 %v2025_v59  ;;  %1356 = vmatprep.subr.bf16.mxu0 %v2026_v60  ;;  %v2109_v59 = vld [vmem:[%s2862_s1 + $0x5a4] ss:$12 sps:$4 sm:$0xff]   ;;  %v2104_v60 = vld [vmem:[%s2862_s1 + $0x420] ss:$12 sps:$4 sm:$0xff]  }
  0x39   :  { %1397 = vmatprep.subr.bf16.mxu1 %v2028_v61  ;;  %v2107_v61 = vld [vmem:[%s2862_s1 + $0x5a0] ss:$12 sps:$4 sm:$0xff]  }
  0x3b   :  { %1357 = vmatpush2.bf16.msra.mxu0 %v2030_v62  ;;  %v2112_v62 = vld [vmem:[%s2862_s1 + $0x40c] ss:$12 sps:$4 sm:$0xff]  }
  0x3c   :  { %1398 = vmatpush2.bf16.msra.mxu1 %v2031_v63  ;;  %1358 = vmatprep.subr.bf16.mxu0 %v2032_v0  ;;  %v2115_v63 = vld [vmem:[%s2862_s1 + $0x58c] ss:$12 sps:$4 sm:$0xff]   ;;  %v2110_v0 = vld [vmem:[%s2862_s1 + $0x408] ss:$12 sps:$4 sm:$0xff]  }
  0x3d   :  { %1399 = vmatprep.subr.bf16.mxu1 %v2034_v1  ;;  %v2113_v1 = vld [vmem:[%s2862_s1 + $0x588] ss:$12 sps:$4 sm:$0xff]  }
  0x3f   :  { %1359 = vmatpush2.bf16.msra.mxu0 %v2036_v2  ;;  %v2118_v2 = vld [vmem:[%s2862_s1 + $0x3f4] ss:$12 sps:$4 sm:$0xff]  }
  0x40   :  { %1400 = vmatpush2.bf16.msra.mxu1 %v2037_v3  ;;  %1410 = vmatprep.subr.bf16.mxu0 %v2040_v6  ;;  %v2121_v3 = vld [vmem:[%s2862_s1 + $0x574] ss:$12 sps:$4 sm:$0xff]   ;;  %v2124_v6 = vld [vmem:[%s2862_s1 + $0x3dc] ss:$12 sps:$4 sm:$0xff]  }
  0x41   :  { %1451 = vmatprep.subr.bf16.mxu1 %v2043_v7  ;;  %v2127_v7 = vld [vmem:[%s2862_s1 + $0x55c] ss:$12 sps:$4 sm:$0xff]  }
  0x42   :  { %1361 = vmatmul.mubr.bf16.vlgmr.msra.gmra.mxu0 %v2434_v8 }
  0x43   :  { %1402 = vmatmul.mubr.bf16.vlgmr.msra.gmra.mxu1 %v2436_v9  ;;  %1411 = vmatpush1.bf16.msra.mxu0 %v2038_v10  ;;  %v2122_v10 = vld [vmem:[%s2862_s1 + $0x3d8] ss:$12 sps:$4 sm:$0xff]  }
  0x44   :  { %1452 = vmatpush1.bf16.msra.mxu1 %v2041_v11  ;;  %1412 = vmatprep.subr.bf16.mxu0 %v2046_v12  ;;  %v2125_v11 = vld [vmem:[%s2862_s1 + $0x558] ss:$12 sps:$4 sm:$0xff]  }
  0x45   :  { %1453 = vmatprep.subr.bf16.mxu1 %v2049_v13  ;;  %1442 = vmatprep.mubr.bf16.mxu0 %v2521_v37  ;;  %v2130_v12 = vld [vmem:[%s2862_s1 + $0x3c4] ss:$12 sps:$4 sm:$0xff]  }
  0x46   :  { %1483 = vmatprep.mubr.bf16.mxu1 %v2529_v40  ;;  %v2133_v13 = vld [vmem:[%s2862_s1 + $0x544] ss:$12 sps:$4 sm:$0xff]  }
  0x47   :  { %1413 = vmatpush1.bf16.msra.mxu0 %v2044_v14  ;;  %v2128_v14 = vld [vmem:[%s2862_s1 + $0x3c0] ss:$12 sps:$4 sm:$0xff]  }
  0x48   :  { %1454 = vmatpush1.bf16.msra.mxu1 %v2047_v15  ;;  %1414 = vmatprep.subr.bf16.mxu0 %v2052_v16  ;;  %v2131_v15 = vld [vmem:[%s2862_s1 + $0x540] ss:$12 sps:$4 sm:$0xff]  }
  0x49   :  { %1455 = vmatprep.subr.bf16.mxu1 %v2055_v17  ;;  %v19_v16 = vld [vmem:[%s2863_s0 + $0x20] sm:$0xff]  ;;  %v21_v17 = vld [vmem:[%s2863_s0 + $0x30] sm:$0xff] }
  0x4b   :  { %1415 = vmatpush1.bf16.msra.mxu0 %v2050_v18  ;;  %v2134_v18 = vld [vmem:[%s2862_s1 + $0x170] ss:$12 sps:$4 sm:$0xff]  }
  0x4c   :  { %1456 = vmatpush1.bf16.msra.mxu1 %v2053_v19  ;;  %1416 = vmatprep.subr.bf16.mxu0 %v2058_v20  ;;  %v2135_v19 = vld [vmem:[%s2862_s1 + $0x2f0] ss:$12 sps:$4 sm:$0xff]  }
  0x4d   :  { %1457 = vmatprep.subr.bf16.mxu1 %v2061_v21  ;;  %v2136_v20 = vld [vmem:[%s2862_s1 + $0xb0] ss:$12 sps:$4 sm:$0xff]   ;;  %v2653_v21 = vpack.c.bf16 %v19_v16, %v19_v16  ;;  %v2194_v16 = vld [vmem:[%s2862_s1 + $0x3c8] ss:$12 sps:$4 sm:$0xff]  }
  0x4f   :  { %1417 = vmatpush1.bf16.msra.mxu0 %v2056_v22  ;;  %v2655_v22 = vpack.c.bf16 %v21_v17, %v21_v17  ;;  %v2195_v17 = vld [vmem:[%s2862_s1 + $0x548] ss:$12 sps:$4 sm:$0xff]  }
  0x50   :  { %1458 = vmatpush1.bf16.msra.mxu1 %v2059_v23  ;;  %1418 = vmatprep.subr.bf16.mxu0 %v2064_v24  ;;  %v2137_v23 = vld [vmem:[%s2862_s1 + $0x230] ss:$12 sps:$4 sm:$0xff]   ;;  %v2138_v24 = vld [vmem:[%s2862_s1 + $0x158] ss:$12 sps:$4 sm:$0xff]  }
  0x51   :  { %1459 = vmatprep.subr.bf16.mxu1 %v2067_v25  ;;  %v2139_v25 = vld [vmem:[%s2862_s1 + $0x2d8] ss:$12 sps:$4 sm:$0xff]  }
  0x53   :  { %1419 = vmatpush1.bf16.msra.mxu0 %v2062_v26  ;;  %v2140_v26 = vld [vmem:[%s2862_s1 + $0x98] ss:$12 sps:$4 sm:$0xff]  }
  0x54   :  { %1460 = vmatpush1.bf16.msra.mxu1 %v2065_v27  ;;  %1420 = vmatprep.subr.bf16.mxu0 %v2070_v28  ;;  %v2141_v27 = vld [vmem:[%s2862_s1 + $0x218] ss:$12 sps:$4 sm:$0xff]   ;;  %v2142_v28 = vld [vmem:[%s2862_s1 + $0x140] ss:$12 sps:$4 sm:$0xff]  }
  0x55   :  { %1461 = vmatprep.subr.bf16.mxu1 %v2073_v29  ;;  %v2143_v29 = vld [vmem:[%s2862_s1 + $0x2c0] ss:$12 sps:$4 sm:$0xff]  }
  0x57   :  { %1421 = vmatpush1.bf16.msra.mxu0 %v2068_v30  ;;  %v2144_v30 = vld [vmem:[%s2862_s1 + $0x80] ss:$12 sps:$4 sm:$0xff]  }
  0x58   :  { %1462 = vmatpush1.bf16.msra.mxu1 %v2071_v31  ;;  %1422 = vmatprep.subr.bf16.mxu0 %v2076_v32  ;;  %v2145_v31 = vld [vmem:[%s2862_s1 + $0x200] ss:$12 sps:$4 sm:$0xff]   ;;  %v2146_v32 = vld [vmem:[%s2862_s1 + $0x128] ss:$12 sps:$4 sm:$0xff]  }
  0x59   :  { %1463 = vmatprep.subr.bf16.mxu1 %v2079_v33  ;;  %v2147_v33 = vld [vmem:[%s2862_s1 + $0x2a8] ss:$12 sps:$4 sm:$0xff]  }
  0x5b   :  { %1423 = vmatpush1.bf16.msra.mxu0 %v2074_v35  ;;  %v2151_v35 = vld [vmem:[%s2862_s1 + $0x290] ss:$12 sps:$4 sm:$0xff]  }
  0x5c   :  { %1464 = vmatpush1.bf16.msra.mxu1 %v2077_v36  ;;  %1424 = vmatprep.subr.bf16.mxu0 %v2082_v39  ;;  %v2152_v36 = vld [vmem:[%s2862_s1 + $0x50] ss:$12 sps:$4 sm:$0xff]   ;;  %v2154_v39 = vld [vmem:[%s2862_s1 + $0xf8] ss:$12 sps:$4 sm:$0xff]  }
  0x5d   :  { %1465 = vmatprep.subr.bf16.mxu1 %v2085_v41  ;;  %v2155_v41 = vld [vmem:[%s2862_s1 + $0x278] ss:$12 sps:$4 sm:$0xff]  }
  0x5f   :  { %1425 = vmatpush1.bf16.msra.mxu0 %v2080_v42  ;;  %v2156_v42 = vld [vmem:[%s2862_s1 + $0x38] ss:$12 sps:$4 sm:$0xff]  }
  0x60   :  { %1466 = vmatpush1.bf16.msra.mxu1 %v2083_v43  ;;  %1426 = vmatprep.subr.bf16.mxu0 %v2088_v44  ;;  %v2157_v43 = vld [vmem:[%s2862_s1 + $0x1b8] ss:$12 sps:$4 sm:$0xff]   ;;  %v2158_v44 = vld [vmem:[%s2862_s1 + $0xe0] ss:$12 sps:$4 sm:$0xff]  }
  0x61   :  { %1467 = vmatprep.subr.bf16.mxu1 %v2091_v45  ;;  %v2159_v45 = vld [vmem:[%s2862_s1 + $0x260] ss:$12 sps:$4 sm:$0xff]  }
  0x63   :  { %1427 = vmatpush2.bf16.msra.mxu0 %v2086_v46  ;;  %v2160_v46 = vld [vmem:[%s2862_s1 + $0x20] ss:$12 sps:$4 sm:$0xff]  }
  0x64   :  { %1468 = vmatpush2.bf16.msra.mxu1 %v2089_v47  ;;  %1428 = vmatprep.subr.bf16.mxu0 %v2094_v48  ;;  %v2161_v47 = vld [vmem:[%s2862_s1 + $0x1a0] ss:$12 sps:$4 sm:$0xff]   ;;  %v2162_v48 = vld [vmem:[%s2862_s1 + $0xc8] ss:$12 sps:$4 sm:$0xff]  }
  0x65   :  { %1469 = vmatprep.subr.bf16.mxu1 %v2097_v50  ;;  %v2163_v50 = vld [vmem:[%s2862_s1 + $0x248] ss:$12 sps:$4 sm:$0xff]  }
  0x67   :  { %1429 = vmatpush2.bf16.msra.mxu0 %v2092_v51  ;;  %v2164_v51 = vld [vmem:[%s2862_s1 + $0x8] ss:$12 sps:$4 sm:$0xff]  }
  0x68   :  { %1470 = vmatpush2.bf16.msra.mxu1 %v2095_v53  ;;  %1430 = vmatprep.subr.bf16.mxu0 %v2100_v54  ;;  %v2165_v53 = vld [vmem:[%s2862_s1 + $0x188] ss:$12 sps:$4 sm:$0xff]   ;;  %v2166_v54 = vld [vmem:[%s2862_s1 + $0x470] ss:$12 sps:$4 sm:$0xff]  }
  0x69   :  { %1471 = vmatprep.subr.bf16.mxu1 %v2103_v55  ;;  %v2167_v55 = vld [vmem:[%s2862_s1 + $0x5f0] ss:$12 sps:$4 sm:$0xff]  }
  0x6b   :  { %1431 = vmatpush2.bf16.msra.mxu0 %v2098_v56  ;;  %v2168_v56 = vld [vmem:[%s2862_s1 + $0x3b0] ss:$12 sps:$4 sm:$0xff]  }
  0x6c   :  { %1472 = vmatpush2.bf16.msra.mxu1 %v2101_v57  ;;  %1432 = vmatprep.subr.bf16.mxu0 %v2106_v58  ;;  %v2169_v57 = vld [vmem:[%s2862_s1 + $0x530] ss:$12 sps:$4 sm:$0xff]   ;;  %v2170_v58 = vld [vmem:[%s2862_s1 + $0x458] ss:$12 sps:$4 sm:$0xff]  }
  0x6d   :  { %1473 = vmatprep.subr.bf16.mxu1 %v2109_v59  ;;  %v2171_v59 = vld [vmem:[%s2862_s1 + $0x5d8] ss:$12 sps:$4 sm:$0xff]  }
  0x6f   :  { %1433 = vmatpush2.bf16.msra.mxu0 %v2104_v60  ;;  %v2172_v60 = vld [vmem:[%s2862_s1 + $0x398] ss:$12 sps:$4 sm:$0xff]  }
  0x70   :  { %1474 = vmatpush2.bf16.msra.mxu1 %v2107_v61  ;;  %1434 = vmatprep.subr.bf16.mxu0 %v2112_v62  ;;  %v2173_v61 = vld [vmem:[%s2862_s1 + $0x518] ss:$12 sps:$4 sm:$0xff]   ;;  %v2174_v62 = vld [vmem:[%s2862_s1 + $0x440] ss:$12 sps:$4 sm:$0xff]  }
  0x71   :  { %1475 = vmatprep.subr.bf16.mxu1 %v2115_v63  ;;  %v2177_v63 = vld [vmem:[%s2862_s1 + $0x500] ss:$12 sps:$4 sm:$0xff]  }
  0x73   :  { %1435 = vmatpush2.bf16.msra.mxu0 %v2110_v0  ;;  %v2178_v0 = vld [vmem:[%s2862_s1 + $0x428] ss:$12 sps:$4 sm:$0xff]  }
  0x74   :  { %1476 = vmatpush2.bf16.msra.mxu1 %v2113_v1  ;;  %1436 = vmatprep.subr.bf16.mxu0 %v2118_v2  ;;  %v2181_v1 = vld [vmem:[%s2862_s1 + $0x4e8] ss:$12 sps:$4 sm:$0xff]   ;;  %v2182_v2 = vld [vmem:[%s2862_s1 + $0x410] ss:$12 sps:$4 sm:$0xff]  }
  0x75   :  { %1477 = vmatprep.subr.bf16.mxu1 %v2121_v3  ;;  %v2183_v3 = vld [vmem:[%s2862_s1 + $0x590] ss:$12 sps:$4 sm:$0xff]  }
  0x77   :  { %1437 = vmatpush2.bf16.msra.mxu0 %v2116_v4  ;;  %v2184_v4 = vld [vmem:[%s2862_s1 + $0x350] ss:$12 sps:$4 sm:$0xff]  }
  0x78   :  { %1478 = vmatpush2.bf16.msra.mxu1 %v2119_v5  ;;  %1438 = vmatprep.subr.bf16.mxu0 %v2124_v6  ;;  %v2185_v5 = vld [vmem:[%s2862_s1 + $0x4d0] ss:$12 sps:$4 sm:$0xff]   ;;  %v2186_v6 = vld [vmem:[%s2862_s1 + $0x3f8] ss:$12 sps:$4 sm:$0xff]  }
  0x79   :  { %1479 = vmatprep.subr.bf16.mxu1 %v2127_v7  ;;  %v2187_v7 = vld [vmem:[%s2862_s1 + $0x578] ss:$12 sps:$4 sm:$0xff]  }
  0x7b   :  { %1439 = vmatpush2.bf16.msra.mxu0 %v2122_v10  ;;  %v2188_v10 = vld [vmem:[%s2862_s1 + $0x338] ss:$12 sps:$4 sm:$0xff]  }
  0x7c   :  { %1480 = vmatpush2.bf16.msra.mxu1 %v2125_v11  ;;  %1440 = vmatprep.subr.bf16.mxu0 %v2130_v12  ;;  %v2189_v11 = vld [vmem:[%s2862_s1 + $0x4b8] ss:$12 sps:$4 sm:$0xff]   ;;  %v2190_v12 = vld [vmem:[%s2862_s1 + $0x3e0] ss:$12 sps:$4 sm:$0xff]  }
  0x7d   :  { %1481 = vmatprep.subr.bf16.mxu1 %v2133_v13  ;;  %v2191_v13 = vld [vmem:[%s2862_s1 + $0x560] ss:$12 sps:$4 sm:$0xff]  }
  0x7f   :  { %1441 = vmatpush2.bf16.msra.mxu0 %v2128_v14  ;;  %v2192_v14 = vld [vmem:[%s2862_s1 + $0x320] ss:$12 sps:$4 sm:$0xff]  }
  0x80   :  { %1482 = vmatpush2.bf16.msra.mxu1 %v2131_v15  ;;  %1854 = vmatprep.subr.bf16.mxu0 %v2134_v18  ;;  %v2193_v15 = vld [vmem:[%s2862_s1 + $0x4a0] ss:$12 sps:$4 sm:$0xff]   ;;  %v2196_v18 = vld [vmem:[%s2862_s1 + $0x308] ss:$12 sps:$4 sm:$0xff]  }
  0x81   :  { %1876 = vmatprep.subr.bf16.mxu1 %v2135_v19  ;;  %v2197_v19 = vld [vmem:[%s2862_s1 + $0x488] ss:$12 sps:$4 sm:$0xff]  }
  0x82   :  { %1443 = vmatmul.mubr.bf16.vlgmr.msra.gmra.mxu0 %v2653_v21 }
  0x83   :  { %1484 = vmatmul.mubr.bf16.vlgmr.msra.gmra.mxu1 %v2655_v22  ;;  %1855 = vmatpush3.bf16.msra.mxu0 %v2136_v20 }
  0x84   :  { %1877 = vmatpush3.bf16.msra.mxu1 %v2137_v23  ;;  %1856 = vmatprep.subr.bf16.mxu0 %v2138_v24 }
  0x85   :  { %1878 = vmatprep.subr.bf16.mxu1 %v2139_v25  ;;  %1524 = vmatprep.mubr.bf16.mxu0 %v2365_v49  ;;  %v2148_v49 = vld [vmem:[%s2862_s1 + $0x68] ss:$12 sps:$4 sm:$0xff]  }
  0x86   :  { %1564 = vmatprep.mubr.bf16.mxu1 %v2373_v52  ;;  %v2149_v52 = vld [vmem:[%s2862_s1 + $0x1e8] ss:$12 sps:$4 sm:$0xff]  }
  0x87   :  { %1857 = vmatpush3.bf16.msra.mxu0 %v2140_v26 }
  0x88   :  { %1879 = vmatpush3.bf16.msra.mxu1 %v2141_v27  ;;  %1858 = vmatprep.subr.bf16.mxu0 %v2142_v28 }
  0x89   :  { %1880 = vmatprep.subr.bf16.mxu1 %v2143_v29 }
  0x8b   :  { %1859 = vmatpush3.bf16.msra.mxu0 %v2144_v30  ;;  %v289_v30 = vlaneseq }
  0x8c   :  { %1881 = vmatpush3.bf16.msra.mxu1 %v2145_v31  ;;  %1860 = vmatprep.subr.bf16.mxu0 %v2146_v32 }
  0x8d   :  { %1882 = vmatprep.subr.bf16.mxu1 %v2147_v33  ;;  %v290_v31 = vshrl.u32 %v289_v30, 7  ;;  %v287_v33 = vld [vmem:[%s2864_s2] sm:$0x7] }
  0x8f   :  { %1861 = vmatpush3.bf16.msra.mxu0 %v2148_v49  ;;  %v291_v32 = vsub.s32 0, %v290_v31  ;;  %v295_v49 = vsub.s32 1, %v290_v31 }
  0x90   :  { %1883 = vmatpush3.bf16.msra.mxu1 %v2149_v52  ;;  %1862 = vmatprep.subr.bf16.mxu0 %v2150_v34 }
  0x91   :  { %1884 = vmatprep.subr.bf16.mxu1 %v2151_v35  ;;  %v292_v52 = vrot.slane %v287_v33, %v291_v32 }
  0x93   :  { %1863 = vmatpush3.bf16.msra.mxu0 %v2152_v36 }
  0x94   :  { %1885 = vmatpush3.bf16.msra.mxu1 %v2153_v38  ;;  %1864 = vmatprep.subr.bf16.mxu0 %v2154_v39 }
  0x95   :  { %1886 = vmatprep.subr.bf16.mxu1 %v2155_v41 }
  0x97   :  { %1865 = vmatpush3.bf16.msra.mxu0 %v2156_v42 }
  0x98   :  { %1887 = vmatpush3.bf16.msra.mxu1 %v2157_v43  ;;  %1866 = vmatprep.subr.bf16.mxu0 %v2158_v44 }
  0x99   :  { %1888 = vmatprep.subr.bf16.mxu1 %v2159_v45 }
  0x9b   :  { %1867 = vmatpush3.bf16.msra.mxu0 %v2160_v46 }
  0x9c   :  { %1889 = vmatpush3.bf16.msra.mxu1 %v2161_v47  ;;  %1868 = vmatprep.subr.bf16.mxu0 %v2162_v48 }
  0x9d   :  { %1890 = vmatprep.subr.bf16.mxu1 %v2163_v50 }
  0x9f   :  { %1869 = vmatpush3.bf16.msra.mxu0 %v2164_v51 }
  0xa0   :  { %1891 = vmatpush3.bf16.msra.mxu1 %v2165_v53  ;;  %1898 = vmatprep.subr.bf16.mxu0 %v2166_v54 }
  0xa1   :  { %1920 = vmatprep.subr.bf16.mxu1 %v2167_v55 }
  0xa2   :  { %1525 = vmatmul.mubr.bf16.vlgmr.msra.gmra.mxu0 %v2434_v8  ;;  %v2175_v8 = vld [vmem:[%s2862_s1 + $0x5c0] ss:$12 sps:$4 sm:$0xff]  }
  0xa3   :  { %1565 = vmatmul.mubr.bf16.vlgmr.msra.gmra.mxu1 %v2436_v9  ;;  %1899 = vmatpush3.bf16.msra.mxu0 %v2168_v56  ;;  %v2176_v9 = vld [vmem:[%s2862_s1 + $0x380] ss:$12 sps:$4 sm:$0xff]  }
  0xa4   :  { %1921 = vmatpush3.bf16.msra.mxu1 %v2169_v57  ;;  %1900 = vmatprep.subr.bf16.mxu0 %v2170_v58 }
  0xa5   :  { %1922 = vmatprep.subr.bf16.mxu1 %v2171_v59  ;;  %1604 = vmatprep.mubr.bf16.mxu0 %v2521_v37  ;;  %v2179_v37 = vld [vmem:[%s2862_s1 + $0x5a8] ss:$12 sps:$4 sm:$0xff]  }
  0xa6   :  { %1644 = vmatprep.mubr.bf16.mxu1 %v2529_v40  ;;  %v2180_v40 = vld [vmem:[%s2862_s1 + $0x368] ss:$12 sps:$4 sm:$0xff]  }
  0xa7   :  { %1901 = vmatpush3.bf16.msra.mxu0 %v2172_v60 }
  0xa8   :  { %1923 = vmatpush3.bf16.msra.mxu1 %v2173_v61  ;;  %1902 = vmatprep.subr.bf16.mxu0 %v2174_v62 }
  0xa9   :  { %1924 = vmatprep.subr.bf16.mxu1 %v2175_v8  ;;  %v299_v8 = vsub.s32 2, %v290_v31 }
  0xab   :  { %1903 = vmatpush3.bf16.msra.mxu0 %v2176_v9  ;;  %v300_v9 = vrot.slane %v287_v33, %v299_v8 }
  0xac   :  { %1925 = vmatpush3.bf16.msra.mxu1 %v2177_v63  ;;  %1904 = vmatprep.subr.bf16.mxu0 %v2178_v0 }
  0xad   :  { %1926 = vmatprep.subr.bf16.mxu1 %v2179_v37 }
  0xaf   :  { %1905 = vmatpush3.bf16.msra.mxu0 %v2180_v40 }
  0xb0   :  { %1927 = vmatpush3.bf16.msra.mxu1 %v2181_v1  ;;  %1906 = vmatprep.subr.bf16.mxu0 %v2182_v2 }
  0xb1   :  { %1928 = vmatprep.subr.bf16.mxu1 %v2183_v3 }
  0xb3   :  { %1907 = vmatpush3.bf16.msra.mxu0 %v2184_v4 }
  0xb4   :  { %1929 = vmatpush3.bf16.msra.mxu1 %v2185_v5  ;;  %1908 = vmatprep.subr.bf16.mxu0 %v2186_v6 }
  0xb5   :  { %1930 = vmatprep.subr.bf16.mxu1 %v2187_v7 }
  0xb7   :  { %1909 = vmatpush3.bf16.msra.mxu0 %v2188_v10 }
  0xb8   :  { %1931 = vmatpush3.bf16.msra.mxu1 %v2189_v11  ;;  %1910 = vmatprep.subr.bf16.mxu0 %v2190_v12 }
  0xb9   :  { %1932 = vmatprep.subr.bf16.mxu1 %v2191_v13 }
  0xbb   :  { %1911 = vmatpush3.bf16.msra.mxu0 %v2192_v14 }
  0xbc   :  { %1933 = vmatpush3.bf16.msra.mxu1 %v2193_v15  ;;  %1912 = vmatprep.subr.bf16.mxu0 %v2194_v16 }
  0xbd   :  { %1934 = vmatprep.subr.bf16.mxu1 %v2195_v17 }
  0xbf   :  { %1913 = vmatpush3.bf16.msra.mxu0 %v2196_v18 }
  0xc0   :  { %1935 = vmatpush3.bf16.msra.mxu1 %v2197_v19 }
  0xc2   :  { %1605 = vmatmul.mubr.bf16.vlgmr.msra.gmra.mxu0 %v2653_v21  ;;  %v296_v21 = vrot.slane %v287_v33, %v295_v49 }
  0xc3   :  { %1645 = vmatmul.mubr.bf16.vlgmr.msra.gmra.mxu1 %v2655_v22 }
 0x102   :  { %v1362_v20 = vpop.f32.mrf.mxu0 }
 0x103   :  { %v1403_v23 = vpop.f32.mrf.mxu1  ;;  %v1363_v34 = vadd.f32 %v1362_v20, %v292_v52 }
 0x104   :  { %v1364_v24 = vpop.f32.mrf.mxu0 }
 0x105   :  { %v1405_v25 = vpop.f32.mrf.mxu1  ;;  %v1365_v22 = vadd.f32 %v1364_v24, %v296_v21  ;;  %v1404_v35 = vadd.f32 %v1403_v23, %v1363_v34 }
 0x106   :  { %v1366_v26 = vpop.f32.mrf.mxu0 }
 0x107   :  { %v1407_v27 = vpop.f32.mrf.mxu1  ;;  %v1406_v39 = vadd.f32 %v1405_v25, %v1365_v22 }
 0x108   :  { %v1367_v28 = vpop.f32.mrf.mxu0 }
 0x109   :  { %v1408_v29 = vpop.f32.mrf.mxu1 }
 0x142   :  { %v1444_v36 = vpop.f32.mrf.mxu0 }
 0x143   :  { %v1485_v38 = vpop.f32.mrf.mxu1  ;;  %v1445_v41 = vadd.f32 %v1444_v36, %v1404_v35 }
 0x144   :  { %v1446_v42 = vpop.f32.mrf.mxu0 }
 0x145   :  { %v1487_v43 = vpop.f32.mrf.mxu1  ;;  %v1486_v44 = vadd.f32 %v1485_v38, %v1445_v41  ;;  %v1447_v45 = vadd.f32 %v1446_v42, %v1406_v39 }
 0x146   :  { %v1448_v46 = vpop.f32.mrf.mxu0 }
 0x147   :  { %v1489_v47 = vpop.f32.mrf.mxu1  ;;  %v1652_v48 = vmax.f32 %v1486_v44, 0.0  ;;  %v1488_v50 = vadd.f32 %v1487_v43, %v1447_v45 }
 0x148   :  { %v1449_v51 = vpop.f32.mrf.mxu0 }
 0x149   :  { %v1490_v53 = vpop.f32.mrf.mxu1  ;;  %1655 = vst [vmem:[%s2865_s3] sm:$0xff] %v1652_v48  ;;  %v1653_v54 = vmax.f32 %v1488_v50, 0.0 }
 0x14b   :  { %1656 = vst [vmem:[%s2865_s3 + $0x8] sm:$0xff] %v1653_v54 }
 0x162   :  { %v1870_v55 = vpop.f32.mrf.mxu0 }
 0x163   :  { %v1892_v56 = vpop.f32.mrf.mxu1 }
 0x164   :  { %v1871_v57 = vpop.f32.mrf.mxu0 }
 0x165   :  { %v1893_v58 = vpop.f32.mrf.mxu1  ;;  %v1872_v63 = vadd.f32 %v1871_v57, %v1870_v55 }
 0x166   :  { %v1873_v59 = vpop.f32.mrf.mxu0  ;;  %v1894_v37 = vadd.f32 %v1893_v58, %v1892_v56 }
 0x167   :  { %v1895_v60 = vpop.f32.mrf.mxu1  ;;  %v1527_v0 = vadd.f32 %v1872_v63, %v300_v9 }
 0x168   :  { %v1874_v61 = vpop.f32.mrf.mxu0 }
 0x169   :  { %v1896_v62 = vpop.f32.mrf.mxu1  ;;  %v1567_v4 = vadd.f32 %v1894_v37, %v1527_v0 }
 0x182   :  { %v1914_v40 = vpop.f32.mrf.mxu0 }
 0x183   :  { %v1936_v1 = vpop.f32.mrf.mxu1 }
 0x184   :  { %v1915_v2 = vpop.f32.mrf.mxu0 }
 0x185   :  { %v1937_v3 = vpop.f32.mrf.mxu1  ;;  %v1916_v5 = vadd.f32 %v1915_v2, %v1914_v40 }
 0x186   :  { %v1917_v6 = vpop.f32.mrf.mxu0  ;;  %v1938_v11 = vadd.f32 %v1937_v3, %v1936_v1 }
 0x187   :  { %v1939_v7 = vpop.f32.mrf.mxu1  ;;  %v1607_v10 = vadd.f32 %v1916_v5, %v1567_v4 }
 0x188   :  { %v1918_v12 = vpop.f32.mrf.mxu0 }
 0x189   :  { %v1940_v13 = vpop.f32.mrf.mxu1  ;;  %v1647_v14 = vadd.f32 %v1938_v11, %v1607_v10 }
 0x18b   :  { %v1654_v15 = vmax.f32 %v1647_v14, 0.0 }
 0x18d   :  { %1657 = vst [vmem:[%s2865_s3 + $0x10] sm:$0xff] %v1654_v15 }

</bundles_post_ra>
